<compile_context>
chip_gen: v7x
topology: tpu7x:2x2x1
jax: 0.10.0
libtpu: 0.0.40
codegen_flags: <defaults>
</compile_context>

<pallas_src>
import functools

import jax
import jax.numpy as jnp
import numpy as np
from jax.experimental import pallas as pl
from jax.experimental.pallas import tpu as pltpu


def _branch2_kernel(x2_ref, w1_ref, b1_ref, wdw_ref, b2_ref, w3_ref, b3_ref,
                    out_ref, *, btile, H, W):
    """branch2 of InvertedResidual (stride=1) for `btile` images per grid step.

    x2_ref : (btile*H*W, Cp) bf16  second channel half, channels zero-padded to Cp
    w1_ref : (Cp, Cp)        bf16  1x1 conv #1 weight (Cin, Cout), BN1 scale folded in
    b1_ref : (1, Cp)         f32   BN1 bias
    wdw_ref: (9, 1, Cp)      f32   3x3 depthwise weights (ky*3+kx, 1, C), BN2 scale folded in
    b2_ref : (1, Cp)         f32   BN2 bias
    w3_ref : (Cp, Cp)        bf16  1x1 conv #2 weight, BN3 scale folded in
    b3_ref : (1, Cp)         f32   BN3 bias
    out_ref: (btile*H*W, Cp) bf16  branch2 output (flattened rows)
    """
    R, Cp = x2_ref.shape  # R = btile * H * W

    # ---- 1x1 conv + BN + ReLU: one large-M MXU matmul over all btile*H*W pixels ----------
    y1 = jnp.dot(x2_ref[...], w1_ref[...], preferred_element_type=jnp.float32)
    y1 = jnp.maximum(y1 + b1_ref[...], 0.0)                     # (R, Cp) f32

    # ---- row / column index maps (no integer modulo: iota on the logical 4-D view) -------
    row_idx = jax.lax.broadcasted_iota(jnp.int32, (btile, H, W, Cp), 1).reshape(R, Cp)
    col_idx = jax.lax.broadcasted_iota(jnp.int32, (btile, H, W, Cp), 2).reshape(R, Cp)

    # ---- 3x3 depthwise conv, stride 1, pad 1 (+ folded BN2) ------------------------------
    # Neighbours come from +-W / +-1 shifts of the flattened row axis; any value that would
    # wrap across a row or image boundary is masked to zero, so cross-image leakage from the
    # batched flattening is impossible.  No VMEM halo scratch, no store->load round trip.
    wdw = wdw_ref[...]                                          # (9, 1, Cp)
    up = jnp.where(row_idx >= 1,     jnp.roll(y1,  W, axis=0), 0.0)   # y1[h-1, w]
    dn = jnp.where(row_idx <= H - 2, jnp.roll(y1, -W, axis=0), 0.0)   # y1[h+1, w]

    # Fold each column tap into y2 as soon as possible to bound live vreg ranges.
    acc_l = up * wdw[0] + y1 * wdw[3] + dn * wdw[6]             # kx = 0 taps (need col w-1)
    y2 = up * wdw[1] + y1 * wdw[4] + dn * wdw[7] + b2_ref[...]  # kx = 1 (center) taps
    y2 = y2 + jnp.where(col_idx >= 1, jnp.roll(acc_l, 1, axis=0), 0.0)        # += in[w-1]
    acc_r = up * wdw[2] + y1 * wdw[5] + dn * wdw[8]             # kx = 2 taps (need col w+1)
    y2 = y2 + jnp.where(col_idx <= W - 2, jnp.roll(acc_r, -1, axis=0), 0.0)   # += in[w+1]

    # ---- 1x1 conv + BN + ReLU (BN scale folded into w3), bf16 writeback ------------------
    y3 = jnp.dot(y2.astype(jnp.bfloat16), w3_ref[...],
                 preferred_element_type=jnp.float32)
    out_ref[...] = jnp.maximum(y3 + b3_ref[...], 0.0).astype(out_ref.dtype)


def _pad_last(a, target):
    pad = target - a.shape[-1]
    if pad == 0:
        return a
    return jnp.pad(a, [(0, 0)] * (a.ndim - 1) + [(0, pad)])


def _fold_bn(gamma, beta, mean, var, eps):
    scale = gamma / jnp.sqrt(var + eps)
    return scale, beta - mean * scale


def _pick_batch_tile(n, max_tile=8):
    """Largest divisor of n <= max_tile that still leaves >= 2 grid steps (v7x megacore)."""
    best = 1
    for bt in range(1, min(max_tile, n) + 1):
        if n % bt == 0 and (n // bt >= 2 or n == 1):
            best = bt
    return best


def inverted_residual_pallas(x_nchw, params, eps=1e-5, max_batch_tile=8):
    """InvertedResidual forward, stride=1 (requires inp == oup == 2*branch_features)."""
    N, C, H, W = x_nchw.shape
    assert C % 2 == 0, "stride=1 InvertedResidual needs an even channel count"
    assert (H * W) % 16 == 0, "kernel assumes H*W is a multiple of 16 (bf16 sublane tiling)"
    bf = C // 2
    # Lane-dense channel padding to a multiple of 128 lanes.
    Cp = ((bf + 127) // 128) * 128

    btile = _pick_batch_tile(N, max_batch_tile)   # keep blocks small enough for v5e/v7x VMEM
    grid = N // btile
    tile_rows = btile * H * W

    # ---- plain-JAX layout glue: channel split, NCHW->NHWC, pad channels, flatten rows ----
    x1 = x_nchw[:, :bf]
    x2 = x_nchw[:, bf:]
    x2_rows = _pad_last(jnp.transpose(x2, (0, 2, 3, 1)), Cp)
    x2_rows = x2_rows.reshape(N * H * W, Cp).astype(jnp.bfloat16)   # kernel refs are 2-D

    # ---- fold BN scales into conv weights host-side --------------------------------------
    s1, bias1 = _fold_bn(*params["bn1"], eps)
    s2, bias2 = _fold_bn(*params["bn2"], eps)
    s3, bias3 = _fold_bn(*params["bn3"], eps)

    # 1x1 convs: OIHW -> (Cin, Cout), BN scale folded into the output channel.
    w1_io = jnp.transpose(params["w1"][:, :, 0, 0] * s1[:, None], (1, 0))
    w3_io = jnp.transpose(params["w3"][:, :, 0, 0] * s3[:, None], (1, 0))
    w1_k = jnp.pad(w1_io, ((0, Cp - bf), (0, Cp - bf))).astype(jnp.bfloat16)
    w3_k = jnp.pad(w3_io, ((0, Cp - bf), (0, Cp - bf))).astype(jnp.bfloat16)

    # depthwise 3x3: (bf, 1, 3, 3) -> (3, 3, bf) -> (9, 1, Cp), BN2 scale folded in.
    wdw = jnp.transpose(params["wdw"][:, 0] * s2[:, None, None], (1, 2, 0))
    wdw_k = _pad_last(wdw, Cp).reshape(9, 1, Cp).astype(jnp.float32)

    b1_k = _pad_last(bias1.reshape(1, bf), Cp).astype(jnp.float32)
    b2_k = _pad_last(bias2.reshape(1, bf), Cp).astype(jnp.float32)
    b3_k = _pad_last(bias3.reshape(1, bf), Cp).astype(jnp.float32)

    kernel = functools.partial(_branch2_kernel, btile=btile, H=H, W=W)

    grid_spec = pltpu.PrefetchScalarGridSpec(
        num_scalar_prefetch=0,
        grid=(grid,),
        in_specs=[
            pl.BlockSpec((tile_rows, Cp), lambda n: (n, 0)),
            pl.BlockSpec((Cp, Cp), lambda n: (0, 0)),
            pl.BlockSpec((1, Cp), lambda n: (0, 0)),
            pl.BlockSpec((9, 1, Cp), lambda n: (0, 0, 0)),
            pl.BlockSpec((1, Cp), lambda n: (0, 0)),
            pl.BlockSpec((Cp, Cp), lambda n: (0, 0)),
            pl.BlockSpec((1, Cp), lambda n: (0, 0)),
        ],
        out_specs=pl.BlockSpec((tile_rows, Cp), lambda n: (n, 0)),
    )

    out_rows = pl.pallas_call(
        kernel,
        out_shape=jax.ShapeDtypeStruct((N * H * W, Cp), jnp.bfloat16),
        grid_spec=grid_spec,
        compiler_params=pltpu.CompilerParams(
            dimension_semantics=("parallel",)),   # >= 2 parallel steps -> both v7x TCs busy
    )(x2_rows, w1_k, b1_k, wdw_k, b2_k, w3_k, b3_k)

    # drop channel padding, back to NCHW, concat + channel_shuffle(groups=2)
    y = out_rows.reshape(N, H, W, Cp)[:, :, :, :bf]
    y = jnp.transpose(y, (0, 3, 1, 2)).astype(x_nchw.dtype)
    out = jnp.concatenate([x1, y], axis=1)
    out = out.reshape(N, 2, C // 2, H, W).transpose(0, 2, 1, 3, 4)
    return out.reshape(N, C, H, W)


# ------------------------- pure-JAX reference (NCHW, mirrors the PyTorch module) ----------
def inverted_residual_ref(x_nchw, params, eps=1e-5):
    N, C, H, W = x_nchw.shape
    bf = C // 2
    x1, x2 = x_nchw[:, :bf], x_nchw[:, bf:]

    def bn(y, p):
        g, b, m, v = p
        inv = g / jnp.sqrt(v + eps)
        return y * inv[None, :, None, None] + (b - m * inv)[None, :, None, None]

    def conv(y, w, **kw):
        return jax.lax.conv_general_dilated(
            y, w, window_strides=(1, 1),
            dimension_numbers=("NCHW", "OIHW", "NCHW"), **kw)

    y = jax.nn.relu(bn(conv(x2, params["w1"], padding="VALID"), params["bn1"]))
    y = bn(conv(y, params["wdw"], padding=((1, 1), (1, 1)),
                feature_group_count=bf), params["bn2"])
    y = jax.nn.relu(bn(conv(y, params["w3"], padding="VALID"), params["bn3"]))

    out = jnp.concatenate([x1, y], axis=1)
    out = out.reshape(N, 2, C // 2, H, W).transpose(0, 2, 1, 3, 4)
    return out.reshape(N, C, H, W)


if __name__ == "__main__":
    # InvertedResidual(inp=4, oup=4, stride=1): branch_features = 2, spatial 16x16, batch 4
    # (batch 4 exercises the batch-tiled grid: B_TILE=2, grid=(2,)).
    N, C, H, W = 4, 4, 16, 16
    bf = C // 2
    key = jax.random.PRNGKey(0)
    ks = jax.random.split(key, 7)

    x = jax.random.normal(ks[0], (N, C, H, W), jnp.float32)

    def make_bn(k):
        kg, kb, km, kv = jax.random.split(k, 4)
        return (1.0 + 0.1 * jax.random.normal(kg, (bf,), jnp.float32),
                0.1 * jax.random.normal(kb, (bf,), jnp.float32),
                0.1 * jax.random.normal(km, (bf,), jnp.float32),
                1.0 + 0.1 * jnp.abs(jax.random.normal(kv, (bf,), jnp.float32)))

    params = {
        "w1": 0.2 * jax.random.normal(ks[1], (bf, bf, 1, 1), jnp.float32),
        "bn1": make_bn(ks[2]),
        "wdw": 0.2 * jax.random.normal(ks[3], (bf, 1, 3, 3), jnp.float32),
        "bn2": make_bn(ks[4]),
        "w3": 0.2 * jax.random.normal(ks[5], (bf, bf, 1, 1), jnp.float32),
        "bn3": make_bn(ks[6]),
    }

    out = jax.block_until_ready(inverted_residual_pallas(x, params))
    ref = inverted_residual_ref(x, params)
    # bf16 MXU inputs / bf16 writeback with f32 accumulation -> slightly loose tolerance.
    np.testing.assert_allclose(np.asarray(out), np.asarray(ref), rtol=2e-2, atol=2e-2)
    print("KERNEL_OK")
</pallas_src>

<mosaic_0001>
module attributes {stable_mosaic.version = 11 : i64} {
  func.func @_branch2_kernel(%arg0: i32, %arg1: memref<512x128xbf16, #tpu.memory_space<vmem>>, %arg2: memref<128x128xbf16, #tpu.memory_space<vmem>>, %arg3: memref<1x128xf32, #tpu.memory_space<vmem>>, %arg4: memref<9x1x128xf32, #tpu.memory_space<vmem>>, %arg5: memref<1x128xf32, #tpu.memory_space<vmem>>, %arg6: memref<128x128xbf16, #tpu.memory_space<vmem>>, %arg7: memref<1x128xf32, #tpu.memory_space<vmem>>, %arg8: memref<512x128xbf16, #tpu.memory_space<vmem>>) attributes {dimension_semantics = [#tpu.dimension_semantics<parallel>], iteration_bounds = array<i64: 2>, scalar_prefetch = 0 : i64, scratch_operands = 0 : i64, tpu.core_type = #tpu.core_type<tc>, window_params = [{transform_indices = @transform_0, window_bounds = array<i64: 512, 128>}, {pipeline_mode = #tpu.pipeline_mode<synchronous>, transform_indices = @transform_1, window_bounds = array<i64: 128, 128>}, {pipeline_mode = #tpu.pipeline_mode<synchronous>, transform_indices = @transform_2, window_bounds = array<i64: 1, 128>}, {pipeline_mode = #tpu.pipeline_mode<synchronous>, transform_indices = @transform_3, window_bounds = array<i64: 9, 1, 128>}, {pipeline_mode = #tpu.pipeline_mode<synchronous>, transform_indices = @transform_4, window_bounds = array<i64: 1, 128>}, {pipeline_mode = #tpu.pipeline_mode<synchronous>, transform_indices = @transform_5, window_bounds = array<i64: 128, 128>}, {pipeline_mode = #tpu.pipeline_mode<synchronous>, transform_indices = @transform_6, window_bounds = array<i64: 1, 128>}, {transform_indices = @transform_7, window_bounds = array<i64: 512, 128>}]} {
    %c0 = arith.constant 0 : index
    %c0_0 = arith.constant 0 : index
    %0 = vector.load %arg1[%c0, %c0_0] : memref<512x128xbf16, #tpu.memory_space<vmem>>, vector<512x128xbf16>
    %c0_1 = arith.constant 0 : index
    %c0_2 = arith.constant 0 : index
    %1 = vector.load %arg2[%c0_1, %c0_2] : memref<128x128xbf16, #tpu.memory_space<vmem>>, vector<128x128xbf16>
    %cst = arith.constant dense<0.000000e+00> : vector<512x128xf32>
    %2 = tpu.matmul %0, %1, %cst {dimension_numbers = #tpu.dot_dimension_numbers<[1], [0], [0], [1], [0, 0, 1, 1], [], []>} : vector<512x128xbf16>, vector<128x128xbf16>, vector<512x128xf32> -> vector<512x128xf32>
    %c0_3 = arith.constant 0 : index
    %c0_4 = arith.constant 0 : index
    %3 = vector.load %arg3[%c0_3, %c0_4] : memref<1x128xf32, #tpu.memory_space<vmem>>, vector<1x128xf32>
    %4 = vector.broadcast %3 : vector<1x128xf32> to vector<512x128xf32>
    %5 = arith.addf %2, %4 : vector<512x128xf32>
    %cst_5 = arith.constant 0.000000e+00 : f32
    %6 = vector.broadcast %cst_5 : f32 to vector<512x128xf32>
    %7 = arith.maximumf %5, %6 : vector<512x128xf32>
    %8 = tpu.iota {dimensions = array<i32: 1>} : vector<2x16x16x128xi32>
    %9 = vector.shape_cast %8 : vector<2x16x16x128xi32> to vector<512x128xi32>
    %10 = tpu.iota {dimensions = array<i32: 2>} : vector<2x16x16x128xi32>
    %11 = vector.shape_cast %10 : vector<2x16x16x128xi32> to vector<512x128xi32>
    %c0_6 = arith.constant 0 : index
    %c0_7 = arith.constant 0 : index
    %c0_8 = arith.constant 0 : index
    %12 = vector.load %arg4[%c0_6, %c0_7, %c0_8] : memref<9x1x128xf32, #tpu.memory_space<vmem>>, vector<9x1x128xf32>
    %c1_i32 = arith.constant 1 : i32
    %13 = vector.broadcast %c1_i32 : i32 to vector<512x128xi32>
    %14 = arith.cmpi sge, %9, %13 : vector<512x128xi32>
    %15 = vector.extract_strided_slice %7 {offsets = [496, 0], sizes = [16, 128], strides = [1, 1]} : vector<512x128xf32> to vector<16x128xf32>
    %16 = vector.extract_strided_slice %7 {offsets = [0, 0], sizes = [496, 128], strides = [1, 1]} : vector<512x128xf32> to vector<496x128xf32>
    %17 = tpu.concatenate %15, %16 in 0 : vector<16x128xf32>, vector<496x128xf32> -> vector<512x128xf32>
    %cst_9 = arith.constant 0.000000e+00 : f32
    %18 = vector.broadcast %cst_9 : f32 to vector<512x128xf32>
    %19 = arith.select %14, %17, %18 : vector<512x128xi1>, vector<512x128xf32>
    %c14_i32 = arith.constant 14 : i32
    %20 = vector.broadcast %c14_i32 : i32 to vector<512x128xi32>
    %21 = arith.cmpi sle, %9, %20 : vector<512x128xi32>
    %22 = vector.extract_strided_slice %7 {offsets = [16, 0], sizes = [496, 128], strides = [1, 1]} : vector<512x128xf32> to vector<496x128xf32>
    %23 = vector.extract_strided_slice %7 {offsets = [0, 0], sizes = [16, 128], strides = [1, 1]} : vector<512x128xf32> to vector<16x128xf32>
    %24 = tpu.concatenate %22, %23 in 0 : vector<496x128xf32>, vector<16x128xf32> -> vector<512x128xf32>
    %cst_10 = arith.constant 0.000000e+00 : f32
    %25 = vector.broadcast %cst_10 : f32 to vector<512x128xf32>
    %26 = arith.select %21, %24, %25 : vector<512x128xi1>, vector<512x128xf32>
    %27 = vector.extract_strided_slice %12 {offsets = [0, 0, 0], sizes = [1, 1, 128], strides = [1, 1, 1]} : vector<9x1x128xf32> to vector<1x1x128xf32>
    %28 = vector.shape_cast %27 : vector<1x1x128xf32> to vector<1x128xf32>
    %29 = vector.broadcast %28 : vector<1x128xf32> to vector<512x128xf32>
    %30 = arith.mulf %19, %29 : vector<512x128xf32>
    %31 = vector.extract_strided_slice %12 {offsets = [3, 0, 0], sizes = [1, 1, 128], strides = [1, 1, 1]} : vector<9x1x128xf32> to vector<1x1x128xf32>
    %32 = vector.shape_cast %31 : vector<1x1x128xf32> to vector<1x128xf32>
    %33 = vector.broadcast %32 : vector<1x128xf32> to vector<512x128xf32>
    %34 = arith.mulf %7, %33 : vector<512x128xf32>
    %35 = arith.addf %30, %34 : vector<512x128xf32>
    %36 = vector.extract_strided_slice %12 {offsets = [6, 0, 0], sizes = [1, 1, 128], strides = [1, 1, 1]} : vector<9x1x128xf32> to vector<1x1x128xf32>
    %37 = vector.shape_cast %36 : vector<1x1x128xf32> to vector<1x128xf32>
    %38 = vector.broadcast %37 : vector<1x128xf32> to vector<512x128xf32>
    %39 = arith.mulf %26, %38 : vector<512x128xf32>
    %40 = arith.addf %35, %39 : vector<512x128xf32>
    %41 = vector.extract_strided_slice %12 {offsets = [1, 0, 0], sizes = [1, 1, 128], strides = [1, 1, 1]} : vector<9x1x128xf32> to vector<1x1x128xf32>
    %42 = vector.shape_cast %41 : vector<1x1x128xf32> to vector<1x128xf32>
    %43 = vector.broadcast %42 : vector<1x128xf32> to vector<512x128xf32>
    %44 = arith.mulf %19, %43 : vector<512x128xf32>
    %45 = vector.extract_strided_slice %12 {offsets = [4, 0, 0], sizes = [1, 1, 128], strides = [1, 1, 1]} : vector<9x1x128xf32> to vector<1x1x128xf32>
    %46 = vector.shape_cast %45 : vector<1x1x128xf32> to vector<1x128xf32>
    %47 = vector.broadcast %46 : vector<1x128xf32> to vector<512x128xf32>
    %48 = arith.mulf %7, %47 : vector<512x128xf32>
    %49 = arith.addf %44, %48 : vector<512x128xf32>
    %50 = vector.extract_strided_slice %12 {offsets = [7, 0, 0], sizes = [1, 1, 128], strides = [1, 1, 1]} : vector<9x1x128xf32> to vector<1x1x128xf32>
    %51 = vector.shape_cast %50 : vector<1x1x128xf32> to vector<1x128xf32>
    %52 = vector.broadcast %51 : vector<1x128xf32> to vector<512x128xf32>
    %53 = arith.mulf %26, %52 : vector<512x128xf32>
    %54 = arith.addf %49, %53 : vector<512x128xf32>
    %c0_11 = arith.constant 0 : index
    %c0_12 = arith.constant 0 : index
    %55 = vector.load %arg5[%c0_11, %c0_12] : memref<1x128xf32, #tpu.memory_space<vmem>>, vector<1x128xf32>
    %56 = vector.broadcast %55 : vector<1x128xf32> to vector<512x128xf32>
    %57 = arith.addf %54, %56 : vector<512x128xf32>
    %c1_i32_13 = arith.constant 1 : i32
    %58 = vector.broadcast %c1_i32_13 : i32 to vector<512x128xi32>
    %59 = arith.cmpi sge, %11, %58 : vector<512x128xi32>
    %60 = vector.extract_strided_slice %40 {offsets = [511, 0], sizes = [1, 128], strides = [1, 1]} : vector<512x128xf32> to vector<1x128xf32>
    %61 = vector.extract_strided_slice %40 {offsets = [0, 0], sizes = [511, 128], strides = [1, 1]} : vector<512x128xf32> to vector<511x128xf32>
    %62 = tpu.concatenate %60, %61 in 0 : vector<1x128xf32>, vector<511x128xf32> -> vector<512x128xf32>
    %cst_14 = arith.constant 0.000000e+00 : f32
    %63 = vector.broadcast %cst_14 : f32 to vector<512x128xf32>
    %64 = arith.select %59, %62, %63 : vector<512x128xi1>, vector<512x128xf32>
    %65 = arith.addf %57, %64 : vector<512x128xf32>
    %66 = vector.extract_strided_slice %12 {offsets = [2, 0, 0], sizes = [1, 1, 128], strides = [1, 1, 1]} : vector<9x1x128xf32> to vector<1x1x128xf32>
    %67 = vector.shape_cast %66 : vector<1x1x128xf32> to vector<1x128xf32>
    %68 = vector.broadcast %67 : vector<1x128xf32> to vector<512x128xf32>
    %69 = arith.mulf %19, %68 : vector<512x128xf32>
    %70 = vector.extract_strided_slice %12 {offsets = [5, 0, 0], sizes = [1, 1, 128], strides = [1, 1, 1]} : vector<9x1x128xf32> to vector<1x1x128xf32>
    %71 = vector.shape_cast %70 : vector<1x1x128xf32> to vector<1x128xf32>
    %72 = vector.broadcast %71 : vector<1x128xf32> to vector<512x128xf32>
    %73 = arith.mulf %7, %72 : vector<512x128xf32>
    %74 = arith.addf %69, %73 : vector<512x128xf32>
    %75 = vector.extract_strided_slice %12 {offsets = [8, 0, 0], sizes = [1, 1, 128], strides = [1, 1, 1]} : vector<9x1x128xf32> to vector<1x1x128xf32>
    %76 = vector.shape_cast %75 : vector<1x1x128xf32> to vector<1x128xf32>
    %77 = vector.broadcast %76 : vector<1x128xf32> to vector<512x128xf32>
    %78 = arith.mulf %26, %77 : vector<512x128xf32>
    %79 = arith.addf %74, %78 : vector<512x128xf32>
    %c14_i32_15 = arith.constant 14 : i32
    %80 = vector.broadcast %c14_i32_15 : i32 to vector<512x128xi32>
    %81 = arith.cmpi sle, %11, %80 : vector<512x128xi32>
    %82 = vector.extract_strided_slice %79 {offsets = [1, 0], sizes = [511, 128], strides = [1, 1]} : vector<512x128xf32> to vector<511x128xf32>
    %83 = vector.extract_strided_slice %79 {offsets = [0, 0], sizes = [1, 128], strides = [1, 1]} : vector<512x128xf32> to vector<1x128xf32>
    %84 = tpu.concatenate %82, %83 in 0 : vector<511x128xf32>, vector<1x128xf32> -> vector<512x128xf32>
    %cst_16 = arith.constant 0.000000e+00 : f32
    %85 = vector.broadcast %cst_16 : f32 to vector<512x128xf32>
    %86 = arith.select %81, %84, %85 : vector<512x128xi1>, vector<512x128xf32>
    %87 = arith.addf %65, %86 : vector<512x128xf32>
    %88 = arith.truncf %87 : vector<512x128xf32> to vector<512x128xbf16>
    %c0_17 = arith.constant 0 : index
    %c0_18 = arith.constant 0 : index
    %89 = vector.load %arg6[%c0_17, %c0_18] : memref<128x128xbf16, #tpu.memory_space<vmem>>, vector<128x128xbf16>
    %cst_19 = arith.constant dense<0.000000e+00> : vector<512x128xf32>
    %90 = tpu.matmul %88, %89, %cst_19 {dimension_numbers = #tpu.dot_dimension_numbers<[1], [0], [0], [1], [0, 0, 1, 1], [], []>} : vector<512x128xbf16>, vector<128x128xbf16>, vector<512x128xf32> -> vector<512x128xf32>
    %c0_20 = arith.constant 0 : index
    %c0_21 = arith.constant 0 : index
    %91 = vector.load %arg7[%c0_20, %c0_21] : memref<1x128xf32, #tpu.memory_space<vmem>>, vector<1x128xf32>
    %92 = vector.broadcast %91 : vector<1x128xf32> to vector<512x128xf32>
    %93 = arith.addf %90, %92 : vector<512x128xf32>
    %cst_22 = arith.constant 0.000000e+00 : f32
    %94 = vector.broadcast %cst_22 : f32 to vector<512x128xf32>
    %95 = arith.maximumf %93, %94 : vector<512x128xf32>
    %96 = arith.truncf %95 : vector<512x128xf32> to vector<512x128xbf16>
    %c0_23 = arith.constant 0 : index
    %c0_24 = arith.constant 0 : index
    %97 = vector.load %arg8[%c0_23, %c0_24] : memref<512x128xbf16, #tpu.memory_space<vmem>>, vector<512x128xbf16>
    tpu.vector_store %arg8[%c0_23, %c0_24], %96 {strides = array<i32>} : memref<512x128xbf16, #tpu.memory_space<vmem>>, vector<512x128xbf16>,
    return
  }
  func.func @transform_0(%arg0: i32) -> (i32, i32) {
    %c0_i32 = arith.constant 0 : i32
    %c0_i32_0 = arith.constant 0 : i32
    return %arg0, %c0_i32 : i32, i32
  }
  func.func @transform_1(%arg0: i32) -> (i32, i32) {
    %c0_i32 = arith.constant 0 : i32
    %c0_i32_0 = arith.constant 0 : i32
    %c0_i32_1 = arith.constant 0 : i32
    return %c0_i32, %c0_i32_0 : i32, i32
  }
  func.func @transform_2(%arg0: i32) -> (i32, i32) {
    %c0_i32 = arith.constant 0 : i32
    %c0_i32_0 = arith.constant 0 : i32
    %c0_i32_1 = arith.constant 0 : i32
    return %c0_i32, %c0_i32_0 : i32, i32
  }
  func.func @transform_3(%arg0: i32) -> (i32, i32, i32) {
    %c0_i32 = arith.constant 0 : i32
    %c0_i32_0 = arith.constant 0 : i32
    %c0_i32_1 = arith.constant 0 : i32
    %c0_i32_2 = arith.constant 0 : i32
    return %c0_i32, %c0_i32_0, %c0_i32_1 : i32, i32, i32
  }
  func.func @transform_4(%arg0: i32) -> (i32, i32) {
    %c0_i32 = arith.constant 0 : i32
    %c0_i32_0 = arith.constant 0 : i32
    %c0_i32_1 = arith.constant 0 : i32
    return %c0_i32, %c0_i32_0 : i32, i32
  }
  func.func @transform_5(%arg0: i32) -> (i32, i32) {
    %c0_i32 = arith.constant 0 : i32
    %c0_i32_0 = arith.constant 0 : i32
    %c0_i32_1 = arith.constant 0 : i32
    return %c0_i32, %c0_i32_0 : i32, i32
  }
  func.func @transform_6(%arg0: i32) -> (i32, i32) {
    %c0_i32 = arith.constant 0 : i32
    %c0_i32_0 = arith.constant 0 : i32
    %c0_i32_1 = arith.constant 0 : i32
    return %c0_i32, %c0_i32_0 : i32, i32
  }
  func.func @transform_7(%arg0: i32) -> (i32, i32) {
    %c0_i32 = arith.constant 0 : i32
    %c0_i32_0 = arith.constant 0 : i32
    return %arg0, %c0_i32 : i32, i32
  }
}

</mosaic_0001>

<bundles_post_ra>
// kernel: tpu_custom_call.1
= control target key start
LH: loop header
LB: loop body
LE: loop exit
PB: predicated region body
PF: predicated region fallthrough
CT: control target
= control target key end

     0   :  { %12 = vsyncpa [#allocation3], 0  ;;  %s7365_s0 = inlined_call_operand.hbm [shape: bf16[1024,128], index: 0, kind: input, shape index: {}]   ;;  %s7366_s1 = inlined_call_operand.hbm [shape: bf16[128,128], index: 1, kind: input, shape index: {}]   ;;  %s7367_s2 = inlined_call_operand.vmem [shape: f32[1,128], index: 2, kind: input, shape index: {}]   ;;  %s7368_s3 = inlined_call_operand.vmem [shape: f32[9,1,128], index: 3, kind: input, shape index: {}]   ;;  %s7369_s4 = inlined_call_operand.vmem [shape: f32[1,128], index: 4, kind: input, shape index: {}]   ;;  %s7370_s5 = inlined_call_operand.hbm [shape: bf16[128,128], index: 5, kind: input, shape index: {}]   ;;  %s7371_s6 = inlined_call_operand.vmem [shape: f32[1,128], index: 6, kind: input, shape index: {}]   ;;  %s7372_s7 = inlined_call_operand.hbm [shape: bf16[1024,128], index: 7, kind: output, shape index: {}]  }
   0x1   :  { %14 = vsyncpa [#allocation3 + $0x1], 0 }
   0x2   :  { %15 = vsyncpa [#allocation6], 0 }
   0x3   :  { %16 = vsyncpa [#allocation4], 0 }
   0x4   :  { %18 = vsyncpa [#allocation4 + $0x1], 0  ;;  %s4741_s24 = smov 0   ;;  %s4743_s25 = smov 0  }
   0x5   :  { %s4745_s26 = smov 0   ;;  %s4747_s27 = smov 0  }
   0x6 LB: > { %s4762_s28 = sadd.s32 4294967295, %s4691_s27   ;;  %s3746_s29 = sadd.s32 4294967294, %s4691_s27   ;;  %s4691_s27 = sphi %s4747_s27, %s7563_s27   ;;  %s4687_s26 = sphi %s4745_s26, %s7562_s26   ;;  %s4683_s25 = sphi %s4743_s25, %s7561_s25   ;;  %s4679_s24 = sphi %s4741_s24, %s7560_s24  }
   0x7   : > { %p44_p0 = scmp.ne.s32.totalorder %s4683_s25, %s4679_s24  ;;  %p7373_p1 = scmp.eq.s32.totalorder %s4762_s28, 0 }
   0x8   : > { %p200_p3 = scmp.eq.s32.totalorder %s3746_s29, 1  ;;  %p3747_p5 = scmp.ge.s32.totalorder %s4691_s27, 1 }
   0x9   : > { %p4771_p4 = por %p7373_p1, %p44_p0  ;;  %p207_p7 = scmp.lt.s32.totalorder %s4691_s27, 3 }
   0xa   : > { %p4776_p6 = por %p200_p3, %p44_p0  ;;  %s4693_s10 = smov [#allocation5]  }
   0xb   : > { %s7437_s30 = scalar_select %p4771_p4, 1, 0 }
   0xc   : > { %s7438_s8 = scalar_select %p4776_p6, 1, 0 }
   0xd   : > { %p4781_p8 = pnand %p3747_p5, %p207_p7  ;;  %s219_s11 = sshll.u32 %s4693_s10, 4  ;;  %s4785_s11 = int_to_ptr.vmem [resolvable:$true] %s219_s11 }
   0xe   : > { %s4694_s13 = smov [#allocation7]   ;;  %s4535_s17 = scalar_lea.hbm %s7366_s1, 1024 }
   0xf   : > { %p4397_p9 = pneg %p4781_p8  ;;  %s241_s14 = sshll.u32 %s4694_s13, 4  ;;  %s4796_s14 = int_to_ptr.vmem [resolvable:$true] %s241_s14 }
  0x10   : > { %p4536_p12 = scmp.ne.s32.totalorder %s7366_s1, %s4535_s17  ;;  %p4542_p5 = scmp.lt.u32.totalorder %s4535_s17, %s7366_s1 }
  0x11   : > { %p4792_p11 = pnand %p4397_p9, %p7373_p1 }
  0x13   : > { %p4537_p13 = pneg %p4792_p11 }
  0x15   : > { %p4538_p0 = pnand %p4537_p13, %p4536_p12 }
  0x17   : > { %p4539_p3 = pneg %p4538_p0 }
  0x19   : > { %p4544_p7 = pnand %p4542_p5, %p4539_p3 }
  0x1b   : > { %4547 = shalt.err (!%p4544_p7)
}
  0x1c   : > { %s4548_s22 = scalar_lea.vmem %s4785_s11, 1024  ;;  %p4556_p2 = scmp.lt.s32.totalorder %s4785_s11, %s4785_s11 }
  0x1d   : > { %p4549_p9 = scmp.ne.s32.totalorder %s4785_s11, %s4548_s22  ;;  %p4557_p12 = scmp.lt.s32.totalorder %s4548_s22, %s4548_s22 }
  0x1f   : > { %p4551_p10 = pnand %p4549_p9, %p4537_p13  ;;  %p4558_p0 = por %p4557_p12, %p4556_p2 }
  0x21   : > { %p4552_p1 = pneg %p4551_p10 }
  0x23   : > { %p4559_p6 = pnand %p4558_p0, %p4552_p1 }
  0x25   : > { %4562 = shalt.err (!%p4559_p6)
}
  0x26   : > { %s7374_s23 = smov 64   ;;  %s4696_s29 = smov 4  }
  0x27   : > { %4400 = dma.hbm_to_vmem [thread:$0]  (!%p4792_p11), %s7366_s1, 1024, %s4785_s11, [#allocation6], %s7374_s23, %s7374_s23, %s4696_s29  }
  0x28   : > { %s4563_s17 = scalar_lea.hbm %s7370_s5, 1024 }
  0x29   : > { %p4564_p1 = scmp.ne.s32.totalorder %s7370_s5, %s4563_s17  ;;  %p4570_p10 = scmp.lt.u32.totalorder %s4563_s17, %s7370_s5 }
  0x2b   : > { %p4566_p2 = pnand %p4564_p1, %p4537_p13 }
  0x2d   : > { %p4567_p6 = pneg %p4566_p2 }
  0x2f   : > { %p4572_p3 = pnand %p4570_p10, %p4567_p6 }
  0x31   : > { %4575 = shalt.err (!%p4572_p3)
}
  0x32   : > { %s4576_s11 = scalar_lea.vmem %s4796_s14, 1024  ;;  %p4584_p12 = scmp.lt.s32.totalorder %s4796_s14, %s4796_s14 }
  0x33   : > { %p4577_p5 = scmp.ne.s32.totalorder %s4796_s14, %s4576_s11  ;;  %p4585_p0 = scmp.lt.s32.totalorder %s4576_s11, %s4576_s11 }
  0x35   : > { %p4579_p7 = pnand %p4577_p5, %p4537_p13  ;;  %p4586_p1 = por %p4585_p0, %p4584_p12 }
  0x37   : > { %p4580_p9 = pneg %p4579_p7 }
  0x39   : > { %p4587_p2 = pnand %p4586_p1, %p4580_p9 }
  0x3b   : > { %4590 = shalt.err (!%p4587_p2)
}
  0x3c   : > { %4403 = dma.hbm_to_vmem [thread:$0]  (!%p4792_p11), %s7370_s5, 1024, %s4796_s14, [#allocation6], %s7374_s23, %s7374_s23, %s4696_s29  }
  0x3d   : > { %s4857_s12 = sadd.s32 1, %s4691_s27   ;;  %s31_s13 = sadd.s32 1, %s4687_s26 }
  0x3e   : > { %s28_s15 = ssub.s32 %s4691_s27, %s4857_s12  ;;  %p38_p13 = scmp.ne.s32.totalorder %s4687_s26, %s4683_s25 }
  0x3f   : > { %p29_p6 = scmp.eq.s32.totalorder %s28_s15, 0  ;;  %p39_p10 = scmp.eq.s32.totalorder %s4691_s27, 0 }
  0x40   : > { %p7441_p3 = scmp.eq.s32.totalorder %s4762_s28, 1  ;;  %p4414_p7 = scmp.lt.s32.totalorder %s4691_s27, 2 }
  0x41   : > { %s4873_s17 = scalar_select %p29_p6, %s4687_s26, %s31_s13  }
  0x42   : > { %p4867_p5 = por %p7441_p3, %p38_p13  ;;  %p40_p9 = por %p39_p10, %p38_p13 }
  0x43   : > { %s258_s18 = sand.u32 1, %s4687_s26   ;;  %s3888_s14 = sshll.u32 %s4691_s27, 12 }
  0x44   : > { %s7442_s16 = scalar_select %p4867_p5, 1, 0 }
  0x45   : > { %s3751_s19 = sshll.u32 %s258_s18, 8  ;;  %s4880_s11 = scalar_lea.hbm %s7365_s0, %s3888_s14 }
  0x46   : > { %s262_s22 = scalar_lea.vmem [#allocation2], %s3751_s19  ;;  %p4884_p11 = pnand %p4414_p7, %p40_p9 }
  0x47   : > { %s269_s10 = sshll.u32 %s262_s22, 4  ;;  %s4888_s15 = scalar_lea.sflag [#allocation3], %s258_s18  ;;  %s4882_s10 = int_to_ptr.vmem [resolvable:$true] %s269_s10 }
  0x48   : > { %s4591_s23 = scalar_lea.hbm %s4880_s11, 4096  ;;  %p4593_p0 = pneg %p4884_p11 }
  0x49   : > { %p4592_p12 = scmp.ne.s32.totalorder %s4880_s11, %s4591_s23  ;;  %s4596_s20 = scalar_lea.hbm %s7365_s0, 8192 }
  0x4a   : > { %p4597_p13 = scmp.lt.u32.totalorder %s4880_s11, %s7365_s0  ;;  %p4598_p6 = scmp.lt.u32.totalorder %s4596_s20, %s4591_s23 }
  0x4b   : > { %p4594_p1 = pnand %p4593_p0, %p4592_p12  ;;  %p4600_p3 = scmp.lt.u32.totalorder %s4591_s23, %s4880_s11 }
  0x4c   : > { %p4599_p10 = por %p4598_p6, %p4597_p13 }
  0x4d   : > { %p4595_p2 = pneg %p4594_p1 }
  0x4e   : > { %p4601_p7 = por %p4600_p3, %p4599_p10 }
  0x50   : > { %p4602_p9 = pnand %p4601_p7, %p4595_p2 }
  0x52   : > { %4605 = shalt.err (!%p4602_p9)
}
  0x53   : > { %s4606_s18 = scalar_lea.vmem %s4882_s10, 4096  ;;  %s4697_s19 = smov [#allocation2]  }
  0x54   : > { %p4607_p12 = scmp.ne.s32.totalorder %s4882_s10, %s4606_s18  ;;  %s4611_s14 = sshll.u32 %s4697_s19, 4  ;;  %s4612_s14 = int_to_ptr.vmem [resolvable:$false] %s4611_s14 }
  0x55   : > { %s4613_s21 = scalar_lea.vmem %s4612_s14, 8192  ;;  %p4614_p4 = scmp.lt.s32.totalorder %s4882_s10, %s4612_s14 }
  0x56   : > { %p4609_p1 = pnand %p4607_p12, %p4593_p0  ;;  %p4615_p13 = scmp.lt.s32.totalorder %s4613_s21, %s4606_s18 }
  0x58   : > { %p4610_p5 = pneg %p4609_p1  ;;  %p4616_p6 = por %p4615_p13, %p4614_p4 }
  0x5a   : > { %p4617_p10 = pnand %p4616_p6, %p4610_p5 }
  0x5c   : > { %4620 = shalt.err (!%p4617_p10)
}
  0x5d   : > { %s7444_s23 = smov 64   ;;  %281 = sbr.rel (%p4781_p8) target bundleno = 1004 (0x3ec), region = 48 }
  0x5e   : > { %4407 = dma.hbm_to_vmem [thread:$0]  (!%p4884_p11), %s4880_s11, 4096, %s4882_s10, %s4888_s15, %s7444_s23, %s7444_s23, %s4696_s29  }
  0x64   : > { %s4922_s20 = sand.u32 1, %s4683_s25   ;;  %p7445_p4 = scmp.ne.s32.totalorder %s7437_s30, 0 }
  0x65   : > { %s3755_s22 = sshll.u32 %s4922_s20, 8  ;;  %s284_s18 = scalar_lea.sflag [#allocation3], %s4922_s20 }
  0x66   : > { %s4928_s13 = scalar_lea.vmem [#allocation2], %s3755_s22 }
  0x67   : > { %4666 = dma.done.wait (%p7445_p4), %s284_s18, 4096  }
  0x68   : > { %4668 = vsyncadd (%p7445_p4), %s284_s18, 4294963200  ;;  %p7446_p5 = scmp.eq.s32.totalorder %s4762_s28, 0 }
  0x6a   : > { %4670 = dma.done.wait (%p7446_p5), [#allocation6], 2048   ;;  %p7447_p8 = pmov %p7446_p5 }
  0x6b   : > { %v4456_v0 = vld [vmem:[#allocation5] sm:$0xff]   ;;  %v4457_v1 = vld [vmem:[#allocation5 + $0x8] sm:$0xff]   ;;  %v4458_v2 = vld [vmem:[#allocation5 + $0x10] sm:$0xff]   ;;  %v1009_v44 = vlaneseq  ;;  %vm1824_vm0 = vcmask 1040384   ;;  %vm2542_vm1 = vcmask 1046528   ;;  %s7206_s29 = scalar_lea.vmem [#allocation8], %s3755_s22 }
  0x6c   : > { %4672 = vsyncadd (%p7447_p8), [#allocation6], 4294965248  ;;  %4225 = vmatprep.subr.bf16.mxu0 %v4456_v0  ;;  %v4459_v3 = vld [vmem:[#allocation5 + $0x18] sm:$0xff]   ;;  %v4464_v4 = vld [vmem:[%s4928_s13] sm:$0xff]   ;;  %s3953_s22 = sshll.u32 %s4762_s28, 12  ;;  %s3654_s11 = sshll.u32 %s7206_s29, 4  ;;  %s7319_s11 = int_to_ptr.vmem [resolvable:$true] %s3654_s11 }
  0x6d   : > { %4226 = vmatpush3.bf16.msra.mxu0 %v4456_v0  ;;  %4241 = vmatprep.mubr.bf16.mxu0 %v4464_v4  ;;  %v4460_v5 = vld [vmem:[#allocation5 + $0x20] sm:$0xff]   ;;  %v4461_v6 = vld [vmem:[#allocation5 + $0x28] sm:$0xff]   ;;  %v4462_v7 = vld [vmem:[#allocation5 + $0x30] sm:$0xff]   ;;  %v4980_v50 = vshrl.u32 %v1009_v44, 7  ;;  %s7317_s19 = scalar_lea.hbm %s7372_s7, %s3953_s22  ;;  %s3641_s28 = scalar_lea.sflag [#allocation4], %s4922_s20 }
  0x6e   : > { %4227 = vmatprep.subr.bf16.mxu0 %v4457_v1  ;;  %v4463_v8 = vld [vmem:[#allocation5 + $0x38] sm:$0xff]   ;;  %v4465_v9 = vld [vmem:[%s4928_s13 + $0x8] sm:$0xff]   ;;  %v4466_v10 = vld [vmem:[%s4928_s13 + $0x10] sm:$0xff]   ;;  %s4621_s14 = scalar_lea.vmem %s7319_s11, 4096  ;;  %p7557_p0 = scmp.ne.s32.totalorder %s7442_s16, 0 }
  0x6f   : > { %v4467_v11 = vld [vmem:[%s4928_s13 + $0x18] sm:$0xff]   ;;  %v4468_v12 = vld [vmem:[%s4928_s13 + $0x20] sm:$0xff]   ;;  %v4469_v13 = vld [vmem:[%s4928_s13 + $0x28] sm:$0xff]   ;;  %vm1756_vm3 = vcmp.ge.s32.totalorder %v4980_v50, 1  ;;  %p4622_p11 = scmp.ne.s32.totalorder %s7319_s11, %s4621_s14  ;;  %s4698_s21 = smov [#allocation8]  }
  0x70   : > { %v4470_v14 = vld [vmem:[%s4928_s13 + $0x30] sm:$0xff]   ;;  %v4471_v15 = vld [vmem:[%s4928_s13 + $0x38] sm:$0xff]   ;;  %v4472_v16 = vld [vmem:[%s4928_s13 + $0x40] sm:$0xff]   ;;  %s4625_s23 = sshll.u32 %s4698_s21, 4  ;;  %s4626_s23 = int_to_ptr.vmem [resolvable:$false] %s4625_s23 }
  0x71   : > { %4228 = vmatpush3.bf16.msra.mxu0 %v4457_v1  ;;  %v4473_v17 = vld [vmem:[%s4928_s13 + $0x48] sm:$0xff]   ;;  %v4474_v18 = vld [vmem:[%s4928_s13 + $0x50] sm:$0xff]   ;;  %v4475_v19 = vld [vmem:[%s4928_s13 + $0x58] sm:$0xff]   ;;  %p4623_p2 = pnand %p4622_p11, %p7557_p0  ;;  %s4627_s18 = scalar_lea.vmem %s4626_s23, 8192 }
  0x72   : > { %4229 = vmatprep.subr.bf16.mxu0 %v4458_v2  ;;  %v4476_v20 = vld [vmem:[%s4928_s13 + $0x60] sm:$0xff]   ;;  %v4477_v21 = vld [vmem:[%s4928_s13 + $0x68] sm:$0xff]   ;;  %v4478_v22 = vld [vmem:[%s4928_s13 + $0x70] sm:$0xff]   ;;  %p4628_p7 = scmp.lt.s32.totalorder %s7319_s11, %s4626_s23  ;;  %p4629_p9 = scmp.lt.s32.totalorder %s4627_s18, %s4621_s14 }
  0x73   : > { %v4479_v23 = vld [vmem:[%s4928_s13 + $0x78] sm:$0xff]   ;;  %v4480_v24 = vld [vmem:[%s4928_s13 + $0x80] sm:$0xff]   ;;  %v4481_v25 = vld [vmem:[%s4928_s13 + $0x88] sm:$0xff]   ;;  %p4624_p3 = pneg %p4623_p2 }
  0x74   : > { %v4482_v26 = vld [vmem:[%s4928_s13 + $0x90] sm:$0xff]   ;;  %v4483_v27 = vld [vmem:[%s4928_s13 + $0x98] sm:$0xff]   ;;  %v4484_v28 = vld [vmem:[%s4928_s13 + $0xa0] sm:$0xff]   ;;  %p4630_p12 = por %p4629_p9, %p4628_p7 }
  0x75   : > { %4230 = vmatpush3.bf16.msra.mxu0 %v4458_v2  ;;  %v4485_v29 = vld [vmem:[%s4928_s13 + $0xa8] sm:$0xff]   ;;  %v4486_v30 = vld [vmem:[%s4928_s13 + $0xb0] sm:$0xff]   ;;  %v4487_v31 = vld [vmem:[%s4928_s13 + $0xb8] sm:$0xff]  }
  0x76   : > { %4231 = vmatprep.subr.bf16.mxu0 %v4459_v3  ;;  %v4488_v32 = vld [vmem:[%s4928_s13 + $0xc0] sm:$0xff]   ;;  %v4489_v33 = vld [vmem:[%s4928_s13 + $0xc8] sm:$0xff]   ;;  %v4490_v34 = vld [vmem:[%s4928_s13 + $0xd0] sm:$0xff]   ;;  %p4631_p1 = pnand %p4630_p12, %p4624_p3 }
  0x77   : > { %v4491_v35 = vld [vmem:[%s4928_s13 + $0xd8] sm:$0xff]   ;;  %v4492_v36 = vld [vmem:[%s4928_s13 + $0xe0] sm:$0xff]   ;;  %v4493_v37 = vld [vmem:[%s4928_s13 + $0xe8] sm:$0xff]  }
  0x78   : > { %v4494_v38 = vld [vmem:[%s4928_s13 + $0xf0] sm:$0xff]   ;;  %v4495_v39 = vld [vmem:[%s4928_s13 + $0xf8] sm:$0xff]   ;;  %v4496_v40 = vld [vmem:[#allocation7] sm:$0xff]  }
  0x79   : > { %4232 = vmatpush3.bf16.msra.mxu0 %v4459_v3  ;;  %4305 = vmatprep.subr.bf16.mxu1 %v4496_v40  ;;  %v4497_v41 = vld [vmem:[#allocation7 + $0x8] sm:$0xff]   ;;  %v4498_v42 = vld [vmem:[#allocation7 + $0x10] sm:$0xff]   ;;  %v4499_v43 = vld [vmem:[#allocation7 + $0x18] sm:$0xff]  }
  0x7a   : > { %4233 = vmatprep.subr.bf16.mxu0 %v4460_v5  ;;  %4306 = vmatpush3.bf16.msra.mxu1 %v4496_v40  ;;  %v4973_v45 = vld [vmem:[%s7367_s2] ss:$0 sm:$0xff]  ;;  %v4501_v47 = vld [vmem:[#allocation7 + $0x28] sm:$0xff]   ;;  %v4985_v51 = vld [vmem:[%s7368_s3 + $0x1] ss:$0 sm:$0xff] }
  0x7b   : > { %4307 = vmatprep.subr.bf16.mxu1 %v4497_v41  ;;  %v4500_v46 = vld [vmem:[#allocation7 + $0x20] sm:$0xff]   ;;  %v4502_v2 = vld [vmem:[#allocation7 + $0x30] sm:$0xff]   ;;  %v5026_v3 = vmul.f32 0.0, %v4985_v51 }
  0x7c   : > { %v4978_v48 = vld [vmem:[%s7368_s3] ss:$0 sm:$0xff]  ;;  %v4990_v52 = vld [vmem:[%s7368_s3 + $0x2] ss:$0 sm:$0xff]  ;;  %v4996_v55 = vld [vmem:[%s7368_s3 + $0x3] ss:$0 sm:$0xff] }
  0x7d   : > { %4234 = vmatpush3.bf16.msra.mxu0 %v4460_v5  ;;  %v5001_v56 = vld [vmem:[%s7368_s3 + $0x4] ss:$0 sm:$0xff]  ;;  %v5006_v57 = vld [vmem:[%s7368_s3 + $0x5] ss:$0 sm:$0xff]  ;;  %v5012_v60 = vld [vmem:[%s7368_s3 + $0x6] ss:$0 sm:$0xff] }
  0x7e   : > { %4235 = vmatprep.subr.bf16.mxu0 %v4461_v6  ;;  %4308 = vmatpush3.bf16.msra.mxu1 %v4497_v41  ;;  %v5017_v61 = vld [vmem:[%s7368_s3 + $0x7] ss:$0 sm:$0xff]  ;;  %v5020_v62 = vmul.f32 0.0, %v4978_v48  ;;  %7449 = vst [vmem:[#allocation13_spill] sm:$0xff] %v5026_v3  ;;  %v5029_v4 = vmul.f32 0.0, %v4990_v52 }
  0x7f   : > { %4309 = vmatprep.subr.bf16.mxu1 %v4498_v42 }
  0x80   : > { %7448 = vst [vmem:[#allocation12_spill] sm:$0xff] %v5020_v62  ;;  %7450 = vst [vmem:[#allocation14_spill] sm:$0xff] %v5029_v4 }
  0x81   : > { %4236 = vmatpush3.bf16.msra.mxu0 %v4461_v6 }
  0x82   : > { %4237 = vmatprep.subr.bf16.mxu0 %v4462_v7  ;;  %4310 = vmatpush3.bf16.msra.mxu1 %v4498_v42 }
  0x83   : > { %4311 = vmatprep.subr.bf16.mxu1 %v4499_v43 }
  0x85   : > { %4238 = vmatpush3.bf16.msra.mxu0 %v4462_v7  ;;  %v5035_v7 = vadd.s32 8, %v4980_v50 }
  0x86   : > { %4239 = vmatprep.subr.bf16.mxu0 %v4463_v8  ;;  %4312 = vmatpush3.bf16.msra.mxu1 %v4499_v43 }
  0x87   : > { %4313 = vmatprep.subr.bf16.mxu1 %v4500_v46  ;;  %vm2477_vm2 = vcmp.le.s32.totalorder %v5035_v7, 14 }
  0x89   : > { %4240 = vmatpush3.bf16.msra.mxu0 %v4463_v8  ;;  %v5040_v8 = vld [vmem:[%s7368_s3 + $0x8] ss:$0 sm:$0xff] }
  0x8a   : > { %4314 = vmatpush3.bf16.msra.mxu1 %v4500_v46 }
  0x8b   : > { %4315 = vmatprep.subr.bf16.mxu1 %v4501_v47 }
  0x8c   : > { %4242 = vmatmul.mubr.bf16.vlgmr.msra.gmra.mrb[0].mxu0 %v4465_v9  ;;  %v5043_v9 = vmul.f32 0.0, %v5012_v60 }
  0x8d   : > { %4245 = vmatprep.mubr.bf16.mxu0 %v4466_v10 }
  0x8e   : > { %4316 = vmatpush3.bf16.msra.mxu1 %v4501_v47 }
  0x8f   : > { %4317 = vmatprep.subr.bf16.mxu1 %v4502_v2 }
  0x92   : > { %4318 = vmatpush3.bf16.msra.mxu1 %v4502_v2 }
  0x94   : > { %4246 = vmatmul.mubr.bf16.gmra.mrb[4].mxu0 %v4467_v11 }
  0x95   : > { %4249 = vmatprep.mubr.bf16.mxu0 %v4468_v12 }
  0x9c   : > { %4250 = vmatmul.mubr.bf16.gmra.mrb[8].mxu0 %v4469_v13 }
  0x9d   : > { %4253 = vmatprep.mubr.bf16.mxu0 %v4470_v14 }
  0xa4   : > { %4254 = vmatmul.mubr.bf16.gmra.mrb[12].mxu0 %v4471_v15 }
  0xa5   : > { %4257 = vmatprep.mubr.bf16.mxu0 %v4472_v16 }
  0xac   : > { %4258 = vmatmul.mubr.bf16.gmra.mrb[16].mxu0 %v4473_v17 }
  0xad   : > { %4261 = vmatprep.mubr.bf16.mxu0 %v4474_v18  ;;  %v4503_v18 = vld [vmem:[#allocation7 + $0x38] sm:$0xff]  }
  0xae   : > { %4319 = vmatprep.subr.bf16.mxu1 %v4503_v18 }
  0xaf   : > { %4320 = vmatpush3.bf16.msra.mxu1 %v4503_v18 }
  0xb4   : > { %4262 = vmatmul.mubr.bf16.gmra.mrb[20].mxu0 %v4475_v19 }
  0xb5   : > { %4265 = vmatprep.mubr.bf16.mxu0 %v4476_v20 }
  0xbc   : > { %4266 = vmatmul.mubr.bf16.gmra.mrb[24].mxu0 %v4477_v21 }
  0xbd   : > { %4269 = vmatprep.mubr.bf16.mxu0 %v4478_v22 }
  0xc4   : > { %4270 = vmatmul.mubr.bf16.gmra.mrb[28].mxu0 %v4479_v23 }
  0xc5   : > { %4273 = vmatprep.mubr.bf16.mxu0 %v4480_v24 }
  0xcc   : > { %4274 = vmatmul.mubr.bf16.gmra.mrb[32].mxu0 %v4481_v25 }
  0xcd   : > { %4277 = vmatprep.mubr.bf16.mxu0 %v4482_v26 }
  0xd4   : > { %4278 = vmatmul.mubr.bf16.gmra.mrb[36].mxu0 %v4483_v27 }
  0xd5   : > { %4281 = vmatprep.mubr.bf16.mxu0 %v4484_v28 }
  0xdc   : > { %4282 = vmatmul.mubr.bf16.gmra.mrb[40].mxu0 %v4485_v29 }
  0xdd   : > { %4285 = vmatprep.mubr.bf16.mxu0 %v4486_v30 }
  0xe4   : > { %4286 = vmatmul.mubr.bf16.gmra.mrb[44].mxu0 %v4487_v31 }
  0xe5   : > { %4289 = vmatprep.mubr.bf16.mxu0 %v4488_v32 }
  0xec   : > { %4290 = vmatmul.mubr.bf16.gmra.mrb[48].mxu0 %v4489_v33 }
  0xed   : > { %4293 = vmatprep.mubr.bf16.mxu0 %v4490_v34 }
  0xf4   : > { %4294 = vmatmul.mubr.bf16.gmra.mrb[52].mxu0 %v4491_v35 }
  0xf5   : > { %4297 = vmatprep.mubr.bf16.mxu0 %v4492_v36 }
  0xfc   : > { %4298 = vmatmul.mubr.bf16.gmra.mrb[56].mxu0 %v4493_v37 }
  0xfd   : > { %4301 = vmatprep.mubr.bf16.mxu0 %v4494_v38  ;;  %v5087_v38 = vld [vmem:[%s7369_s4] ss:$0 sm:$0xff] }
 0x104   : > { %4302 = vmatmul.mubr.bf16.gmra.mrb[60].mxu0 %v4495_v39 }
 0x15f   : > { %v4243_v49 = vpop.f32.mrb[0].mxu0 }
 0x160   : > { %v699_v53 = vadd.f32 %v4243_v49, %v4973_v45  ;;  %v690_v54 = vpop.f32.mrb[1].mxu0 }
 0x161   : > { %v691_v58 = vadd.f32 %v4973_v45, %v690_v54  ;;  %v4244_v59 = vpop.f32.mrb[2].mxu0 }
 0x162   : > { %v5022_v63 = vmax.f32 %v699_v53, 0.0  ;;  %v702_v0 = vadd.f32 %v4244_v59, %v4973_v45  ;;  %v693_v1 = vpop.f32.mrb[3].mxu0 }
 0x163   : > { %v5031_v5 = vmax.f32 %v691_v58, 0.0  ;;  %v694_v6 = vadd.f32 %v4973_v45, %v693_v1 }
 0x164   : > { %v5045_v10 = vmax.f32 %v702_v0, 0.0  ;;  %v1228_v11 = vmul.f32 %v5012_v60, %v5022_v63  ;;  %v1560_v12 = vmul.f32 %v5017_v61, %v5022_v63  ;;  %v2219_v13 = vmul.f32 %v5006_v57, %v5022_v63 }
 0x165   : > { %v5053_v14 = vmax.f32 %v694_v6, 0.0  ;;  %v1094_v15 = vmul.f32 %v4996_v55, %v5031_v5  ;;  %v1426_v16 = vmul.f32 %v5001_v56, %v5031_v5  ;;  %v2151_v17 = vmul.f32 %v4990_v52, %v5031_v5 }
 0x166   : > { %v1229_v19 = vmul.f32 %v5012_v60, %v5045_v10  ;;  %v1561_v20 = vmul.f32 %v5017_v61, %v5045_v10  ;;  %v2217_v21 = vmul.f32 %v5006_v57, %v5031_v5  ;;  %v2351_v22 = vmul.f32 %v5040_v8, %v5022_v63 }
 0x167   : > { %v4247_v23 = vpop.f32.mrb[4].mxu0  ;;  %v1095_v24 = vmul.f32 %v4996_v55, %v5053_v14  ;;  %v1158_v25 = vadd.f32 %v1094_v15, %v5020_v62  ;;  %v1427_v26 = vmul.f32 %v5001_v56, %v5053_v14  ;;  %v1490_v27 = vadd.f32 %v1426_v16, %v5026_v3 }
 0x168   : > { %v715_v28 = vadd.f32 %v4247_v23, %v4973_v45  ;;  %v706_v29 = vpop.f32.mrb[5].mxu0  ;;  %v2218_v30 = vmul.f32 %v5006_v57, %v5053_v14  ;;  %v2281_v31 = vadd.f32 %v2217_v21, %v5029_v4  ;;  %v2283_v32 = vadd.f32 %v2219_v13, %v2151_v17 }
 0x169   : > { %v707_v33 = vadd.f32 %v4973_v45, %v706_v29  ;;  %v4248_v34 = vpop.f32.mrb[6].mxu0  ;;  %v1159_v35 = vadd.f32 %v1095_v24, %v5020_v62  ;;  %v5081_v36 = vadd.f32 %v1228_v11, %v1158_v25  ;;  %v1491_v37 = vadd.f32 %v1427_v26, %v5026_v3 }
 0x16a   : > { %v5090_v39 = vmax.f32 %v715_v28, 0.0  ;;  %v718_v40 = vadd.f32 %v4248_v34, %v4973_v45  ;;  %v709_v41 = vpop.f32.mrb[7].mxu0  ;;  %v1621_v42 = vadd.f32 %v1560_v12, %v1490_v27  ;;  %v2282_v43 = vadd.f32 %v2218_v30, %v5029_v4 }
 0x16b   : > { %v5094_v44 = vmax.f32 %v707_v33, 0.0  ;;  %v710_v46 = vadd.f32 %v4973_v45, %v709_v41  ;;  %v5097_v47 = vadd.f32 %v1229_v19, %v1159_v35  ;;  %v1622_v49 = vadd.f32 %v1561_v20, %v1491_v37 }
 0x16c   : > { %v5099_v53 = vmax.f32 %v718_v40, 0.0  ;;  %v5102_v54 = vadd.f32 %v5087_v38, %v1621_v42  ;;  %v7378_v58 = vrot.slane %v5081_v36, 7  ;;  %v2352_v59 = vmul.f32 %v5040_v8, %v5045_v10 }
 0x16d   : > { %v5107_v0 = vmax.f32 %v710_v46, 0.0  ;;  %v1693_v1 = vadd.f32 %v5087_v38, %v1622_v49  ;;  %v1826_v2 = vrot.slane %v5097_v47, 7  ;;  %v2353_v6 = vmul.f32 %v5040_v8, %v5094_v44 }
 0x16e   : > { %v5113_v11 = vadd.f32 %v2351_v22, %v2281_v31  ;;  %v2413_v12 = vadd.f32 %v2352_v59, %v2282_v43  ;;  %v1028_v13 = vmul.f32 %v4978_v48, %v5031_v5  ;;  %v1029_v15 = vmul.f32 %v4978_v48, %v5053_v14 }
 0x16f   : > { %v4251_v16 = vpop.f32.mrb[8].mxu0  ;;  %v1827_v17 = vsel %vm1824_vm0, %v7378_v58, %v1826_v2  ;;  %v5122_v18 = vadd.f32 %v2353_v6, %v2283_v32  ;;  %v1096_v19 = vmul.f32 %v4996_v55, %v5022_v63  ;;  %v1097_v20 = vmul.f32 %v4996_v55, %v5045_v10 }
 0x170   : > { %7451 = vst [vmem:[#allocation15_spill] sm:$0xff] %v5113_v11  ;;  %v731_v21 = vadd.f32 %v4251_v16, %v4973_v45  ;;  %v722_v22 = vpop.f32.mrb[9].mxu0  ;;  %v2081_v23 = vadd.f32 %v1827_v17, %v1693_v1  ;;  %v7377_v24 = vrot.slane %v5113_v11, 1  ;;  %v2544_v25 = vrot.slane %v2413_v12, 1 }
 0x171   : > { %v723_v26 = vadd.f32 %v4973_v45, %v722_v22  ;;  %v4252_v27 = vpop.f32.mrb[10].mxu0  ;;  %v2546_v28 = vrot.slane %v5122_v18, 1  ;;  %v1160_v29 = vadd.f32 %v1096_v19, %v1028_v13  ;;  %v1161_v30 = vadd.f32 %v1097_v20, %v1029_v15 }
 0x172   : > { %v5133_v31 = vmax.f32 %v731_v21, 0.0  ;;  %v734_v32 = vadd.f32 %v4252_v27, %v4973_v45  ;;  %v725_v33 = vpop.f32.mrb[11].mxu0  ;;  %v5139_v34 = vsel %vm2542_vm1, %v7377_v24, %v2544_v25  ;;  %v1230_v35 = vmul.f32 %v5012_v60, %v5094_v44 }
 0x173   : > { %v5143_v37 = vmax.f32 %v723_v26, 0.0  ;;  %v726_v40 = vadd.f32 %v4973_v45, %v725_v33  ;;  %v2547_v41 = vsel %vm2542_vm1, %v2544_v25, %v2546_v28  ;;  %v1231_v42 = vmul.f32 %v5012_v60, %v5107_v0 }
 0x174   : > { %v5151_v43 = vmax.f32 %v734_v32, 0.0  ;;  %v2737_v46 = vsel %vm2477_vm2, %v2547_v41, 0.0  ;;  %v1291_v47 = vadd.f32 %v1230_v35, %v1160_v29  ;;  %v1360_v49 = vmul.f32 %v4985_v51, %v5031_v5 }
 0x175   : > { %v5157_v59 = vmax.f32 %v726_v40, 0.0  ;;  %v5159_v1 = vadd.f32 %v2737_v46, %v2081_v23  ;;  %v5161_v6 = vadd.f32 %v1231_v42, %v1161_v30  ;;  %v1361_v12 = vmul.f32 %v4985_v51, %v5053_v14 }
 0x176   : > { %v1428_v13 = vmul.f32 %v5001_v56, %v5022_v63  ;;  %v1429_v15 = vmul.f32 %v5001_v56, %v5045_v10  ;;  %v1562_v16 = vmul.f32 %v5017_v61, %v5094_v44  ;;  %v1563_v5 = vmul.f32 %v5017_v61, %v5107_v0 }
 0x177   : > { %v4255_v17 = vpop.f32.mrb[12].mxu0  ;;  %v1828_v19 = vrot.slane %v1291_v47, 7  ;;  %v1830_v20 = vrot.slane %v5161_v6, 7  ;;  %v2152_v21 = vmul.f32 %v4990_v52, %v5053_v14  ;;  %v2153_v22 = vmul.f32 %v4990_v52, %v5022_v63 }
 0x178   : > { %v747_v23 = vadd.f32 %v4255_v17, %v4973_v45  ;;  %v738_v25 = vpop.f32.mrb[13].mxu0  ;;  %v1492_v26 = vadd.f32 %v1428_v13, %v1360_v49  ;;  %v1493_v27 = vadd.f32 %v1429_v15, %v1361_v12  ;;  %v2220_v29 = vmul.f32 %v5006_v57, %v5045_v10 }
 0x179   : > { %v739_v30 = vadd.f32 %v4973_v45, %v738_v25  ;;  %v4256_v32 = vpop.f32.mrb[14].mxu0  ;;  %v1829_v33 = vsel %vm1824_vm0, %v1826_v2, %v1828_v19  ;;  %v1831_v14 = vsel %vm1824_vm0, %v1828_v19, %v1830_v20  ;;  %v2221_v35 = vmul.f32 %v5006_v57, %v5094_v44 }
 0x17a   : > { %v5188_v40 = vmax.f32 %v747_v23, 0.0  ;;  %v750_v41 = vadd.f32 %v4256_v32, %v4973_v45  ;;  %v741_v42 = vpop.f32.mrb[15].mxu0  ;;  %v1623_v46 = vadd.f32 %v1562_v16, %v1492_v26  ;;  %v1624_v47 = vadd.f32 %v1563_v5, %v1493_v27 }
 0x17b   : > { %v5191_v49 = vmax.f32 %v739_v30, 0.0  ;;  %v742_v12 = vadd.f32 %v4973_v45, %v741_v42  ;;  %v2018_v2 = vsel %vm1756_vm3, %v1829_v33, 0.0  ;;  %v2284_v13 = vadd.f32 %v2220_v29, %v2152_v21 }
 0x17c   : > { %v5196_v15 = vmax.f32 %v750_v41, 0.0  ;;  %v1694_v17 = vadd.f32 %v5087_v38, %v1623_v46  ;;  %v1695_v19 = vadd.f32 %v5087_v38, %v1624_v47  ;;  %v2285_v23 = vadd.f32 %v2221_v35, %v2153_v22 }
 0x17d   : > { %v5200_v25 = vmax.f32 %v742_v12, 0.0  ;;  %v2354_v16 = vmul.f32 %v5040_v8, %v5107_v0  ;;  %v2355_v5 = vmul.f32 %v5040_v8, %v5090_v39  ;;  %v1030_v26 = vmul.f32 %v4978_v48, %v5022_v63 }
 0x17e   : > { %v2082_v27 = vadd.f32 %v2018_v2, %v1694_v17  ;;  %v2083_v21 = vadd.f32 %v1831_v14, %v1695_v19  ;;  %v1031_v29 = vmul.f32 %v4978_v48, %v5045_v10  ;;  %v1098_v30 = vmul.f32 %v4996_v55, %v5094_v44 }
 0x17f   : > { %v4259_v22 = vpop.f32.mrb[16].mxu0  ;;  %v2415_v32 = vadd.f32 %v2354_v16, %v2284_v13  ;;  %v5212_v33 = vadd.f32 %v2355_v5, %v2285_v23  ;;  %v1099_v35 = vmul.f32 %v4996_v55, %v5107_v0  ;;  %v1232_v41 = vmul.f32 %v5012_v60, %v5090_v39 }
 0x180   : > { %v763_v42 = vadd.f32 %v4259_v22, %v4973_v45  ;;  %v754_v46 = vpop.f32.mrb[17].mxu0  ;;  %v1162_v14 = vadd.f32 %v1098_v30, %v1030_v26  ;;  %v1233_v47 = vmul.f32 %v5012_v60, %v5099_v53  ;;  %v1362_v12 = vmul.f32 %v4985_v51, %v5022_v63 }
 0x181   : > { %v755_v2 = vadd.f32 %v4973_v45, %v754_v46  ;;  %v4260_v13 = vpop.f32.mrb[18].mxu0  ;;  %v2548_v17 = vrot.slane %v2415_v32, 1  ;;  %v7380_v19 = vrot.slane %v5212_v33, 1  ;;  %v1163_v23 = vadd.f32 %v1099_v35, %v1031_v29 }
 0x182   : > { %v5225_v16 = vmax.f32 %v763_v42, 0.0  ;;  %v766_v5 = vadd.f32 %v4260_v13, %v4973_v45  ;;  %v757_v22 = vpop.f32.mrb[19].mxu0  ;;  %v1293_v24 = vadd.f32 %v1232_v41, %v1162_v14  ;;  %v1363_v26 = vmul.f32 %v4985_v51, %v5045_v10 }
 0x183   : > { %v5230_v30 = vmax.f32 %v755_v2, 0.0  ;;  %v758_v63 = vadd.f32 %v4973_v45, %v757_v22  ;;  %v2549_v32 = vsel %vm2542_vm1, %v2546_v28, %v2548_v17  ;;  %v2551_v29 = vsel %vm2542_vm1, %v2548_v17, %v7380_v19 }
 0x184   : > { %v5239_v35 = vmax.f32 %v766_v5, 0.0  ;;  %v2739_v41 = vsel %vm2477_vm2, %v2551_v29, 0.0  ;;  %v5243_v42 = vadd.f32 %v2549_v32, %v2082_v27  ;;  %v5245_v46 = vadd.f32 %v1233_v47, %v1163_v23 }
 0x185   : > { %v5247_v14 = vmax.f32 %v758_v63, 0.0  ;;  %v5249_v2 = vadd.f32 %v2739_v41, %v2083_v21  ;;  %v1430_v18 = vmul.f32 %v5001_v56, %v5094_v44  ;;  %v1431_v28 = vmul.f32 %v5001_v56, %v5107_v0 }
 0x186   : > { %v1564_v13 = vmul.f32 %v5017_v61, %v5090_v39  ;;  %v1565_v17 = vmul.f32 %v5017_v61, %v5099_v53  ;;  %v1832_v27 = vrot.slane %v1293_v24, 7  ;;  %v7379_v47 = vrot.slane %v5245_v46, 7 }
 0x187   : > { %v4263_v23 = vpop.f32.mrb[20].mxu0  ;;  %v1494_v5 = vadd.f32 %v1430_v18, %v1362_v12  ;;  %v1495_v22 = vadd.f32 %v1431_v28, %v1363_v26  ;;  %v2154_v63 = vmul.f32 %v4990_v52, %v5045_v10  ;;  %v2155_v58 = vmul.f32 %v4990_v52, %v5094_v44 }
 0x188   : > { %v779_v32 = vadd.f32 %v4263_v23, %v4973_v45  ;;  %v770_v29 = vpop.f32.mrb[21].mxu0  ;;  %v1833_v41 = vsel %vm1824_vm0, %v1830_v20, %v1832_v27  ;;  %v1835_v24 = vsel %vm1824_vm0, %v1832_v27, %v7379_v47  ;;  %v2222_v21 = vmul.f32 %v5006_v57, %v5107_v0 }
 0x189   : > { %v771_v12 = vadd.f32 %v4973_v45, %v770_v29  ;;  %v4264_v26 = vpop.f32.mrb[22].mxu0  ;;  %v1625_v18 = vadd.f32 %v1564_v13, %v1494_v5  ;;  %v1626_v28 = vadd.f32 %v1565_v17, %v1495_v22  ;;  %v2020_v10 = vsel %vm1756_vm3, %v1833_v41, 0.0 }
 0x18a   : > { %v5276_v23 = vmax.f32 %v779_v32, 0.0  ;;  %v782_v6 = vadd.f32 %v4264_v26, %v4973_v45  ;;  %v773_v20 = vpop.f32.mrb[23].mxu0  ;;  %v2223_v27 = vmul.f32 %v5006_v57, %v5090_v39  ;;  %v2286_v22 = vadd.f32 %v2222_v21, %v2154_v63 }
 0x18b   : > { %v5283_v47 = vmax.f32 %v771_v12, 0.0  ;;  %v774_v29 = vadd.f32 %v4973_v45, %v773_v20  ;;  %v1696_v13 = vadd.f32 %v5087_v38, %v1625_v18  ;;  %v1697_v17 = vadd.f32 %v5087_v38, %v1626_v28 }
 0x18c   : > { %7452 = vst [vmem:[#allocation16_spill] sm:$0xff] %v5276_v23  ;;  %v5288_v5 = vmax.f32 %v782_v6, 0.0  ;;  %v2287_v32 = vadd.f32 %v2223_v27, %v2155_v58  ;;  %v2356_v41 = vmul.f32 %v5040_v8, %v5099_v53  ;;  %v2357_v12 = vmul.f32 %v5040_v8, %v5143_v37 }
 0x18d   : > { %v5292_v26 = vmax.f32 %v774_v29, 0.0  ;;  %v2084_v19 = vadd.f32 %v2020_v10, %v1696_v13  ;;  %v2085_v11 = vadd.f32 %v1835_v24, %v1697_v17  ;;  %v1032_v18 = vmul.f32 %v4978_v48, %v5094_v44 }
 0x18e   : > { %7453 = vst [vmem:[#allocation17_spill] sm:$0xff] %v5288_v5  ;;  %v2417_v3 = vadd.f32 %v2356_v41, %v2286_v22  ;;  %v1033_v28 = vmul.f32 %v4978_v48, %v5107_v0  ;;  %v1100_v58 = vmul.f32 %v4996_v55, %v5090_v39  ;;  %v5302_v63 = vadd.f32 %v2357_v12, %v2287_v32 }
 0x18f   : > { %v4267_v21 = vpop.f32.mrb[24].mxu0  ;;  %v1101_v10 = vmul.f32 %v4996_v55, %v5099_v53  ;;  %v1234_v24 = vmul.f32 %v5012_v60, %v5143_v37  ;;  %v1235_v6 = vmul.f32 %v5012_v60, %v5157_v59  ;;  %v1364_v17 = vmul.f32 %v4985_v51, %v5094_v44 }
 0x190   : > { %v795_v20 = vadd.f32 %v4267_v21, %v4973_v45  ;;  %v786_v27 = vpop.f32.mrb[25].mxu0  ;;  %v2552_v29 = vrot.slane %v2417_v3, 1  ;;  %v1164_v13 = vadd.f32 %v1100_v58, %v1032_v18  ;;  %v7390_v41 = vrot.slane %v5302_v63, 1 }
 0x191   : > { %v787_v22 = vadd.f32 %v4973_v45, %v786_v27  ;;  %v4268_v32 = vpop.f32.mrb[26].mxu0  ;;  %v1165_v12 = vadd.f32 %v1101_v10, %v1033_v28  ;;  %v1365_v62 = vmul.f32 %v4985_v51, %v5107_v0  ;;  %v7455_v3 = vrot.slane %v5212_v33, 1 }
 0x192   : > { %v5317_v4 = vmax.f32 %v795_v20, 0.0  ;;  %v798_v5 = vadd.f32 %v4268_v32, %v4973_v45  ;;  %v789_v21 = vpop.f32.mrb[27].mxu0  ;;  %v1295_v58 = vadd.f32 %v1234_v24, %v1164_v13  ;;  %v2555_v28 = vsel %vm2542_vm1, %v2552_v29, %v7390_v41 }
 0x193   : > { %v2553_v18 = vsel %vm2542_vm1, %v7455_v3, %v2552_v29  ;;  %v5323_v44 = vmax.f32 %v787_v22, 0.0  ;;  %v790_v27 = vadd.f32 %v4973_v45, %v789_v21  ;;  %v2741_v32 = vsel %vm2477_vm2, %v2555_v28, 0.0 }
 0x194   : > { %7454 = vst [vmem:[#allocation18_spill] sm:$0xff] %v5317_v4  ;;  %v5329_v10 = vadd.f32 %v2553_v18, %v2084_v19  ;;  %v5331_v20 = vmax.f32 %v798_v5, 0.0  ;;  %v5335_v4 = vadd.f32 %v1235_v6, %v1165_v12  ;;  %v1432_v33 = vmul.f32 %v5001_v56, %v5090_v39 }
 0x195   : > { %7456 = vst [vmem:[#allocation19_spill] sm:$0xff] %v5323_v44  ;;  %v5339_v24 = vmax.f32 %v790_v27, 0.0  ;;  %v5341_v13 = vadd.f32 %v2741_v32, %v2085_v11  ;;  %v1433_v22 = vmul.f32 %v5001_v56, %v5099_v53  ;;  %v1566_v19 = vmul.f32 %v5017_v61, %v5143_v37 }
 0x196   : > { %7457 = vst [vmem:[#allocation20_spill] sm:$0xff] %v5331_v20  ;;  %v1496_v5 = vadd.f32 %v1432_v33, %v1364_v17  ;;  %v1567_v29 = vmul.f32 %v5017_v61, %v5157_v59  ;;  %v1836_v21 = vrot.slane %v1295_v58, 7  ;;  %v7392_v6 = vrot.slane %v5335_v4, 7 }
 0x197   : > { %7458 = vst [vmem:[#allocation21_spill] sm:$0xff] %v5339_v24  ;;  %v4271_v12 = vpop.f32.mrb[28].mxu0  ;;  %v1497_v18 = vadd.f32 %v1433_v22, %v1365_v62  ;;  %v2156_v11 = vmul.f32 %v4990_v52, %v5107_v0  ;;  %v2157_v27 = vmul.f32 %v4990_v52, %v5090_v39  ;;  %v7459_v33 = vrot.slane %v5245_v46, 7 }
 0x198   : > { %v811_v28 = vadd.f32 %v4271_v12, %v4973_v45  ;;  %v802_v17 = vpop.f32.mrb[29].mxu0  ;;  %v1627_v32 = vadd.f32 %v1566_v19, %v1496_v5  ;;  %v1839_v41 = vsel %vm1824_vm0, %v1836_v21, %v7392_v6  ;;  %v2224_v12 = vmul.f32 %v5006_v57, %v5099_v53 }
 0x199   : > { %v1837_v58 = vsel %vm1824_vm0, %v7459_v33, %v1836_v21  ;;  %v803_v62 = vadd.f32 %v4973_v45, %v802_v17  ;;  %v4272_v22 = vpop.f32.mrb[30].mxu0  ;;  %v1628_v3 = vadd.f32 %v1567_v29, %v1497_v18  ;;  %v2225_v21 = vmul.f32 %v5006_v57, %v5143_v37 }
 0x19a   : > { %v2022_v0 = vsel %vm1756_vm3, %v1837_v58, 0.0  ;;  %v5368_v20 = vmax.f32 %v811_v28, 0.0  ;;  %v814_v46 = vadd.f32 %v4272_v22, %v4973_v45  ;;  %v805_v19 = vpop.f32.mrb[31].mxu0  ;;  %v1698_v5 = vadd.f32 %v5087_v38, %v1627_v32 }
 0x19b   : > { %v5374_v33 = vmax.f32 %v803_v62, 0.0  ;;  %v806_v29 = vadd.f32 %v4973_v45, %v805_v19  ;;  %v1699_v18 = vadd.f32 %v5087_v38, %v1628_v3  ;;  %v2288_v17 = vadd.f32 %v2224_v12, %v2156_v11 }
 0x19c   : > { %7460 = vst [vmem:[#allocation22_spill] sm:$0xff] %v5368_v20  ;;  %v5378_v58 = vmax.f32 %v814_v46, 0.0  ;;  %v2086_v6 = vadd.f32 %v2022_v0, %v1698_v5  ;;  %v2289_v28 = vadd.f32 %v2225_v21, %v2157_v27  ;;  %v2358_v22 = vmul.f32 %v5040_v8, %v5157_v59 }
 0x19d   : > { %7461 = vst [vmem:[#allocation23_spill] sm:$0xff] %v5374_v33  ;;  %v5382_v20 = vmax.f32 %v806_v29, 0.0  ;;  %v2087_v32 = vadd.f32 %v1839_v41, %v1699_v18  ;;  %v2359_v24 = vmul.f32 %v5040_v8, %v5133_v31  ;;  %v1034_v62 = vmul.f32 %v4978_v48, %v5090_v39 }
 0x19e   : > { %7462 = vst [vmem:[#allocation24_spill] sm:$0xff] %v5378_v58  ;;  %v2419_v19 = vadd.f32 %v2358_v22, %v2288_v17  ;;  %v1035_v3 = vmul.f32 %v4978_v48, %v5099_v53  ;;  %v1102_v11 = vmul.f32 %v4996_v55, %v5143_v37  ;;  %v1103_v27 = vmul.f32 %v4996_v55, %v5157_v59 }
 0x19f   : > { %7463 = vst [vmem:[#allocation25_spill] sm:$0xff] %v5382_v20  ;;  %v4275_v0 = vpop.f32.mrb[32].mxu0  ;;  %v5394_v12 = vadd.f32 %v2359_v24, %v2289_v28  ;;  %v1236_v41 = vmul.f32 %v5012_v60, %v5133_v31  ;;  %v1237_v46 = vmul.f32 %v5012_v60, %v5151_v43  ;;  %v1366_v5 = vmul.f32 %v4985_v51, %v5090_v39 }
 0x1a0   : > { %v827_v21 = vadd.f32 %v4275_v0, %v4973_v45  ;;  %v818_v29 = vpop.f32.mrb[33].mxu0  ;;  %v2556_v18 = vrot.slane %v2419_v19, 1  ;;  %v1166_v17 = vadd.f32 %v1102_v11, %v1034_v62  ;;  %v1167_v22 = vadd.f32 %v1103_v27, %v1035_v3 }
 0x1a1   : > { %v819_v58 = vadd.f32 %v4973_v45, %v818_v29  ;;  %v4276_v20 = vpop.f32.mrb[34].mxu0  ;;  %v7402_v24 = vrot.slane %v5394_v12, 1  ;;  %v1367_v28 = vmul.f32 %v4985_v51, %v5099_v53  ;;  %v1434_v33 = vmul.f32 %v5001_v56, %v5143_v37 }
 0x1a2   : > { %v5409_v44 = vmax.f32 %v827_v21, 0.0  ;;  %v830_v39 = vadd.f32 %v4276_v20, %v4973_v45  ;;  %v821_v0 = vpop.f32.mrb[35].mxu0  ;;  %v7465_v19 = vrot.slane %v5302_v63, 1  ;;  %v1297_v3 = vadd.f32 %v1236_v41, %v1166_v17 }
 0x1a3   : > { %v5415_v11 = vmax.f32 %v819_v58, 0.0  ;;  %v822_v27 = vadd.f32 %v4973_v45, %v821_v0  ;;  %v2559_v29 = vsel %vm2542_vm1, %v2556_v18, %v7402_v24  ;;  %v1435_v63 = vmul.f32 %v5001_v56, %v5157_v59 }
 0x1a4   : > { %7464 = vst [vmem:[#allocation26_spill] sm:$0xff] %v5409_v44  ;;  %v2557_v62 = vsel %vm2542_vm1, %v7465_v19, %v2556_v18  ;;  %v5423_v21 = vmax.f32 %v830_v39, 0.0  ;;  %v2743_v20 = vsel %vm2477_vm2, %v2559_v29, 0.0  ;;  %v5427_v44 = vadd.f32 %v1237_v46, %v1167_v22 }
 0x1a5   : > { %7466 = vst [vmem:[#allocation27_spill] sm:$0xff] %v5415_v11  ;;  %v5421_v23 = vadd.f32 %v2557_v62, %v2086_v6  ;;  %v5431_v58 = vmax.f32 %v822_v27, 0.0  ;;  %v5433_v41 = vadd.f32 %v2743_v20, %v2087_v32  ;;  %v1498_v17 = vadd.f32 %v1434_v33, %v1366_v5 }
 0x1a6   : > { %7468 = vst [vmem:[#allocation29_spill] sm:$0xff] %v5423_v21  ;;  %v1568_v18 = vmul.f32 %v5017_v61, %v5133_v31  ;;  %v1499_v6 = vadd.f32 %v1435_v63, %v1367_v28  ;;  %v1569_v39 = vmul.f32 %v5017_v61, %v5151_v43  ;;  %v1840_v0 = vrot.slane %v1297_v3, 7 }
 0x1a7   : > { %7467 = vst [vmem:[#allocation28_spill] sm:$0xff] %v5421_v23  ;;  %7469 = vst [vmem:[#allocation30_spill] sm:$0xff] %v5431_v58  ;;  %v7401_v19 = vrot.slane %v5427_v44, 7  ;;  %v4279_v46 = vpop.f32.mrb[36].mxu0  ;;  %v2158_v32 = vmul.f32 %v4990_v52, %v5099_v53  ;;  %v2159_v33 = vmul.f32 %v4990_v52, %v5143_v37  ;;  %v7470_v29 = vrot.slane %v5335_v4, 7 }
 0x1a8   : > { %v1629_v62 = vadd.f32 %v1568_v18, %v1498_v17  ;;  %v843_v5 = vadd.f32 %v4279_v46, %v4973_v45  ;;  %v834_v28 = vpop.f32.mrb[37].mxu0  ;;  %v1630_v27 = vadd.f32 %v1569_v39, %v1499_v6  ;;  %v2226_v46 = vmul.f32 %v5006_v57, %v5157_v59 }
 0x1a9   : > { %v1841_v3 = vsel %vm1824_vm0, %v7470_v29, %v1840_v0  ;;  %v1843_v20 = vsel %vm1824_vm0, %v1840_v0, %v7401_v19  ;;  %v835_v63 = vadd.f32 %v4973_v45, %v834_v28  ;;  %v4280_v17 = vpop.f32.mrb[38].mxu0  ;;  %v2227_v0 = vmul.f32 %v5006_v57, %v5133_v31 }
 0x1aa   : > { %v1700_v53 = vadd.f32 %v5087_v38, %v1629_v62  ;;  %v2024_v18 = vsel %vm1756_vm3, %v1841_v3, 0.0  ;;  %v5459_v6 = vmax.f32 %v843_v5, 0.0  ;;  %v846_v4 = vadd.f32 %v4280_v17, %v4973_v45  ;;  %v837_v39 = vpop.f32.mrb[39].mxu0 }
 0x1ab   : > { %v1701_v29 = vadd.f32 %v5087_v38, %v1630_v27  ;;  %v5465_v28 = vmax.f32 %v835_v63, 0.0  ;;  %v838_v62 = vadd.f32 %v4973_v45, %v837_v39  ;;  %v2290_v19 = vadd.f32 %v2226_v46, %v2158_v32 }
 0x1ac   : > { %7471 = vst [vmem:[#allocation31_spill] sm:$0xff] %v5459_v6  ;;  %v2088_v22 = vadd.f32 %v2024_v18, %v1700_v53  ;;  %v5468_v3 = vmax.f32 %v846_v4, 0.0  ;;  %v2291_v21 = vadd.f32 %v2227_v0, %v2159_v33  ;;  %v2360_v5 = vmul.f32 %v5040_v8, %v5151_v43 }
 0x1ad   : > { %7472 = vst [vmem:[#allocation32_spill] sm:$0xff] %v5465_v28  ;;  %v2089_v24 = vadd.f32 %v1843_v20, %v1701_v29  ;;  %v5472_v17 = vmax.f32 %v838_v62, 0.0  ;;  %v2361_v27 = vmul.f32 %v5040_v8, %v5191_v49  ;;  %v1036_v63 = vmul.f32 %v4978_v48, %v5143_v37 }
 0x1ae   : > { %7473 = vst [vmem:[#allocation33_spill] sm:$0xff] %v5468_v3  ;;  %v1037_v39 = vmul.f32 %v4978_v48, %v5157_v59  ;;  %v2421_v53 = vadd.f32 %v2360_v5, %v2290_v19  ;;  %v1104_v32 = vmul.f32 %v4996_v55, %v5133_v31  ;;  %v1105_v33 = vmul.f32 %v4996_v55, %v5151_v43 }
 0x1af   : > { %7474 = vst [vmem:[#allocation34_spill] sm:$0xff] %v5472_v17  ;;  %v1238_v20 = vmul.f32 %v5012_v60, %v5191_v49  ;;  %v4283_v18 = vpop.f32.mrb[40].mxu0  ;;  %v5486_v46 = vadd.f32 %v2361_v27, %v2291_v21  ;;  %v1239_v4 = vmul.f32 %v5012_v60, %v5200_v25  ;;  %v1368_v29 = vmul.f32 %v4985_v51, %v5143_v37 }
 0x1b0   : > { %v1369_v19 = vmul.f32 %v4985_v51, %v5157_v59  ;;  %v859_v0 = vadd.f32 %v4283_v18, %v4973_v45  ;;  %v850_v62 = vpop.f32.mrb[41].mxu0  ;;  %v2560_v5 = vrot.slane %v2421_v53, 1  ;;  %v1168_v3 = vadd.f32 %v1104_v32, %v1036_v63 }
 0x1b1   : > { %v1169_v6 = vadd.f32 %v1105_v33, %v1037_v39  ;;  %v851_v17 = vadd.f32 %v4973_v45, %v850_v62  ;;  %v4284_v28 = vpop.f32.mrb[42].mxu0  ;;  %v7413_v21 = vrot.slane %v5486_v46, 1  ;;  %v1436_v27 = vmul.f32 %v5001_v56, %v5133_v31 }
 0x1b2   : > { %v1437_v37 = vmul.f32 %v5001_v56, %v5151_v43  ;;  %v5501_v58 = vmax.f32 %v859_v0, 0.0  ;;  %v862_v11 = vadd.f32 %v4284_v28, %v4973_v45  ;;  %v853_v18 = vpop.f32.mrb[43].mxu0  ;;  %v7476_v53 = vrot.slane %v5394_v12, 1 }
 0x1b3   : > { %v1299_v39 = vadd.f32 %v1238_v20, %v1168_v3  ;;  %v5507_v32 = vmax.f32 %v851_v17, 0.0  ;;  %v854_v33 = vadd.f32 %v4973_v45, %v853_v18  ;;  %v2563_v62 = vsel %vm2542_vm1, %v2560_v5, %v7413_v21 }
 0x1b4   : > { %7475 = vst [vmem:[#allocation35_spill] sm:$0xff] %v5501_v58  ;;  %v2561_v63 = vsel %vm2542_vm1, %v7476_v53, %v2560_v5  ;;  %v5515_v0 = vmax.f32 %v862_v11, 0.0  ;;  %v2745_v28 = vsel %vm2477_vm2, %v2563_v62, 0.0  ;;  %v5519_v58 = vadd.f32 %v1239_v4, %v1169_v6 }
 0x1b5   : > { %v5513_v23 = vadd.f32 %v2561_v63, %v2088_v22  ;;  %v1500_v12 = vadd.f32 %v1436_v27, %v1368_v29  ;;  %v5521_v53 = vmax.f32 %v854_v33, 0.0  ;;  %v5523_v3 = vadd.f32 %v2745_v28, %v2089_v24 }
 0x1b6   : > { %7477 = vst [vmem:[#allocation36_spill] sm:$0xff] %v5515_v0  ;;  %v1501_v17 = vadd.f32 %v1437_v37, %v1369_v19  ;;  %v1570_v20 = vmul.f32 %v5017_v61, %v5191_v49  ;;  %v1571_v22 = vmul.f32 %v5017_v61, %v5200_v25  ;;  %v1844_v5 = vrot.slane %v1299_v39, 7 }
 0x1b7   : > { %v7412_v11 = vrot.slane %v5519_v58, 7  ;;  %v2160_v18 = vmul.f32 %v4990_v52, %v5157_v59  ;;  %v4287_v6 = vpop.f32.mrb[44].mxu0  ;;  %v2161_v24 = vmul.f32 %v4990_v52, %v5133_v31  ;;  %v2228_v19 = vmul.f32 %v5006_v57, %v5151_v43 }
 0x1b8   : > { %v1631_v29 = vadd.f32 %v1570_v20, %v1500_v12  ;;  %v875_v27 = vadd.f32 %v4287_v6, %v4973_v45  ;;  %v866_v37 = vpop.f32.mrb[45].mxu0  ;;  %v1632_v63 = vadd.f32 %v1571_v22, %v1501_v17  ;;  %v7478_v39 = vrot.slane %v5427_v44, 7 }
 0x1b9   : > { %v1847_v59 = vsel %vm1824_vm0, %v1844_v5, %v7412_v11  ;;  %v867_v62 = vadd.f32 %v4973_v45, %v866_v37  ;;  %v4288_v28 = vpop.f32.mrb[46].mxu0  ;;  %v2229_v6 = vmul.f32 %v5006_v57, %v5191_v49  ;;  %v2292_v4 = vadd.f32 %v2228_v19, %v2160_v18 }
 0x1ba   : > { %v1845_v33 = vsel %vm1824_vm0, %v7478_v39, %v1844_v5  ;;  %v1702_v12 = vadd.f32 %v5087_v38, %v1631_v29  ;;  %v5551_v17 = vmax.f32 %v875_v27, 0.0  ;;  %v878_v44 = vadd.f32 %v4288_v28, %v4973_v45  ;;  %v869_v22 = vpop.f32.mrb[47].mxu0 }
 0x1bb   : > { %v2026_v20 = vsel %vm1756_vm3, %v1845_v33, 0.0  ;;  %v1703_v39 = vadd.f32 %v5087_v38, %v1632_v63  ;;  %v5555_v5 = vmax.f32 %v867_v62, 0.0  ;;  %v870_v37 = vadd.f32 %v4973_v45, %v869_v22 }
 0x1bc   : > { %7479 = vst [vmem:[#allocation37_spill] sm:$0xff] %v5551_v17  ;;  %v2090_v11 = vadd.f32 %v2026_v20, %v1702_v12  ;;  %v2293_v29 = vadd.f32 %v2229_v6, %v2161_v24  ;;  %v5558_v21 = vmax.f32 %v878_v44, 0.0  ;;  %v2362_v0 = vmul.f32 %v5040_v8, %v5200_v25 }
 0x1bd   : > { %7480 = vst [vmem:[#allocation38_spill] sm:$0xff] %v5555_v5  ;;  %v2091_v33 = vadd.f32 %v1847_v59, %v1703_v39  ;;  %v2363_v27 = vmul.f32 %v5040_v8, %v5188_v40  ;;  %v5564_v28 = vmax.f32 %v870_v37, 0.0  ;;  %v1038_v18 = vmul.f32 %v4978_v48, %v5133_v31 }
 0x1be   : > { %7481 = vst [vmem:[#allocation39_spill] sm:$0xff] %v5558_v21  ;;  %v1039_v19 = vmul.f32 %v4978_v48, %v5151_v43  ;;  %v1106_v24 = vmul.f32 %v4996_v55, %v5191_v49  ;;  %v2423_v63 = vadd.f32 %v2362_v0, %v2292_v4  ;;  %v1107_v59 = vmul.f32 %v4996_v55, %v5200_v25 }
 0x1bf   : > { %7482 = vst [vmem:[#allocation40_spill] sm:$0xff] %v5564_v28  ;;  %v5572_v62 = vadd.f32 %v2363_v27, %v2293_v29  ;;  %v1240_v12 = vmul.f32 %v5012_v60, %v5188_v40  ;;  %v4291_v20 = vpop.f32.mrb[48].mxu0  ;;  %v1241_v44 = vmul.f32 %v5012_v60, %v5196_v15  ;;  %v1370_v22 = vmul.f32 %v4985_v51, %v5133_v31 }
 0x1c0   : > { %v1170_v6 = vadd.f32 %v1106_v24, %v1038_v18  ;;  %v1371_v39 = vmul.f32 %v4985_v51, %v5151_v43  ;;  %v891_v0 = vadd.f32 %v4291_v20, %v4973_v45  ;;  %v882_v4 = vpop.f32.mrb[49].mxu0  ;;  %v2564_v37 = vrot.slane %v2423_v63, 1 }
 0x1c1   : > { %v1171_v27 = vadd.f32 %v1107_v59, %v1039_v19  ;;  %v883_v21 = vadd.f32 %v4973_v45, %v882_v4  ;;  %v4292_v17 = vpop.f32.mrb[50].mxu0  ;;  %v1438_v24 = vmul.f32 %v5001_v56, %v5191_v49  ;;  %v1439_v31 = vmul.f32 %v5001_v56, %v5200_v25 }
 0x1c2   : > { %v1301_v18 = vadd.f32 %v1240_v12, %v1170_v6  ;;  %v5591_v28 = vmax.f32 %v891_v0, 0.0  ;;  %v894_v51 = vadd.f32 %v4292_v17, %v4973_v45  ;;  %v885_v20 = vpop.f32.mrb[51].mxu0  ;;  %v7484_v63 = vrot.slane %v5486_v46, 1 }
 0x1c3   : > { %v7485_v19 = vrot.slane %v5572_v62, 1  ;;  %v5600_v12 = vmax.f32 %v883_v21, 0.0  ;;  %v886_v6 = vadd.f32 %v4973_v45, %v885_v20  ;;  %v5611_v46 = vadd.f32 %v1241_v44, %v1171_v27 }
 0x1c4   : > { %7483 = vst [vmem:[#allocation41_spill] sm:$0xff] %v5591_v28  ;;  %v2565_v29 = vsel %vm2542_vm1, %v7484_v63, %v2564_v37  ;;  %v5607_v4 = vmax.f32 %v894_v51, 0.0  ;;  %v1502_v63 = vadd.f32 %v1438_v24, %v1370_v22  ;;  %v1503_v5 = vadd.f32 %v1439_v31, %v1371_v39 }
 0x1c5   : > { %v2567_v59 = vsel %vm2542_vm1, %v2564_v37, %v7485_v19  ;;  %v5605_v0 = vadd.f32 %v2565_v29, %v2090_v11  ;;  %v5613_v28 = vmax.f32 %v886_v6, 0.0  ;;  %v1572_v21 = vmul.f32 %v5017_v61, %v5188_v40 }
 0x1c6   : > { %v2747_v56 = vsel %vm2477_vm2, %v2567_v59, 0.0  ;;  %v1573_v37 = vmul.f32 %v5017_v61, %v5196_v15  ;;  %v1848_v29 = vrot.slane %v1301_v18, 7  ;;  %v7420_v51 = vrot.slane %v5611_v46, 7 }
 0x1c7   : > { %v5609_v17 = vadd.f32 %v2747_v56, %v2091_v33  ;;  %v2162_v33 = vmul.f32 %v4990_v52, %v5151_v43  ;;  %v4295_v44 = vpop.f32.mrb[52].mxu0  ;;  %v1633_v22 = vadd.f32 %v1572_v21, %v1502_v63  ;;  %v2163_v39 = vmul.f32 %v4990_v52, %v5191_v49 }
 0x1c8   : > { %v1634_v27 = vadd.f32 %v1573_v37, %v1503_v5  ;;  %v2230_v24 = vmul.f32 %v5006_v57, %v5200_v25  ;;  %v907_v61 = vadd.f32 %v4295_v44, %v4973_v45  ;;  %v898_v31 = vpop.f32.mrb[53].mxu0  ;;  %v7486_v20 = vrot.slane %v5519_v58, 7 }
 0x1c9   : > { %v1851_v43 = vsel %vm1824_vm0, %v1848_v29, %v7420_v51  ;;  %v2231_v5 = vmul.f32 %v5006_v57, %v5188_v40  ;;  %v899_v19 = vadd.f32 %v4973_v45, %v898_v31  ;;  %v4296_v52 = vpop.f32.mrb[54].mxu0  ;;  %v1704_v59 = vadd.f32 %v5087_v38, %v1633_v22 }
 0x1ca   : > { %v1849_v18 = vsel %vm1824_vm0, %v7486_v20, %v1848_v29  ;;  %v1705_v6 = vadd.f32 %v5087_v38, %v1634_v27  ;;  %v5642_v58 = vmax.f32 %v907_v61, 0.0  ;;  %v910_v63 = vadd.f32 %v4296_v52, %v4973_v45  ;;  %v901_v21 = vpop.f32.mrb[55].mxu0 }
 0x1cb   : > { %v2028_v56 = vsel %vm1756_vm3, %v1849_v18, 0.0  ;;  %v2294_v37 = vadd.f32 %v2230_v24, %v2162_v33  ;;  %v2295_v29 = vadd.f32 %v2231_v5, %v2163_v39  ;;  %v5645_v44 = vmax.f32 %v899_v19, 0.0  ;;  %v5661_v33 = vld [vmem:[%s7368_s3] ss:$0 sm:$0xff] }
 0x1cc   : > { %7487 = vst [vmem:[#allocation42_spill] sm:$0xff] %v5642_v58  ;;  %v902_v57 = vadd.f32 %v4973_v45, %v901_v21  ;;  %v2092_v31 = vadd.f32 %v2028_v56, %v1704_v59  ;;  %v2093_v20 = vadd.f32 %v1851_v43, %v1705_v6  ;;  %v5648_v11 = vmax.f32 %v910_v63, 0.0  ;;  %v5678_v6 = vld [vmem:[%s7368_s3 + $0x1] ss:$0 sm:$0xff]  ;;  %v4506_v63 = vld [vmem:[%s7367_s2] ss:$0 sm:$0xff] }
 0x1cd   : > { %7488 = vst [vmem:[#allocation43_spill] sm:$0xff] %v5645_v44  ;;  %v2364_v22 = vmul.f32 %v5040_v8, %v5196_v15  ;;  %v2365_v27 = vmul.f32 %v5040_v8, %v5230_v30  ;;  %v1040_v61 = vmul.f32 %v4978_v48, %v5191_v49  ;;  %v1041_v45 = vmul.f32 %v5661_v33, %v5200_v25 }
 0x1ce   : > { %7489 = vst [vmem:[#allocation44_spill] sm:$0xff] %v5648_v11  ;;  %v5656_v18 = vmax.f32 %v902_v57, 0.0  ;;  %v1108_v39 = vmul.f32 %v4996_v55, %v5188_v40  ;;  %v1109_v24 = vmul.f32 %v4996_v55, %v5196_v15  ;;  %v1242_v48 = vmul.f32 %v5012_v60, %v5230_v30  ;;  %v5691_v57 = vld [vmem:[%s7368_s3 + $0x4] ss:$0 sm:$0xff] }
 0x1cf   : > { %v2425_v8 = vadd.f32 %v2364_v22, %v2294_v37  ;;  %v5669_v43 = vadd.f32 %v2365_v27, %v2295_v29  ;;  %v1243_v5 = vmul.f32 %v5012_v60, %v5247_v14  ;;  %v4299_v19 = vpop.f32.mrb[56].mxu0  ;;  %v1372_v55 = vmul.f32 %v5678_v6, %v5191_v49 }
 0x1d0   : > { %7490 = vst [vmem:[#allocation45_spill] sm:$0xff] %v5656_v18  ;;  %v1172_v52 = vadd.f32 %v1108_v39, %v1040_v61  ;;  %v1173_v59 = vadd.f32 %v1109_v24, %v1041_v45  ;;  %v1373_v56 = vmul.f32 %v5678_v6, %v5200_v25  ;;  %v923_v21 = vadd.f32 %v4506_v63, %v4299_v19  ;;  %v914_v60 = vpop.f32.mrb[57].mxu0 }
 0x1d1   : > { %v2568_v37 = vrot.slane %v2425_v8, 1  ;;  %v1440_v49 = vmul.f32 %v5691_v57, %v5188_v40  ;;  %v915_v22 = vadd.f32 %v4506_v63, %v914_v60  ;;  %v4300_v27 = vpop.f32.mrb[58].mxu0  ;;  %v1441_v39 = vmul.f32 %v5691_v57, %v5196_v15 }
 0x1d2   : > { %v1303_v61 = vadd.f32 %v1242_v48, %v1172_v52  ;;  %v5695_v45 = vadd.f32 %v1243_v5, %v1173_v59  ;;  %v5699_v24 = vmax.f32 %v923_v21, 0.0  ;;  %v926_v8 = vadd.f32 %v4506_v63, %v4300_v27  ;;  %v917_v19 = vpop.f32.mrb[59].mxu0 }
 0x1d3   : > { %v7492_v51 = vrot.slane %v5572_v62, 1  ;;  %v7493_v11 = vrot.slane %v5669_v43, 1  ;;  %v5707_v60 = vmax.f32 %v915_v22, 0.0  ;;  %v918_v48 = vadd.f32 %v4506_v63, %v917_v19  ;;  %v5746_v19 = vld [vmem:[%s7368_s3 + $0x5] ss:$0 sm:$0xff] }
 0x1d4   : > { %7491 = vst [vmem:[#allocation46_spill] sm:$0xff] %v5699_v24  ;;  %v5713_v59 = vmax.f32 %v926_v8, 0.0  ;;  %v1504_v27 = vadd.f32 %v1440_v49, %v1372_v55  ;;  %v1505_v62 = vadd.f32 %v1441_v39, %v1373_v56  ;;  %v7428_v55 = vrot.slane %v5695_v45, 7  ;;  %v5734_v56 = vld [vmem:[%s7368_s3 + $0x2] ss:$0 sm:$0xff] }
 0x1d5   : > { %v2569_v29 = vsel %vm2542_vm1, %v7492_v51, %v2568_v37  ;;  %v2571_v58 = vsel %vm2542_vm1, %v2568_v37, %v7493_v11  ;;  %7494 = vst [vmem:[#allocation47_spill] sm:$0xff] %v5707_v60  ;;  %v5717_v24 = vmax.f32 %v918_v48, 0.0  ;;  %v5722_v11 = vld [vmem:[%s7368_s3 + $0x7] ss:$0 sm:$0xff]  ;;  %v2164_v37 = vmul.f32 %v5734_v56, %v5200_v25 }
 0x1d6   : > { %v2749_v5 = vsel %vm2477_vm2, %v2571_v58, 0.0  ;;  %v5711_v52 = vadd.f32 %v2569_v29, %v2092_v31  ;;  %7495 = vst [vmem:[#allocation48_spill] sm:$0xff] %v5713_v59  ;;  %v1574_v51 = vmul.f32 %v5722_v11, %v5230_v30  ;;  %v1575_v58 = vmul.f32 %v5722_v11, %v5247_v14 }
 0x1d7   : > { %v5715_v21 = vadd.f32 %v2749_v5, %v2093_v20  ;;  %7496 = vst [vmem:[#allocation49_spill] sm:$0xff] %v5717_v24  ;;  %v1852_v31 = vrot.slane %v1303_v61, 7  ;;  %v2165_v29 = vmul.f32 %v5734_v56, %v5188_v40  ;;  %v4303_v49 = vpop.f32.mrb[60].mxu0  ;;  %v7497_v61 = vrot.slane %v5611_v46, 7 }
 0x1d8   : > { %v1635_v22 = vadd.f32 %v1574_v51, %v1504_v27  ;;  %v1636_v39 = vadd.f32 %v1575_v58, %v1505_v62  ;;  %v2232_v48 = vmul.f32 %v5746_v19, %v5196_v15  ;;  %v939_v5 = vadd.f32 %v4506_v63, %v4303_v49  ;;  %v930_v25 = vpop.f32.mrb[61].mxu0 }
 0x1d9   : > { %v1853_v8 = vsel %vm1824_vm0, %v7497_v61, %v1852_v31  ;;  %v1855_v20 = vsel %vm1824_vm0, %v1852_v31, %v7428_v55  ;;  %v2233_v46 = vmul.f32 %v5746_v19, %v5230_v30  ;;  %v931_v62 = vadd.f32 %v4506_v63, %v930_v25  ;;  %v4304_v51 = vpop.f32.mrb[62].mxu0  ;;  %v5764_v31 = vld [vmem:[%s7368_s3 + $0x8] ss:$0 sm:$0xff] }
 0x1da   : > { %v2030_v27 = vsel %vm1756_vm3, %v1853_v8, 0.0  ;;  %v1706_v58 = vadd.f32 %v5087_v38, %v1635_v22  ;;  %v1707_v61 = vadd.f32 %v5087_v38, %v1636_v39  ;;  %v2296_v59 = vadd.f32 %v2232_v48, %v2164_v37  ;;  %v933_v60 = vpop.f32.mrb[63].mxu0 }
 0x1db   : > { %v5759_v24 = vmax.f32 %v939_v5, 0.0  ;;  %v942_v49 = vadd.f32 %v4506_v63, %v4304_v51  ;;  %v2297_v18 = vadd.f32 %v2233_v46, %v2165_v29  ;;  %v2366_v8 = vmul.f32 %v5764_v31, %v5247_v14  ;;  %v5796_v46 = vld [vmem:[%s7368_s3 + $0x6] ss:$0 sm:$0xff] }
 0x1dc   : > { %v5768_v25 = vmax.f32 %v931_v62, 0.0  ;;  %v934_v55 = vadd.f32 %v4506_v63, %v933_v60  ;;  %v2094_v22 = vadd.f32 %v2030_v27, %v1706_v58  ;;  %v2095_v44 = vadd.f32 %v1855_v20, %v1707_v61  ;;  %v5783_v63 = vld [vmem:[%s7368_s3 + $0x3] ss:$0 sm:$0xff] }
 0x1dd   : > { %7498 = vst [vmem:[#allocation50_spill] sm:$0xff] %v5759_v24  ;;  %v5770_v38 = vmax.f32 %v942_v49, 0.0  ;;  %v2367_v37 = vmul.f32 %v5764_v31, %v5225_v16  ;;  %v2427_v39 = vadd.f32 %v2366_v8, %v2296_v59  ;;  %v1042_v29 = vmul.f32 %v5661_v33, %v5188_v40 }
 0x1de   : > { %7499 = vst [vmem:[#allocation51_spill] sm:$0xff] %v5768_v25  ;;  %v5776_v48 = vmax.f32 %v934_v55, 0.0  ;;  %v1043_v5 = vmul.f32 %v5661_v33, %v5196_v15  ;;  %v1110_v60 = vmul.f32 %v5783_v63, %v5230_v30  ;;  %v1111_v20 = vmul.f32 %v5783_v63, %v5247_v14 }
 0x1df   : > { %7500 = vst [vmem:[#allocation52_spill] sm:$0xff] %v5770_v38  ;;  %v1157_v59 = vmul.f32 %v5783_v63, %v5770_v38  ;;  %v5791_v27 = vadd.f32 %v2367_v37, %v2297_v18  ;;  %v2572_v55 = vrot.slane %v2427_v39, 1  ;;  %v1244_v62 = vmul.f32 %v5796_v46, %v5225_v16 }
 0x1e0   : > { %v1087_v51 = vmul.f32 %v5661_v33, %v5776_v48  ;;  %v1174_v58 = vadd.f32 %v1110_v60, %v1042_v29  ;;  %v1175_v61 = vadd.f32 %v1111_v20, %v1043_v5  ;;  %v1245_v49 = vmul.f32 %v5796_v46, %v5239_v35 }
 0x1e1   : > { %v7501_v18 = vrot.slane %v5669_v43, 1  ;;  %v2574_v37 = vrot.slane %v5791_v27, 1  ;;  %v1374_v39 = vmul.f32 %v5678_v6, %v5188_v40  ;;  %v1375_v38 = vmul.f32 %v5678_v6, %v5196_v15 }
 0x1e2   : > { %v1221_v24 = vadd.f32 %v1157_v59, %v1087_v51  ;;  %v1305_v29 = vadd.f32 %v1244_v62, %v1174_v58  ;;  %v5814_v5 = vadd.f32 %v1245_v49, %v1175_v61  ;;  %v1442_v43 = vmul.f32 %v5691_v57, %v5230_v30 }
 0x1e3   : > { %v2573_v8 = vsel %vm2542_vm1, %v7501_v18, %v2572_v55  ;;  %v2575_v60 = vsel %vm2542_vm1, %v2572_v55, %v2574_v37  ;;  %v1443_v20 = vmul.f32 %v5691_v57, %v5247_v14  ;;  %v1576_v40 = vmul.f32 %v5722_v11, %v5225_v16 }
 0x1e4   : > { %v5812_v25 = vadd.f32 %v2573_v8, %v2094_v22  ;;  %v5824_v27 = vadd.f32 %v5043_v9, %v1221_v24  ;;  %v2751_v22 = vsel %vm2477_vm2, %v2575_v60, 0.0  ;;  %v1577_v59 = vmul.f32 %v5722_v11, %v5239_v35 }
 0x1e5   : > { %v1856_v62 = vrot.slane %v1305_v29, 7  ;;  %v5830_v55 = vadd.f32 %v2751_v22, %v2095_v44  ;;  %v1506_v51 = vadd.f32 %v1442_v43, %v1374_v39  ;;  %v1507_v58 = vadd.f32 %v1443_v20, %v1375_v38 }
 0x1e6   : > { %7502 = vst [vmem:[#allocation53_spill] sm:$0xff] %v5824_v27  ;;  %v7435_v61 = vrot.slane %v5814_v5, 7  ;;  %v7434_v49 = vrot.slane %v5824_v27, 7  ;;  %v7503_v18 = vrot.slane %v5695_v45, 7  ;;  %v2166_v8 = vmul.f32 %v5734_v56, %v5196_v15 }
 0x1e7   : > { %v2167_v60 = vmul.f32 %v5734_v56, %v5230_v30  ;;  %v1637_v29 = vadd.f32 %v1576_v40, %v1506_v51  ;;  %v1638_v39 = vadd.f32 %v1577_v59, %v1507_v58  ;;  %v7504_v43 = vrot.slane %v5081_v36, 7  ;;  %v5862_v36 = vld [vmem:[%s7369_s4] ss:$0 sm:$0xff] }
 0x1e8   : > { %v1857_v24 = vsel %vm1824_vm0, %v7503_v18, %v1856_v62  ;;  %v1859_v38 = vsel %vm1824_vm0, %v1856_v62, %v7435_v61  ;;  %v2234_v20 = vmul.f32 %v5746_v19, %v5247_v14  ;;  %v2235_v40 = vmul.f32 %v5746_v19, %v5225_v16 }
 0x1e9   : > { %v2015_v45 = vsel %vm1824_vm0, %v7434_v49, %v7504_v43  ;;  %v2032_v15 = vsel %vm1756_vm3, %v1857_v24, 0.0  ;;  %v1708_v59 = vadd.f32 %v5862_v36, %v1637_v29  ;;  %v1709_v62 = vadd.f32 %v5862_v36, %v1638_v39 }
 0x1ea   : > { %v2016_v22 = vsel %vm1756_vm3, %v2015_v45, 0.0  ;;  %v2368_v51 = vmul.f32 %v5764_v31, %v5239_v35  ;;  %v2298_v18 = vadd.f32 %v2234_v20, %v2166_v8  ;;  %v2299_v24 = vadd.f32 %v2235_v40, %v2167_v60 }
 0x1eb   : > { %v2080_v58 = vadd.f32 %v2016_v22, %v5102_v54  ;;  %v2369_v43 = vmul.f32 %v5764_v31, %v5283_v47  ;;  %v2096_v45 = vadd.f32 %v2032_v15, %v1708_v59  ;;  %v2097_v49 = vadd.f32 %v1859_v38, %v1709_v62 }
 0x1ec   : > { %v1044_v44 = vmul.f32 %v5661_v33, %v5230_v30  ;;  %v1045_v29 = vmul.f32 %v5661_v33, %v5247_v14  ;;  %v2429_v61 = vadd.f32 %v2368_v51, %v2298_v18  ;;  %v1112_v54 = vmul.f32 %v5783_v63, %v5225_v16 }
 0x1ed   : > { %v2800_v39 = vadd.f32 %v5139_v34, %v2080_v58  ;;  %v5876_v27 = vadd.f32 %v2369_v43, %v2299_v24  ;;  %v1113_v8 = vmul.f32 %v5783_v63, %v5239_v35  ;;  %v1246_v60 = vmul.f32 %v5796_v46, %v5283_v47 }
 0x1ee   : > { %v1247_v38 = vmul.f32 %v5796_v46, %v5292_v26  ;;  %v1376_v15 = vmul.f32 %v5678_v6, %v5230_v30  ;;  %v2576_v20 = vrot.slane %v2429_v61, 1  ;;  %v1176_v22 = vadd.f32 %v1112_v54, %v1044_v44 }
 0x1ef   : > { %v2864_v34 = vpack.c.bf16 %v5159_v1, %v2800_v39  ;;  %v2578_v40 = vrot.slane %v5876_v27, 1  ;;  %v1177_v59 = vadd.f32 %v1113_v8, %v1045_v29  ;;  %v1377_v62 = vmul.f32 %v5678_v6, %v5247_v14 }
 0x1f0   : > { %v1444_v51 = vmul.f32 %v5691_v57, %v5225_v16  ;;  %v1445_v58 = vmul.f32 %v5691_v57, %v5239_v35  ;;  %v2577_v18 = vsel %vm2542_vm1, %v2574_v37, %v2576_v20  ;;  %v1307_v1 = vadd.f32 %v1246_v60, %v1176_v22 }
 0x1f1   : > { %4321 = vmatprep.mubr.bf16.mxu1 %v2864_v34  ;;  %v2579_v30 = vsel %vm2542_vm1, %v2576_v20, %v2578_v40  ;;  %v1578_v27 = vmul.f32 %v5722_v11, %v5283_v47  ;;  %v7505_v61 = vpack.c.bf16 %v5249_v2, %v5243_v42  ;;  %v5905_v24 = vadd.f32 %v2577_v18, %v2096_v45 }
 0x1f2   : > { %v2753_v44 = vsel %vm2477_vm2, %v2579_v30, 0.0  ;;  %v5907_v43 = vadd.f32 %v1247_v38, %v1177_v59  ;;  %v1508_v29 = vadd.f32 %v1444_v51, %v1376_v15  ;;  %v7506_v37 = vpack.c.bf16 %v5341_v13, %v5329_v10 }
 0x1f3   : > { %4322 = vmatmul.mubr.bf16.vlgmr.msra.gmra.mrb[0].mxu1 %v7505_v61  ;;  %v5912_v39 = vadd.f32 %v2753_v44, %v2097_v49  ;;  %v1509_v54 = vadd.f32 %v1445_v58, %v1377_v62  ;;  %v1579_v8 = vmul.f32 %v5722_v11, %v5292_v26  ;;  %v1860_v42 = vrot.slane %v1307_v1, 7  ;;  %v7508_v58 = vld [vmem:[#allocation16_spill] sm:$0xff] }
 0x1f4   : > { %4325 = vmatprep.mubr.bf16.mxu1 %v7506_v37  ;;  %v1639_v2 = vadd.f32 %v1578_v27, %v1508_v29  ;;  %v1862_v60 = vrot.slane %v5907_v43, 7  ;;  %v2168_v45 = vmul.f32 %v5734_v56, %v5247_v14  ;;  %v2169_v38 = vmul.f32 %v5734_v56, %v5225_v16 }
 0x1f5   : > { %v2872_v10 = vpack.c.bf16 %v5912_v39, %v5905_v24  ;;  %v1640_v13 = vadd.f32 %v1579_v8, %v1509_v54  ;;  %v7507_v49 = vrot.slane %v5814_v5, 7  ;;  %v2236_v34 = vmul.f32 %v5746_v19, %v5239_v35  ;;  %v7509_v54 = vld [vmem:[#allocation28_spill] sm:$0xff] }
 0x1f6   : > { %v1710_v20 = vadd.f32 %v5862_v36, %v1639_v2  ;;  %v1863_v22 = vsel %vm1824_vm0, %v1860_v42, %v1862_v60  ;;  %v2237_v59 = vmul.f32 %v5746_v19, %v5283_v47  ;;  %v2370_v5 = vmul.f32 %v5764_v31, %v5292_v26 }
 0x1f7   : > { %v1861_v15 = vsel %vm1824_vm0, %v7507_v49, %v1860_v42  ;;  %v1711_v62 = vadd.f32 %v5862_v36, %v1640_v13  ;;  %v2300_v51 = vadd.f32 %v2236_v34, %v2168_v45  ;;  %v2371_v18 = vmul.f32 %v5764_v31, %v7508_v58  ;;  %v7511_v45 = vld [vmem:[#allocation17_spill] sm:$0xff] }
 0x1f8   : > { %v2034_v14 = vsel %vm1756_vm3, %v1861_v15, 0.0  ;;  %v2301_v1 = vadd.f32 %v2237_v59, %v2169_v38  ;;  %v1046_v27 = vmul.f32 %v5661_v33, %v5225_v16  ;;  %v1047_v61 = vmul.f32 %v5661_v33, %v5239_v35 }
 0x1f9   : > { %v2098_v30 = vadd.f32 %v2034_v14, %v1710_v20  ;;  %v2099_v44 = vadd.f32 %v1863_v22, %v1711_v62  ;;  %v2431_v43 = vadd.f32 %v2370_v5, %v2300_v51  ;;  %v1114_v29 = vmul.f32 %v5783_v63, %v5283_v47 }
 0x1fa   : > { %v1115_v37 = vmul.f32 %v5783_v63, %v5292_v26  ;;  %v7510_v8 = vpack.c.bf16 %v5433_v41, %v7509_v54  ;;  %v5950_v42 = vadd.f32 %v2371_v18, %v2301_v1  ;;  %v1248_v2 = vmul.f32 %v5796_v46, %v7508_v58 }
 0x1fb   : > { %v1249_v38 = vmul.f32 %v5796_v46, %v7511_v45  ;;  %v1378_v13 = vmul.f32 %v5678_v6, %v5225_v16  ;;  %v7512_v49 = vpack.c.bf16 %v5523_v3, %v5513_v23  ;;  %v2580_v15 = vrot.slane %v2431_v43, 1 }
 0x1fc   : > { %4326 = vmatmul.mubr.bf16.gmra.mrb[4].mxu1 %v7510_v8  ;;  %v1178_v34 = vadd.f32 %v1114_v29, %v1046_v27  ;;  %v1179_v20 = vadd.f32 %v1115_v37, %v1047_v61  ;;  %v1379_v41 = vmul.f32 %v5678_v6, %v5239_v35  ;;  %v2582_v22 = vrot.slane %v5950_v42, 1 }
 0x1fd   : > { %4329 = vmatprep.mubr.bf16.mxu1 %v7512_v49  ;;  %v1446_v14 = vmul.f32 %v5691_v57, %v5283_v47  ;;  %v1447_v59 = vmul.f32 %v5691_v57, %v5292_v26  ;;  %v1580_v16 = vmul.f32 %v5722_v11, %v7508_v58  ;;  %v2581_v23 = vsel %vm2542_vm1, %v2578_v40, %v2580_v15 }
 0x1fe   : > { %v1309_v3 = vadd.f32 %v1248_v2, %v1178_v34  ;;  %v5971_v62 = vadd.f32 %v1249_v38, %v1179_v20  ;;  %v1581_v51 = vmul.f32 %v5722_v11, %v7511_v45  ;;  %v2583_v5 = vsel %vm2542_vm1, %v2580_v15, %v2582_v22 }
 0x1ff   : > { %v5976_v18 = vadd.f32 %v2581_v23, %v2098_v30  ;;  %v1510_v1 = vadd.f32 %v1446_v14, %v1378_v13  ;;  %v1511_v27 = vadd.f32 %v1447_v59, %v1379_v41  ;;  %v2755_v61 = vsel %vm2477_vm2, %v2583_v5, 0.0 }
 0x200   : > { %v1864_v43 = vrot.slane %v1309_v3, 7  ;;  %v1866_v29 = vrot.slane %v5971_v62, 7  ;;  %v2170_v40 = vmul.f32 %v5734_v56, %v5239_v35  ;;  %v5983_v37 = vadd.f32 %v2755_v61, %v2099_v44 }
 0x201   : > { %v1641_v54 = vadd.f32 %v1580_v16, %v1510_v1  ;;  %v1642_v8 = vadd.f32 %v1581_v51, %v1511_v27  ;;  %v2171_v42 = vmul.f32 %v5734_v56, %v5283_v47  ;;  %v2238_v38 = vmul.f32 %v5746_v19, %v5292_v26  ;;  %v7516_v1 = vld [vmem:[#allocation21_spill] sm:$0xff] }
 0x202   : > { %v1865_v30 = vsel %vm1824_vm0, %v1862_v60, %v1864_v43  ;;  %v1867_v2 = vsel %vm1824_vm0, %v1864_v43, %v1866_v29  ;;  %v2239_v13 = vmul.f32 %v5746_v19, %v7508_v58  ;;  %v7513_v35 = vpack.c.bf16 %v5609_v17, %v5605_v0  ;;  %v7515_v17 = vld [vmem:[#allocation19_spill] sm:$0xff] }
 0x203   : > { %v2873_v44 = vpack.c.bf16 %v5983_v37, %v5976_v18  ;;  %v1712_v49 = vadd.f32 %v5862_v36, %v1641_v54  ;;  %v1713_v15 = vadd.f32 %v5862_v36, %v1642_v8  ;;  %v2036_v60 = vsel %vm1756_vm3, %v1865_v30, 0.0 }
 0x204   : > { %4330 = vmatmul.mubr.bf16.gmra.mrb[8].mxu1 %v7513_v35  ;;  %v7514_v34 = vpack.c.bf16 %v5715_v21, %v5711_v52  ;;  %v2302_v20 = vadd.f32 %v2238_v38, %v2170_v40  ;;  %v2303_v41 = vadd.f32 %v2239_v13, %v2171_v42  ;;  %v2372_v0 = vmul.f32 %v5764_v31, %v7511_v45 }
 0x205   : > { %v2373_v14 = vmul.f32 %v5764_v31, %v7515_v17  ;;  %v2100_v59 = vadd.f32 %v2036_v60, %v1712_v49  ;;  %v2101_v16 = vadd.f32 %v1867_v2, %v1713_v15  ;;  %v1048_v23 = vmul.f32 %v5661_v33, %v5283_v47 }
 0x206   : > { %4333 = vmatprep.mubr.bf16.mxu1 %v7514_v34  ;;  %v1049_v3 = vmul.f32 %v5661_v33, %v5292_v26  ;;  %v2433_v62 = vadd.f32 %v2372_v0, %v2302_v20  ;;  %v1116_v52 = vmul.f32 %v5783_v63, %v7508_v58  ;;  %v1117_v21 = vmul.f32 %v5783_v63, %v7511_v45 }
 0x207   : > { %v6013_v51 = vadd.f32 %v2373_v14, %v2303_v41  ;;  %v1250_v5 = vmul.f32 %v5796_v46, %v7515_v17  ;;  %v1251_v27 = vmul.f32 %v5796_v46, %v7516_v1  ;;  %v1380_v61 = vmul.f32 %v5678_v6, %v5283_v47 }
 0x208   : > { %v1381_v43 = vmul.f32 %v5678_v6, %v5292_v26  ;;  %v2584_v40 = vrot.slane %v2433_v62, 1  ;;  %v1180_v8 = vadd.f32 %v1116_v52, %v1048_v23  ;;  %v1181_v42 = vadd.f32 %v1117_v21, %v1049_v3 }
 0x209   : > { %v2586_v54 = vrot.slane %v6013_v51, 1  ;;  %v1448_v30 = vmul.f32 %v5691_v57, %v7508_v58  ;;  %v1449_v2 = vmul.f32 %v5691_v57, %v7511_v45  ;;  %v1582_v38 = vmul.f32 %v5722_v11, %v7515_v17 }
 0x20a   : > { %v1583_v47 = vmul.f32 %v5722_v11, %v7516_v1  ;;  %v2585_v13 = vsel %vm2542_vm1, %v2582_v22, %v2584_v40  ;;  %v1311_v49 = vadd.f32 %v1250_v5, %v1180_v8  ;;  %v6038_v15 = vadd.f32 %v1251_v27, %v1181_v42 }
 0x20b   : > { %v2587_v35 = vsel %vm2542_vm1, %v2584_v40, %v2586_v54  ;;  %v7517_v60 = vpack.c.bf16 %v5830_v55, %v5812_v25  ;;  %v2820_v20 = vadd.f32 %v2585_v13, %v2100_v59  ;;  %v1512_v41 = vadd.f32 %v1448_v30, %v1380_v61  ;;  %v7518_v61 = vld [vmem:[#allocation18_spill] sm:$0xff] }
 0x20c   : > { %v2757_v34 = vsel %vm2477_vm2, %v2587_v35, 0.0  ;;  %v1513_v0 = vadd.f32 %v1449_v2, %v1381_v43  ;;  %v1868_v14 = vrot.slane %v1311_v49, 7  ;;  %v1870_v23 = vrot.slane %v6038_v15, 7  ;;  %v7519_v49 = vld [vmem:[#allocation20_spill] sm:$0xff] }
 0x20d   : > { %4334 = vmatmul.mubr.bf16.gmra.mrb[12].mxu1 %v7517_v60  ;;  %v2821_v22 = vadd.f32 %v2757_v34, %v2101_v16  ;;  %v2172_v3 = vmul.f32 %v5734_v56, %v5292_v26  ;;  %v1643_v62 = vadd.f32 %v1582_v38, %v1512_v41  ;;  %v2173_v55 = vmul.f32 %v5734_v56, %v7508_v58 }
 0x20e   : > { %4337 = vmatprep.mubr.bf16.mxu1 %v2872_v10  ;;  %v1644_v25 = vadd.f32 %v1583_v47, %v1513_v0  ;;  %v2240_v59 = vmul.f32 %v5746_v19, %v7511_v45  ;;  %v1869_v52 = vsel %vm1824_vm0, %v1866_v29, %v1868_v14  ;;  %v1871_v24 = vsel %vm1824_vm0, %v1868_v14, %v1870_v23 }
 0x20f   : > { %v2874_v51 = vpack.c.bf16 %v2821_v22, %v2820_v20  ;;  %v2241_v39 = vmul.f32 %v5746_v19, %v7515_v17  ;;  %v1714_v10 = vadd.f32 %v5862_v36, %v1643_v62  ;;  %v2038_v16 = vsel %vm1756_vm3, %v1869_v52, 0.0 }
 0x210   : > { %v1715_v26 = vadd.f32 %v5862_v36, %v1644_v25  ;;  %v2304_v21 = vadd.f32 %v2240_v59, %v2172_v3  ;;  %v2374_v27 = vmul.f32 %v5764_v31, %v7516_v1  ;;  %v2375_v29 = vmul.f32 %v5764_v31, %v7518_v61 }
 0x211   : > { %v2305_v5 = vadd.f32 %v2241_v39, %v2173_v55  ;;  %v1050_v43 = vmul.f32 %v5661_v33, %v7508_v58  ;;  %v2102_v40 = vadd.f32 %v2038_v16, %v1714_v10  ;;  %v1051_v42 = vmul.f32 %v5661_v33, %v7511_v45 }
 0x212   : > { %v2103_v8 = vadd.f32 %v1871_v24, %v1715_v26  ;;  %v1118_v30 = vmul.f32 %v5783_v63, %v7515_v17  ;;  %v2435_v2 = vadd.f32 %v2374_v27, %v2304_v21  ;;  %v1119_v47 = vmul.f32 %v5783_v63, %v7516_v1 }
 0x213   : > { %v6073_v38 = vadd.f32 %v2375_v29, %v2305_v5  ;;  %v1252_v13 = vmul.f32 %v5796_v46, %v7518_v61  ;;  %v1253_v15 = vmul.f32 %v5796_v46, %v7519_v49  ;;  %v1382_v60 = vmul.f32 %v5678_v6, %v7508_v58 }
 0x214   : > { %v1182_v35 = vadd.f32 %v1118_v30, %v1050_v43  ;;  %v1383_v34 = vmul.f32 %v5678_v6, %v7511_v45  ;;  %v2588_v20 = vrot.slane %v2435_v2, 1  ;;  %v1183_v0 = vadd.f32 %v1119_v47, %v1051_v42  ;;  %v7520_v2 = vld [vmem:[#allocation23_spill] sm:$0xff] }
 0x215   : > { %4338 = vmatmul.mubr.bf16.gmra.mrb[16].mxu1 %v2873_v44  ;;  %v2590_v41 = vrot.slane %v6073_v38, 1  ;;  %v1450_v22 = vmul.f32 %v5691_v57, %v7515_v17  ;;  %v1451_v37 = vmul.f32 %v5691_v57, %v7516_v1  ;;  %v1584_v44 = vmul.f32 %v5722_v11, %v7518_v61 }
 0x216   : > { %4341 = vmatprep.mubr.bf16.mxu1 %v2874_v51  ;;  %v1313_v18 = vadd.f32 %v1252_v13, %v1182_v35  ;;  %v1585_v58 = vmul.f32 %v5722_v11, %v7519_v49  ;;  %v2589_v14 = vsel %vm2542_vm1, %v2586_v54, %v2588_v20  ;;  %v1314_v62 = vadd.f32 %v1253_v15, %v1183_v0 }
 0x217   : > { %v2591_v3 = vsel %vm2542_vm1, %v2588_v20, %v2590_v41  ;;  %v1514_v25 = vadd.f32 %v1450_v22, %v1382_v60  ;;  %v2822_v59 = vadd.f32 %v2589_v14, %v2102_v40  ;;  %v1515_v51 = vadd.f32 %v1451_v37, %v1383_v34  ;;  %v7521_v22 = vld [vmem:[#allocation25_spill] sm:$0xff] }
 0x218   : > { %v2759_v55 = vsel %vm2477_vm2, %v2591_v3, 0.0  ;;  %v1872_v52 = vrot.slane %v1313_v18, 7  ;;  %v1874_v10 = vrot.slane %v1314_v62, 7  ;;  %v2174_v26 = vmul.f32 %v5734_v56, %v7511_v45 }
 0x219   : > { %v2823_v24 = vadd.f32 %v2759_v55, %v2103_v8  ;;  %v1645_v39 = vadd.f32 %v1584_v44, %v1514_v25  ;;  %v1646_v16 = vadd.f32 %v1585_v58, %v1515_v51  ;;  %v2175_v54 = vmul.f32 %v5734_v56, %v7515_v17 }
 0x21a   : > { %v1873_v21 = vsel %vm1824_vm0, %v1870_v23, %v1872_v52  ;;  %v2242_v5 = vmul.f32 %v5746_v19, %v7516_v1  ;;  %v1875_v43 = vsel %vm1824_vm0, %v1872_v52, %v1874_v10  ;;  %v2243_v45 = vmul.f32 %v5746_v19, %v7518_v61 }
 0x21b   : > { %v2875_v27 = vpack.c.bf16 %v2823_v24, %v2822_v59  ;;  %v1716_v29 = vadd.f32 %v5862_v36, %v1645_v39  ;;  %v2040_v40 = vsel %vm1756_vm3, %v1873_v21, 0.0  ;;  %v1717_v8 = vadd.f32 %v5862_v36, %v1646_v16 }
 0x21c   : > { %v2306_v23 = vadd.f32 %v2242_v5, %v2174_v26  ;;  %v2376_v42 = vmul.f32 %v5764_v31, %v7519_v49  ;;  %v2377_v38 = vmul.f32 %v5764_v31, %v7520_v2  ;;  %v1052_v47 = vmul.f32 %v5661_v33, %v7515_v17 }
 0x21d   : > { %4342 = vmatmul.mubr.bf16.gmra.mrb[20].mxu1 %v2875_v27  ;;  %v2104_v30 = vadd.f32 %v2040_v40, %v1716_v29  ;;  %v1053_v13 = vmul.f32 %v5661_v33, %v7516_v1  ;;  %v2105_v35 = vadd.f32 %v1875_v43, %v1717_v8  ;;  %v2307_v15 = vadd.f32 %v2243_v45, %v2175_v54 }
 0x21e   : > { %v2437_v60 = vadd.f32 %v2376_v42, %v2306_v23  ;;  %v1120_v34 = vmul.f32 %v5783_v63, %v7518_v61  ;;  %v1121_v20 = vmul.f32 %v5783_v63, %v7519_v49  ;;  %v1254_v0 = vmul.f32 %v5796_v46, %v7520_v2 }
 0x21f   : > { %v1255_v18 = vmul.f32 %v5796_v46, %v7521_v22  ;;  %v1384_v37 = vmul.f32 %v5678_v6, %v7515_v17  ;;  %v2438_v44 = vadd.f32 %v2377_v38, %v2307_v15  ;;  %v1385_v3 = vmul.f32 %v5678_v6, %v7516_v1 }
 0x220   : > { %v2592_v58 = vrot.slane %v2437_v60, 1  ;;  %v1184_v14 = vadd.f32 %v1120_v34, %v1052_v47  ;;  %v1185_v62 = vadd.f32 %v1121_v20, %v1053_v13  ;;  %v1452_v25 = vmul.f32 %v5691_v57, %v7518_v61 }
 0x221   : > { %v1453_v55 = vmul.f32 %v5691_v57, %v7519_v49  ;;  %v1586_v59 = vmul.f32 %v5722_v11, %v7520_v2  ;;  %v2594_v52 = vrot.slane %v2438_v44, 1  ;;  %v1587_v24 = vmul.f32 %v5722_v11, %v7521_v22 }
 0x222   : > { %v2593_v51 = vsel %vm2542_vm1, %v2590_v41, %v2592_v58  ;;  %v1315_v17 = vadd.f32 %v1254_v0, %v1184_v14  ;;  %v1316_v26 = vadd.f32 %v1255_v18, %v1185_v62  ;;  %v1516_v16 = vadd.f32 %v1452_v25, %v1384_v37  ;;  %v7522_v0 = vld [vmem:[#allocation22_spill] sm:$0xff] }
 0x223   : > { %v2824_v39 = vadd.f32 %v2593_v51, %v2104_v30  ;;  %v1517_v21 = vadd.f32 %v1453_v55, %v1385_v3  ;;  %v2595_v54 = vsel %vm2542_vm1, %v2592_v58, %v2594_v52  ;;  %v2176_v27 = vmul.f32 %v5734_v56, %v7516_v1  ;;  %v7523_v55 = vld [vmem:[#allocation24_spill] sm:$0xff] }
 0x224   : > { %v1876_v5 = vrot.slane %v1315_v17, 7  ;;  %v2177_v29 = vmul.f32 %v5734_v56, %v7518_v61  ;;  %v2761_v41 = vsel %vm2477_vm2, %v2595_v54, 0.0  ;;  %v1647_v43 = vadd.f32 %v1586_v59, %v1516_v16 }
 0x225   : > { %v1648_v40 = vadd.f32 %v1587_v24, %v1517_v21  ;;  %v1878_v8 = vrot.slane %v1316_v26, 7  ;;  %v2825_v45 = vadd.f32 %v2761_v41, %v2105_v35  ;;  %v2244_v42 = vmul.f32 %v5746_v19, %v7519_v49 }
 0x226   : > { %v1877_v23 = vsel %vm1824_vm0, %v1874_v10, %v1876_v5  ;;  %v2245_v30 = vmul.f32 %v5746_v19, %v7520_v2  ;;  %v1718_v1 = vadd.f32 %v5862_v36, %v1647_v43  ;;  %v2378_v10 = vmul.f32 %v5764_v31, %v7521_v22 }
 0x227   : > { %v1719_v38 = vadd.f32 %v5862_v36, %v1648_v40  ;;  %v1879_v47 = vsel %vm1824_vm0, %v1876_v5, %v1878_v8  ;;  %v2042_v13 = vsel %vm1756_vm3, %v1877_v23, 0.0  ;;  %v2876_v15 = vpack.c.bf16 %v2825_v45, %v2824_v39 }
 0x228   : > { %v2308_v60 = vadd.f32 %v2244_v42, %v2176_v27  ;;  %v2309_v35 = vadd.f32 %v2245_v30, %v2177_v29  ;;  %v2106_v34 = vadd.f32 %v2042_v13, %v1718_v1  ;;  %v2379_v18 = vmul.f32 %v5764_v31, %v7522_v0 }
 0x229   : > { %v2107_v20 = vadd.f32 %v1879_v47, %v1719_v38  ;;  %v1054_v37 = vmul.f32 %v5661_v33, %v7518_v61  ;;  %4345 = vmatprep.mubr.bf16.mxu1 %v2876_v15  ;;  %v1055_v58 = vmul.f32 %v5661_v33, %v7519_v49  ;;  %v1122_v14 = vmul.f32 %v5783_v63, %v7520_v2 }
 0x22a   : > { %v2439_v44 = vadd.f32 %v2378_v10, %v2308_v60  ;;  %v1123_v3 = vmul.f32 %v5783_v63, %v7521_v22  ;;  %v6173_v62 = vadd.f32 %v2379_v18, %v2309_v35  ;;  %v1256_v25 = vmul.f32 %v5796_v46, %v7522_v0 }
 0x22b   : > { %v1257_v59 = vmul.f32 %v5796_v46, %v7523_v55  ;;  %v1386_v51 = vmul.f32 %v5678_v6, %v7518_v61  ;;  %v1186_v24 = vadd.f32 %v1122_v14, %v1054_v37  ;;  %v1387_v26 = vmul.f32 %v5678_v6, %v7519_v49 }
 0x22c   : > { %v2596_v17 = vrot.slane %v2439_v44, 1  ;;  %v1187_v39 = vadd.f32 %v1123_v3, %v1055_v58  ;;  %v2598_v16 = vrot.slane %v6173_v62, 1  ;;  %v1454_v21 = vmul.f32 %v5691_v57, %v7520_v2 }
 0x22d   : > { %v1455_v54 = vmul.f32 %v5691_v57, %v7521_v22  ;;  %v1588_v5 = vmul.f32 %v5722_v11, %v7522_v0  ;;  %v1317_v61 = vadd.f32 %v1256_v25, %v1186_v24  ;;  %v1589_v41 = vmul.f32 %v5722_v11, %v7523_v55 }
 0x22e   : > { %v2597_v27 = vsel %vm2542_vm1, %v2594_v52, %v2596_v17  ;;  %v6191_v29 = vadd.f32 %v1257_v59, %v1187_v39  ;;  %v2599_v43 = vsel %vm2542_vm1, %v2596_v17, %v2598_v16  ;;  %v1518_v45 = vadd.f32 %v1454_v21, %v1386_v51 }
 0x22f   : > { %v2826_v40 = vadd.f32 %v2597_v27, %v2106_v34  ;;  %v1519_v23 = vadd.f32 %v1455_v54, %v1387_v26  ;;  %v2763_v42 = vsel %vm2477_vm2, %v2599_v43, 0.0  ;;  %v1880_v30 = vrot.slane %v1317_v61, 7 }
 0x230   : > { %v1882_v1 = vrot.slane %v6191_v29, 7  ;;  %v2178_v52 = vmul.f32 %v5734_v56, %v7519_v49  ;;  %v2827_v38 = vadd.f32 %v2763_v42, %v2107_v20  ;;  %v1649_v47 = vadd.f32 %v1588_v5, %v1518_v45 }
 0x231   : > { %v1650_v13 = vadd.f32 %v1589_v41, %v1519_v23  ;;  %v2179_v15 = vmul.f32 %v5734_v56, %v7520_v2  ;;  %v1881_v60 = vsel %vm1824_vm0, %v1878_v8, %v1880_v30  ;;  %v2246_v10 = vmul.f32 %v5746_v19, %v7521_v22 }
 0x232   : > { %v1883_v35 = vsel %vm1824_vm0, %v1880_v30, %v1882_v1  ;;  %v2247_v34 = vmul.f32 %v5746_v19, %v7522_v0  ;;  %v2877_v18 = vpack.c.bf16 %v2827_v38, %v2826_v40  ;;  %v1720_v37 = vadd.f32 %v5862_v36, %v1649_v47 }
 0x233   : > { %v1721_v49 = vadd.f32 %v5862_v36, %v1650_v13  ;;  %v2044_v20 = vsel %vm1756_vm3, %v1881_v60, 0.0  ;;  %v2310_v44 = vadd.f32 %v2246_v10, %v2178_v52  ;;  %v2380_v8 = vmul.f32 %v5764_v31, %v7523_v55 }
 0x234   : > { %v2311_v58 = vadd.f32 %v2247_v34, %v2179_v15  ;;  %v6216_v14 = vmul.f32 0.0, %v5764_v31  ;;  %4346 = vmatmul.mubr.bf16.gmra.mrb[24].mxu1 %v2877_v18  ;;  %v2108_v3 = vadd.f32 %v2044_v20, %v1720_v37  ;;  %v1056_v25 = vmul.f32 %v5661_v33, %v7520_v2  ;;  %v7524_v34 = vld [vmem:[#allocation27_spill] sm:$0xff]  ;;  %v7525_v37 = vld [vmem:[#allocation26_spill] sm:$0xff] }
 0x235   : > { %v2109_v62 = vadd.f32 %v1883_v35, %v1721_v49  ;;  %v1057_v59 = vmul.f32 %v5661_v33, %v7521_v22  ;;  %v2441_v51 = vadd.f32 %v2380_v8, %v2310_v44  ;;  %v1124_v24 = vmul.f32 %v5783_v63, %v7522_v0 }
 0x236   : > { %v2442_v17 = vadd.f32 %v6216_v14, %v2311_v58  ;;  %v1125_v39 = vmul.f32 %v5783_v63, %v7523_v55  ;;  %v1388_v26 = vmul.f32 %v5678_v6, %v7520_v2  ;;  %v1389_v21 = vmul.f32 %v5678_v6, %v7521_v22 }
 0x237   : > { %v1456_v54 = vmul.f32 %v5691_v57, %v7522_v0  ;;  %v1457_v5 = vmul.f32 %v5691_v57, %v7523_v55  ;;  %v2600_v27 = vrot.slane %v2441_v51, 1  ;;  %v1188_v29 = vadd.f32 %v1124_v24, %v1056_v25  ;;  %v7527_v24 = vld [vmem:[#allocation30_spill] sm:$0xff] }
 0x238   : > { %v2602_v61 = vrot.slane %v2442_v17, 1  ;;  %v1189_v41 = vadd.f32 %v1125_v39, %v1057_v59  ;;  %v6236_v45 = vmul.f32 0.0, %v5722_v11  ;;  %v2180_v2 = vmul.f32 %v5734_v56, %v7521_v22 }
 0x239   : > { %v1520_v43 = vadd.f32 %v1456_v54, %v1388_v26  ;;  %v1521_v40 = vadd.f32 %v1457_v5, %v1389_v21  ;;  %v2601_v23 = vsel %vm2542_vm1, %v2598_v16, %v2600_v27  ;;  %v1319_v0 = vadd.f32 %v5043_v9, %v1188_v29  ;;  %v7528_v21 = vld [vmem:[#allocation12_spill] sm:$0xff]  ;;  %v7529_v5 = vld [vmem:[#allocation29_spill] sm:$0xff] }
 0x23a   : > { %v2603_v42 = vsel %vm2542_vm1, %v2600_v27, %v2602_v61  ;;  %v1320_v30 = vadd.f32 %v5043_v9, %v1189_v41  ;;  %v2828_v38 = vadd.f32 %v2601_v23, %v2108_v3  ;;  %v2248_v22 = vmul.f32 %v5746_v19, %v7523_v55 }
 0x23b   : > { %v2765_v52 = vsel %vm2477_vm2, %v2603_v42, 0.0  ;;  %v1651_v47 = vadd.f32 %v6236_v45, %v1520_v43  ;;  %v1652_v13 = vadd.f32 %v6236_v45, %v1521_v40  ;;  %v1884_v60 = vrot.slane %v1319_v0, 7  ;;  %v7530_v0 = vld [vmem:[#allocation13_spill] sm:$0xff] }
 0x23c   : > { %v2829_v15 = vadd.f32 %v2765_v52, %v2109_v62  ;;  %v1886_v35 = vrot.slane %v1320_v30, 7  ;;  %v2249_v18 = vmul.f32 %v5746_v19, %v7524_v34  ;;  %v2382_v49 = vmul.f32 %v5764_v31, %v7525_v37  ;;  %v7526_v62 = vld [vmem:[#allocation14_spill] sm:$0xff] }
 0x23d   : > { %v1722_v16 = vadd.f32 %v5862_v36, %v1651_v47  ;;  %v1723_v10 = vadd.f32 %v5862_v36, %v1652_v13  ;;  %v1885_v44 = vsel %vm1824_vm0, %v1882_v1, %v1884_v60  ;;  %v2312_v8 = vadd.f32 %v2248_v22, %v2180_v2 }
 0x23e   : > { %v2878_v20 = vpack.c.bf16 %v2829_v15, %v2828_v38  ;;  %v1887_v58 = vsel %vm1824_vm0, %v1884_v60, %v1886_v35  ;;  %v2046_v3 = vsel %vm1756_vm3, %v1885_v44, 0.0  ;;  %v2313_v25 = vadd.f32 %v2249_v18, %v7526_v62 }
 0x23f   : > { %v2111_v55 = vadd.f32 %v1887_v58, %v1723_v10  ;;  %v1126_v59 = vmul.f32 %v5783_v63, %v7524_v34  ;;  %v2110_v51 = vadd.f32 %v2046_v3, %v1722_v16  ;;  %v2443_v17 = vadd.f32 %v6216_v14, %v2312_v8 }
 0x240   : > { %4349 = vmatprep.mubr.bf16.mxu1 %v2878_v20  ;;  %v1127_v39 = vmul.f32 %v5783_v63, %v7527_v24  ;;  %v1259_v1 = vmul.f32 %v5796_v46, %v7525_v37  ;;  %v2444_v26 = vadd.f32 %v2382_v49, %v2313_v25  ;;  %v1260_v27 = vmul.f32 %v5796_v46, %v7529_v5 }
 0x241   : > { %v1190_v54 = vadd.f32 %v1126_v59, %v7528_v21  ;;  %v1458_v29 = vmul.f32 %v5691_v57, %v7524_v34  ;;  %v2604_v41 = vrot.slane %v2443_v17, 1  ;;  %v1459_v40 = vmul.f32 %v5691_v57, %v7527_v24 }
 0x242   : > { %v1191_v43 = vadd.f32 %v1127_v39, %v7528_v21  ;;  %v1591_v2 = vmul.f32 %v5722_v11, %v7525_v37  ;;  %v2606_v23 = vrot.slane %v2444_v26, 1  ;;  %v1592_v52 = vmul.f32 %v5722_v11, %v7529_v5 }
 0x243   : > { %v1321_v42 = vadd.f32 %v1259_v1, %v1190_v54  ;;  %v1522_v30 = vadd.f32 %v1458_v29, %v7530_v0  ;;  %v2605_v38 = vsel %vm2542_vm1, %v2602_v61, %v2604_v41  ;;  %v1523_v13 = vadd.f32 %v1459_v40, %v7530_v0 }
 0x244   : > { %v6282_v47 = vadd.f32 %v1260_v27, %v1191_v43  ;;  %v2181_v15 = vmul.f32 %v5734_v56, %v7524_v34  ;;  %v2607_v60 = vsel %vm2542_vm1, %v2604_v41, %v2606_v23  ;;  %v2830_v22 = vadd.f32 %v2605_v38, %v2110_v51 }
 0x245   : > { %v1653_v16 = vadd.f32 %v1591_v2, %v1522_v30  ;;  %v1888_v10 = vrot.slane %v1321_v42, 7  ;;  %v2767_v18 = vsel %vm2477_vm2, %v2607_v60, 0.0  ;;  %v1654_v49 = vadd.f32 %v1592_v52, %v1523_v13  ;;  %v7532_v42 = vld [vmem:[#allocation34_spill] sm:$0xff] }
 0x246   : > { %v1890_v20 = vrot.slane %v6282_v47, 7  ;;  %v2250_v61 = vmul.f32 %v5746_v19, %v7527_v24  ;;  %v2831_v44 = vadd.f32 %v2767_v18, %v2111_v55  ;;  %v2251_v3 = vmul.f32 %v5746_v19, %v7525_v37 }
 0x247   : > { %v1724_v58 = vadd.f32 %v5862_v36, %v1653_v16  ;;  %v1889_v8 = vsel %vm1824_vm0, %v1886_v35, %v1888_v10  ;;  %v1725_v25 = vadd.f32 %v5862_v36, %v1654_v49  ;;  %v2383_v55 = vmul.f32 %v5764_v31, %v7529_v5  ;;  %v7531_v35 = vld [vmem:[#allocation32_spill] sm:$0xff] }
 0x248   : > { %v1891_v59 = vsel %vm1824_vm0, %v1888_v10, %v1890_v20  ;;  %v2048_v51 = vsel %vm1756_vm3, %v1889_v8, 0.0  ;;  %v2314_v17 = vadd.f32 %v2250_v61, %v7526_v62  ;;  %v2879_v39 = vpack.c.bf16 %v2831_v44, %v2830_v22 }
 0x249   : > { %v2112_v1 = vadd.f32 %v2048_v51, %v1724_v58  ;;  %v2315_v26 = vadd.f32 %v2251_v3, %v2181_v15  ;;  %v2113_v21 = vadd.f32 %v1891_v59, %v1725_v25  ;;  %v2384_v54 = vmul.f32 %v5764_v31, %v7531_v35 }
 0x24a   : > { %v1058_v27 = vmul.f32 %v5661_v33, %v7524_v34  ;;  %v1059_v29 = vmul.f32 %v5661_v33, %v7527_v24  ;;  %4350 = vmatmul.mubr.bf16.gmra.mrb[28].mxu1 %v2879_v39  ;;  %v2445_v41 = vadd.f32 %v2383_v55, %v2314_v17  ;;  %v1128_v62 = vmul.f32 %v5783_v63, %v7525_v37 }
 0x24b   : > { %v1129_v43 = vmul.f32 %v5783_v63, %v7529_v5  ;;  %v1261_v40 = vmul.f32 %v5796_v46, %v7531_v35  ;;  %v6316_v2 = vadd.f32 %v2384_v54, %v2315_v26  ;;  %v1262_v0 = vmul.f32 %v5796_v46, %v7532_v42 }
 0x24c   : > { %v1390_v30 = vmul.f32 %v5678_v6, %v7524_v34  ;;  %v1391_v33 = vmul.f32 %v5678_v6, %v7527_v24  ;;  %v2608_v52 = vrot.slane %v2445_v41, 1  ;;  %v1192_v38 = vadd.f32 %v1128_v62, %v1058_v27  ;;  %v7533_v41 = vld [vmem:[#allocation31_spill] sm:$0xff] }
 0x24d   : > { %v1193_v47 = vadd.f32 %v1129_v43, %v1059_v29  ;;  %v1460_v13 = vmul.f32 %v5691_v57, %v7525_v37  ;;  %v2610_v15 = vrot.slane %v6316_v2, 1  ;;  %v1461_v60 = vmul.f32 %v5691_v57, %v7529_v5 }
 0x24e   : > { %v1593_v22 = vmul.f32 %v5722_v11, %v7531_v35  ;;  %v1594_v34 = vmul.f32 %v5722_v11, %v7532_v42  ;;  %v2609_v16 = vsel %vm2542_vm1, %v2606_v23, %v2608_v52  ;;  %v1323_v6 = vadd.f32 %v1261_v40, %v1192_v38  ;;  %v7534_v38 = vld [vmem:[#allocation33_spill] sm:$0xff] }
 0x24f   : > { %v6334_v10 = vadd.f32 %v1262_v0, %v1193_v47  ;;  %v1524_v18 = vadd.f32 %v1460_v13, %v1390_v30  ;;  %v2611_v49 = vsel %vm2542_vm1, %v2608_v52, %v2610_v15  ;;  %v2832_v61 = vadd.f32 %v2609_v16, %v2112_v1  ;;  %v6380_v13 = vld [vmem:[%s7368_s3 + $0x1] ss:$0 sm:$0xff] }
 0x250   : > { %v1525_v44 = vadd.f32 %v1461_v60, %v1391_v33  ;;  %v2182_v58 = vmul.f32 %v5734_v56, %v7527_v24  ;;  %v2769_v57 = vsel %vm2477_vm2, %v2611_v49, 0.0  ;;  %v1892_v3 = vrot.slane %v1323_v6, 7  ;;  %v6390_v6 = vld [vmem:[%s7368_s3 + $0x4] ss:$0 sm:$0xff] }
 0x251   : > { %v1655_v8 = vadd.f32 %v1593_v22, %v1524_v18  ;;  %v1894_v11 = vrot.slane %v6334_v10, 7  ;;  %v2833_v25 = vadd.f32 %v2769_v57, %v2113_v21  ;;  %v2183_v59 = vmul.f32 %v5734_v56, %v7525_v37 }
 0x252   : > { %v1656_v23 = vadd.f32 %v1594_v34, %v1525_v44  ;;  %v2252_v51 = vmul.f32 %v5746_v19, %v7529_v5  ;;  %v1893_v39 = vsel %vm1824_vm0, %v1890_v20, %v1892_v3  ;;  %v2253_v1 = vmul.f32 %v5746_v19, %v7531_v35  ;;  %v6361_v19 = vld [vmem:[%s7368_s3] ss:$0 sm:$0xff] }
 0x253   : > { %v1726_v17 = vadd.f32 %v5862_v36, %v1655_v8  ;;  %v1895_v24 = vsel %vm1824_vm0, %v1892_v3, %v1894_v11  ;;  %v2880_v26 = vpack.c.bf16 %v2833_v25, %v2832_v61  ;;  %v2050_v21 = vsel %vm1756_vm3, %v1893_v39, 0.0 }
 0x254   : > { %v1727_v55 = vadd.f32 %v5862_v36, %v1656_v23  ;;  %v2316_v54 = vadd.f32 %v2252_v51, %v2182_v58  ;;  %v2317_v27 = vadd.f32 %v2253_v1, %v2183_v59  ;;  %v2385_v29 = vmul.f32 %v5764_v31, %v7532_v42 }
 0x255   : > { %v2114_v56 = vadd.f32 %v2050_v21, %v1726_v17  ;;  %v2386_v20 = vmul.f32 %v5764_v31, %v7533_v41  ;;  %4353 = vmatprep.mubr.bf16.mxu1 %v2880_v26  ;;  %v1060_v43 = vmul.f32 %v6361_v19, %v7525_v37  ;;  %v1061_v40 = vmul.f32 %v6361_v19, %v7529_v5  ;;  %v6425_v21 = vld [vmem:[%s7368_s3 + $0x5] ss:$0 sm:$0xff] }
 0x256   : > { %v2115_v62 = vadd.f32 %v1895_v24, %v1727_v55  ;;  %v1130_v2 = vmul.f32 %v5783_v63, %v7531_v35  ;;  %v2447_v0 = vadd.f32 %v2385_v29, %v2316_v54  ;;  %v1131_v31 = vmul.f32 %v5783_v63, %v7532_v42  ;;  %v6415_v24 = vld [vmem:[%s7368_s3 + $0x2] ss:$0 sm:$0xff] }
 0x257   : > { %v6369_v30 = vadd.f32 %v2386_v20, %v2317_v27  ;;  %v1263_v33 = vmul.f32 %v5796_v46, %v7533_v41  ;;  %v1264_v47 = vmul.f32 %v5796_v46, %v7534_v38  ;;  %v1392_v60 = vmul.f32 %v6380_v13, %v7525_v37  ;;  %v6399_v37 = vld [vmem:[%s7368_s3 + $0x7] ss:$0 sm:$0xff] }
 0x258   : > { %v1194_v52 = vadd.f32 %v1130_v2, %v1060_v43  ;;  %v1393_v22 = vmul.f32 %v6380_v13, %v7529_v5  ;;  %v2612_v34 = vrot.slane %v2447_v0, 1  ;;  %v1195_v16 = vadd.f32 %v1131_v31, %v1061_v40  ;;  %v6439_v43 = vld [vmem:[%s7368_s3 + $0x8] ss:$0 sm:$0xff] }
 0x259   : > { %v2614_v63 = vrot.slane %v6369_v30, 1  ;;  %v1462_v46 = vmul.f32 %v6390_v6, %v7531_v35  ;;  %v1463_v18 = vmul.f32 %v6390_v6, %v7532_v42  ;;  %v1595_v49 = vmul.f32 %v6399_v37, %v7533_v41 }
 0x25a   : > { %v1325_v10 = vadd.f32 %v1263_v33, %v1194_v52  ;;  %v1596_v61 = vmul.f32 %v6399_v37, %v7534_v38  ;;  %v2613_v44 = vsel %vm2542_vm1, %v2610_v15, %v2612_v34  ;;  %v6407_v57 = vadd.f32 %v1264_v47, %v1195_v16  ;;  %v6452_v47 = vld [vmem:[%s7368_s3 + $0x3] ss:$0 sm:$0xff] }
 0x25b   : > { %v2615_v58 = vsel %vm2542_vm1, %v2612_v34, %v2614_v63  ;;  %v1526_v8 = vadd.f32 %v1462_v46, %v1392_v60  ;;  %v2834_v25 = vadd.f32 %v2613_v44, %v2114_v56  ;;  %v1527_v23 = vadd.f32 %v1463_v18, %v1393_v22  ;;  %v6461_v34 = vld [vmem:[%s7368_s3 + $0x6] ss:$0 sm:$0xff] }
 0x25c   : > { %v2771_v3 = vsel %vm2477_vm2, %v2615_v58, 0.0  ;;  %v1896_v59 = vrot.slane %v1325_v10, 7  ;;  %v1898_v39 = vrot.slane %v6407_v57, 7  ;;  %v2184_v15 = vmul.f32 %v6415_v24, %v7529_v5 }
 0x25d   : > { %v2835_v51 = vadd.f32 %v2771_v3, %v2115_v62  ;;  %v1657_v17 = vadd.f32 %v1595_v49, %v1526_v8  ;;  %v1658_v1 = vadd.f32 %v1596_v61, %v1527_v23  ;;  %v2185_v55 = vmul.f32 %v6415_v24, %v7531_v35 }
 0x25e   : > { %v1897_v26 = vsel %vm1824_vm0, %v1894_v11, %v1896_v59  ;;  %v2254_v54 = vmul.f32 %v6425_v21, %v7532_v42  ;;  %v1899_v29 = vsel %vm1824_vm0, %v1896_v59, %v1898_v39  ;;  %v2255_v20 = vmul.f32 %v6425_v21, %v7533_v41 }
 0x25f   : > { %v2881_v56 = vpack.c.bf16 %v2835_v51, %v2834_v25  ;;  %v1728_v27 = vadd.f32 %v5862_v36, %v1657_v17  ;;  %v2052_v5 = vsel %vm1756_vm3, %v1897_v26, 0.0  ;;  %v1729_v11 = vadd.f32 %v5862_v36, %v1658_v1 }
 0x260   : > { %v2318_v62 = vadd.f32 %v2254_v54, %v2184_v15  ;;  %v2387_v40 = vmul.f32 %v6439_v43, %v7534_v38  ;;  %v2388_v0 = vmul.f32 %v6439_v43, %v5507_v32  ;;  %v1062_v36 = vmul.f32 %v6361_v19, %v7531_v35 }
 0x261   : > { %4354 = vmatmul.mubr.bf16.gmra.mrb[32].mxu1 %v2881_v56  ;;  %v2116_v2 = vadd.f32 %v2052_v5, %v1728_v27  ;;  %v1063_v30 = vmul.f32 %v6361_v19, %v7532_v42  ;;  %v2117_v31 = vadd.f32 %v1899_v29, %v1729_v11  ;;  %v2319_v33 = vadd.f32 %v2255_v20, %v2185_v55 }
 0x262   : > { %v2449_v52 = vadd.f32 %v2387_v40, %v2318_v62  ;;  %v1132_v60 = vmul.f32 %v6452_v47, %v7533_v41  ;;  %v1133_v22 = vmul.f32 %v6452_v47, %v7534_v38  ;;  %v1265_v16 = vmul.f32 %v6461_v34, %v5507_v32 }
 0x263   : > { %v1266_v46 = vmul.f32 %v6461_v34, %v5521_v53  ;;  %v1394_v10 = vmul.f32 %v6380_v13, %v7531_v35  ;;  %v2450_v18 = vadd.f32 %v2388_v0, %v2319_v33  ;;  %v1395_v44 = vmul.f32 %v6380_v13, %v7532_v42 }
 0x264   : > { %v2616_v49 = vrot.slane %v2449_v52, 1  ;;  %v1196_v61 = vadd.f32 %v1132_v60, %v1062_v36  ;;  %v1197_v58 = vadd.f32 %v1133_v22, %v1063_v30  ;;  %v1464_v57 = vmul.f32 %v6390_v6, %v7533_v41 }
 0x265   : > { %v1465_v8 = vmul.f32 %v6390_v6, %v7534_v38  ;;  %v1597_v3 = vmul.f32 %v6399_v37, %v5507_v32  ;;  %v2618_v23 = vrot.slane %v2450_v18, 1  ;;  %v1598_v59 = vmul.f32 %v6399_v37, %v5521_v53 }
 0x266   : > { %v2617_v25 = vsel %vm2542_vm1, %v2614_v63, %v2616_v49  ;;  %v1327_v35 = vadd.f32 %v1265_v16, %v1196_v61  ;;  %v6480_v17 = vadd.f32 %v1266_v46, %v1197_v58  ;;  %v1528_v15 = vadd.f32 %v1464_v57, %v1394_v10  ;;  %v7535_v16 = vld [vmem:[#allocation35_spill] sm:$0xff] }
 0x267   : > { %v2836_v51 = vadd.f32 %v2617_v25, %v2116_v2  ;;  %v1529_v1 = vadd.f32 %v1465_v8, %v1395_v44  ;;  %v2619_v26 = vsel %vm2542_vm1, %v2616_v49, %v2618_v23  ;;  %v2186_v54 = vmul.f32 %v6415_v24, %v7532_v42  ;;  %v6498_v42 = vld [vmem:[%s7369_s4] ss:$0 sm:$0xff] }
 0x268   : > { %v1900_v55 = vrot.slane %v1327_v35, 7  ;;  %v2187_v56 = vmul.f32 %v6415_v24, %v7533_v41  ;;  %v2773_v63 = vsel %vm2477_vm2, %v2619_v26, 0.0  ;;  %v1659_v27 = vadd.f32 %v1597_v3, %v1528_v15  ;;  %v7536_v8 = vld [vmem:[#allocation36_spill] sm:$0xff] }
 0x269   : > { %v1660_v29 = vadd.f32 %v1598_v59, %v1529_v1  ;;  %v1902_v5 = vrot.slane %v6480_v17, 7  ;;  %v2837_v11 = vadd.f32 %v2773_v63, %v2117_v31  ;;  %v2256_v62 = vmul.f32 %v6425_v21, %v7534_v38 }
 0x26a   : > { %v1901_v20 = vsel %vm1824_vm0, %v1898_v39, %v1900_v55  ;;  %v2257_v40 = vmul.f32 %v6425_v21, %v5507_v32  ;;  %v1730_v2 = vadd.f32 %v6498_v42, %v1659_v27  ;;  %v2389_v52 = vmul.f32 %v6439_v43, %v5521_v53 }
 0x26b   : > { %v1731_v0 = vadd.f32 %v6498_v42, %v1660_v29  ;;  %v1903_v36 = vsel %vm1824_vm0, %v1900_v55, %v1902_v5  ;;  %v2054_v39 = vsel %vm1756_vm3, %v1901_v20, 0.0  ;;  %v2882_v30 = vpack.c.bf16 %v2837_v11, %v2836_v51 }
 0x26c   : > { %v2320_v31 = vadd.f32 %v2256_v62, %v2186_v54  ;;  %v2321_v33 = vadd.f32 %v2257_v40, %v2187_v56  ;;  %v2118_v60 = vadd.f32 %v2054_v39, %v1730_v2  ;;  %v2390_v46 = vmul.f32 %v6439_v43, %v7535_v16 }
 0x26d   : > { %v2119_v22 = vadd.f32 %v1903_v36, %v1731_v0  ;;  %v1064_v10 = vmul.f32 %v6361_v19, %v7533_v41  ;;  %4357 = vmatprep.mubr.bf16.mxu1 %v2882_v30  ;;  %v1065_v49 = vmul.f32 %v6361_v19, %v7534_v38  ;;  %v1134_v61 = vmul.f32 %v6452_v47, %v5507_v32 }
 0x26e   : > { %v2451_v18 = vadd.f32 %v2389_v52, %v2320_v31  ;;  %v1135_v44 = vmul.f32 %v6452_v47, %v5521_v53  ;;  %v6517_v58 = vadd.f32 %v2390_v46, %v2321_v33  ;;  %v1267_v57 = vmul.f32 %v6461_v34, %v7535_v16 }
 0x26f   : > { %v1268_v3 = vmul.f32 %v6461_v34, %v7536_v8  ;;  %v1396_v25 = vmul.f32 %v6380_v13, %v7533_v41  ;;  %v1198_v59 = vadd.f32 %v1134_v61, %v1064_v10  ;;  %v1397_v17 = vmul.f32 %v6380_v13, %v7534_v38  ;;  %v7537_v61 = vld [vmem:[#allocation38_spill] sm:$0xff] }
 0x270   : > { %v2620_v35 = vrot.slane %v2451_v18, 1  ;;  %v1199_v51 = vadd.f32 %v1135_v44, %v1065_v49  ;;  %v2622_v15 = vrot.slane %v6517_v58, 1  ;;  %v1466_v1 = vmul.f32 %v6390_v6, %v5507_v32 }
 0x271   : > { %v1467_v26 = vmul.f32 %v6390_v6, %v5521_v53  ;;  %v1599_v55 = vmul.f32 %v6399_v37, %v7535_v16  ;;  %v1329_v41 = vadd.f32 %v1267_v57, %v1198_v59  ;;  %v1600_v63 = vmul.f32 %v6399_v37, %v7536_v8 }
 0x272   : > { %v2621_v54 = vsel %vm2542_vm1, %v2618_v23, %v2620_v35  ;;  %v6535_v56 = vadd.f32 %v1268_v3, %v1199_v51  ;;  %v2623_v27 = vsel %vm2542_vm1, %v2620_v35, %v2622_v15  ;;  %v1530_v11 = vadd.f32 %v1466_v1, %v1396_v25 }
 0x273   : > { %v2838_v29 = vadd.f32 %v2621_v54, %v2118_v60  ;;  %v1531_v20 = vadd.f32 %v1467_v26, %v1397_v17  ;;  %v2775_v62 = vsel %vm2477_vm2, %v2623_v27, 0.0  ;;  %v1904_v40 = vrot.slane %v1329_v41, 7  ;;  %v7538_v26 = vld [vmem:[#allocation40_spill] sm:$0xff] }
 0x274   : > { %v1906_v2 = vrot.slane %v6535_v56, 7  ;;  %v2188_v23 = vmul.f32 %v6415_v24, %v7534_v38  ;;  %v2839_v0 = vadd.f32 %v2775_v62, %v2119_v22  ;;  %v1661_v36 = vadd.f32 %v1599_v55, %v1530_v11 }
 0x275   : > { %v1662_v39 = vadd.f32 %v1600_v63, %v1531_v20  ;;  %v2189_v30 = vmul.f32 %v6415_v24, %v5507_v32  ;;  %v1905_v31 = vsel %vm1824_vm0, %v1902_v5, %v1904_v40  ;;  %v2258_v52 = vmul.f32 %v6425_v21, %v5521_v53 }
 0x276   : > { %v1907_v33 = vsel %vm1824_vm0, %v1904_v40, %v1906_v2  ;;  %v2259_v60 = vmul.f32 %v6425_v21, %v7535_v16  ;;  %v2883_v46 = vpack.c.bf16 %v2839_v0, %v2838_v29  ;;  %v1732_v10 = vadd.f32 %v6498_v42, %v1661_v36 }
 0x277   : > { %v1733_v38 = vadd.f32 %v6498_v42, %v1662_v39  ;;  %v2056_v22 = vsel %vm1756_vm3, %v1905_v31, 0.0  ;;  %v2322_v18 = vadd.f32 %v2258_v52, %v2188_v23  ;;  %v2391_v5 = vmul.f32 %v6439_v43, %v7536_v8 }
 0x278   : > { %v2323_v49 = vadd.f32 %v2259_v60, %v2189_v30  ;;  %v2392_v44 = vmul.f32 %v6439_v43, %v7537_v61  ;;  %4358 = vmatmul.mubr.bf16.gmra.mrb[36].mxu1 %v2883_v46  ;;  %v2120_v58 = vadd.f32 %v2056_v22, %v1732_v10  ;;  %v1066_v3 = vmul.f32 %v6361_v19, %v5507_v32 }
 0x279   : > { %v2121_v57 = vadd.f32 %v1907_v33, %v1733_v38  ;;  %v1067_v25 = vmul.f32 %v6361_v19, %v5521_v53  ;;  %v2453_v35 = vadd.f32 %v2391_v5, %v2322_v18  ;;  %v1136_v51 = vmul.f32 %v6452_v47, %v7535_v16 }
 0x27a   : > { %v6565_v59 = vadd.f32 %v2392_v44, %v2323_v49  ;;  %v1137_v17 = vmul.f32 %v6452_v47, %v7536_v8  ;;  %v1269_v1 = vmul.f32 %v6461_v34, %v7537_v61  ;;  %v1270_v55 = vmul.f32 %v6461_v34, %v7538_v26 }
 0x27b   : > { %v1398_v54 = vmul.f32 %v6380_v13, %v5507_v32  ;;  %v1399_v41 = vmul.f32 %v6380_v13, %v5521_v53  ;;  %v2624_v56 = vrot.slane %v2453_v35, 1  ;;  %v1200_v27 = vadd.f32 %v1136_v51, %v1066_v3  ;;  %v7539_v51 = vld [vmem:[#allocation37_spill] sm:$0xff] }
 0x27c   : > { %v2626_v63 = vrot.slane %v6565_v59, 1  ;;  %v1201_v29 = vadd.f32 %v1137_v17, %v1067_v25  ;;  %v1468_v11 = vmul.f32 %v6390_v6, %v7535_v16  ;;  %v1469_v20 = vmul.f32 %v6390_v6, %v7536_v8 }
 0x27d   : > { %v1601_v62 = vmul.f32 %v6399_v37, %v7537_v61  ;;  %v1602_v32 = vmul.f32 %v6399_v37, %v7538_v26  ;;  %v2625_v40 = vsel %vm2542_vm1, %v2622_v15, %v2624_v56  ;;  %v1331_v0 = vadd.f32 %v1269_v1, %v1200_v27 }
 0x27e   : > { %v2627_v23 = vsel %vm2542_vm1, %v2624_v56, %v2626_v63  ;;  %v1332_v36 = vadd.f32 %v1270_v55, %v1201_v29  ;;  %v2840_v30 = vadd.f32 %v2625_v40, %v2120_v58  ;;  %v1532_v31 = vadd.f32 %v1468_v11, %v1398_v54 }
 0x27f   : > { %v2777_v39 = vsel %vm2477_vm2, %v2627_v23, 0.0  ;;  %v1533_v33 = vadd.f32 %v1469_v20, %v1399_v41  ;;  %v1908_v60 = vrot.slane %v1331_v0, 7  ;;  %v2190_v10 = vmul.f32 %v6415_v24, %v5521_v53 }
 0x280   : > { %v2841_v52 = vadd.f32 %v2777_v39, %v2121_v57  ;;  %v1910_v46 = vrot.slane %v1332_v36, 7  ;;  %v1663_v38 = vadd.f32 %v1601_v62, %v1532_v31  ;;  %v2191_v15 = vmul.f32 %v6415_v24, %v7535_v16  ;;  %v7540_v62 = vld [vmem:[#allocation39_spill] sm:$0xff] }
 0x281   : > { %v1664_v22 = vadd.f32 %v1602_v32, %v1533_v33  ;;  %v2260_v18 = vmul.f32 %v6425_v21, %v7536_v8  ;;  %v1909_v5 = vsel %vm1824_vm0, %v1906_v2, %v1908_v60  ;;  %v2261_v58 = vmul.f32 %v6425_v21, %v7537_v61 }
 0x282   : > { %v2884_v49 = vpack.c.bf16 %v2841_v52, %v2840_v30  ;;  %v1911_v44 = vsel %vm1824_vm0, %v1908_v60, %v1910_v46  ;;  %v1734_v57 = vadd.f32 %v6498_v42, %v1663_v38  ;;  %v2058_v3 = vsel %vm1756_vm3, %v1909_v5, 0.0 }
 0x283   : > { %v1735_v53 = vadd.f32 %v6498_v42, %v1664_v22  ;;  %v2324_v25 = vadd.f32 %v2260_v18, %v2190_v10  ;;  %v2325_v35 = vadd.f32 %v2261_v58, %v2191_v15  ;;  %v2393_v59 = vmul.f32 %v6439_v43, %v7538_v26 }
 0x284   : > { %4361 = vmatprep.mubr.bf16.mxu1 %v2884_v49  ;;  %v2394_v2 = vmul.f32 %v6439_v43, %v7539_v51  ;;  %v1068_v17 = vmul.f32 %v6361_v19, %v7535_v16  ;;  %v2122_v1 = vadd.f32 %v2058_v3, %v1734_v57  ;;  %v1069_v54 = vmul.f32 %v6361_v19, %v7536_v8 }
 0x285   : > { %v2123_v55 = vadd.f32 %v1911_v44, %v1735_v53  ;;  %v1138_v41 = vmul.f32 %v6452_v47, %v7537_v61  ;;  %v2455_v56 = vadd.f32 %v2393_v59, %v2324_v25  ;;  %v1139_v29 = vmul.f32 %v6452_v47, %v7538_v26 }
 0x286   : > { %v2456_v27 = vadd.f32 %v2394_v2, %v2325_v35  ;;  %v1271_v11 = vmul.f32 %v6461_v34, %v7539_v51  ;;  %v1272_v32 = vmul.f32 %v6461_v34, %v7540_v62  ;;  %v1400_v40 = vmul.f32 %v6380_v13, %v7535_v16 }
 0x287   : > { %v1202_v20 = vadd.f32 %v1138_v41, %v1068_v17  ;;  %v1401_v23 = vmul.f32 %v6380_v13, %v7536_v8  ;;  %v2628_v0 = vrot.slane %v2455_v56, 1  ;;  %v1203_v39 = vadd.f32 %v1139_v29, %v1069_v54 }
 0x288   : > { %v2630_v36 = vrot.slane %v2456_v27, 1  ;;  %v1470_v30 = vmul.f32 %v6390_v6, %v7537_v61  ;;  %v1471_v33 = vmul.f32 %v6390_v6, %v7538_v26  ;;  %v1603_v52 = vmul.f32 %v6399_v37, %v7539_v51 }
 0x289   : > { %v1333_v31 = vadd.f32 %v1271_v11, %v1202_v20  ;;  %v1604_v60 = vmul.f32 %v6399_v37, %v7540_v62  ;;  %v2629_v16 = vsel %vm2542_vm1, %v2626_v63, %v2628_v0  ;;  %v1334_v38 = vadd.f32 %v1272_v32, %v1203_v39 }
 0x28a   : > { %v2631_v10 = vsel %vm2542_vm1, %v2628_v0, %v2630_v36  ;;  %v1534_v22 = vadd.f32 %v1470_v30, %v1400_v40  ;;  %v2842_v18 = vadd.f32 %v2629_v16, %v2122_v1  ;;  %v1535_v49 = vadd.f32 %v1471_v33, %v1401_v23 }
 0x28b   : > { %v2779_v15 = vsel %vm2477_vm2, %v2631_v10, 0.0  ;;  %v1912_v5 = vrot.slane %v1333_v31, 7  ;;  %v1914_v57 = vrot.slane %v1334_v38, 7  ;;  %v2192_v53 = vmul.f32 %v6415_v24, %v7536_v8 }
 0x28c   : > { %v2843_v44 = vadd.f32 %v2779_v15, %v2123_v55  ;;  %v1665_v58 = vadd.f32 %v1603_v52, %v1534_v22  ;;  %v1666_v3 = vadd.f32 %v1604_v60, %v1535_v49  ;;  %v2193_v63 = vmul.f32 %v6415_v24, %v7537_v61 }
 0x28d   : > { %v1913_v25 = vsel %vm1824_vm0, %v1910_v46, %v1912_v5  ;;  %v2262_v35 = vmul.f32 %v6425_v21, %v7538_v26  ;;  %v1915_v17 = vsel %vm1824_vm0, %v1912_v5, %v1914_v57  ;;  %v2263_v8 = vmul.f32 %v6425_v21, %v7539_v51 }
 0x28e   : > { %v2885_v59 = vpack.c.bf16 %v2843_v44, %v2842_v18  ;;  %v1736_v2 = vadd.f32 %v6498_v42, %v1665_v58  ;;  %v2060_v1 = vsel %vm1756_vm3, %v1913_v25, 0.0  ;;  %v1737_v55 = vadd.f32 %v6498_v42, %v1666_v3 }
 0x28f   : > { %v2326_v46 = vadd.f32 %v2262_v35, %v2192_v53  ;;  %v2395_v54 = vmul.f32 %v6439_v43, %v7540_v62  ;;  %v2396_v56 = vmul.f32 %v6439_v43, %v5600_v12  ;;  %v1070_v27 = vmul.f32 %v6361_v19, %v7537_v61 }
 0x290   : > { %4362 = vmatmul.mubr.bf16.gmra.mrb[40].mxu1 %v2885_v59  ;;  %v2124_v41 = vadd.f32 %v2060_v1, %v1736_v2  ;;  %v1071_v29 = vmul.f32 %v6361_v19, %v7538_v26  ;;  %v2125_v11 = vadd.f32 %v1915_v17, %v1737_v55  ;;  %v2327_v20 = vadd.f32 %v2263_v8, %v2193_v63 }
 0x291   : > { %v2457_v32 = vadd.f32 %v2395_v54, %v2326_v46  ;;  %v1140_v40 = vmul.f32 %v6452_v47, %v7539_v51  ;;  %v1141_v23 = vmul.f32 %v6452_v47, %v7540_v62  ;;  %v1273_v0 = vmul.f32 %v6461_v34, %v5600_v12 }
 0x292   : > { %v1274_v39 = vmul.f32 %v6461_v34, %v5613_v28  ;;  %v1402_v30 = vmul.f32 %v6380_v13, %v7537_v61  ;;  %v2458_v31 = vadd.f32 %v2396_v56, %v2327_v20  ;;  %v1403_v60 = vmul.f32 %v6380_v13, %v7538_v26 }
 0x293   : > { %v2632_v33 = vrot.slane %v2457_v32, 1  ;;  %v1204_v52 = vadd.f32 %v1140_v40, %v1070_v27  ;;  %v1205_v16 = vadd.f32 %v1141_v23, %v1071_v29  ;;  %v1472_v10 = vmul.f32 %v6390_v6, %v7539_v51  ;;  %v7541_v40 = vld [vmem:[#allocation41_spill] sm:$0xff] }
 0x294   : > { %v1473_v38 = vmul.f32 %v6390_v6, %v7540_v62  ;;  %v1605_v22 = vmul.f32 %v6399_v37, %v5600_v12  ;;  %v2634_v18 = vrot.slane %v2458_v31, 1  ;;  %v1606_v49 = vmul.f32 %v6399_v37, %v5613_v28 }
 0x295   : > { %v2633_v15 = vsel %vm2542_vm1, %v2630_v36, %v2632_v33  ;;  %v1335_v61 = vadd.f32 %v1273_v0, %v1204_v52  ;;  %v1336_v44 = vadd.f32 %v1274_v39, %v1205_v16  ;;  %v1536_v58 = vadd.f32 %v1472_v10, %v1402_v30 }
 0x296   : > { %v2844_v5 = vadd.f32 %v2633_v15, %v2124_v41  ;;  %v1537_v53 = vadd.f32 %v1473_v38, %v1403_v60  ;;  %v2635_v3 = vsel %vm2542_vm1, %v2632_v33, %v2634_v18  ;;  %v2194_v63 = vmul.f32 %v6415_v24, %v7538_v26 }
 0x297   : > { %v1916_v25 = vrot.slane %v1335_v61, 7  ;;  %v2195_v35 = vmul.f32 %v6415_v24, %v7539_v51  ;;  %v2781_v36 = vsel %vm2477_vm2, %v2635_v3, 0.0  ;;  %v1667_v59 = vadd.f32 %v1605_v22, %v1536_v58 }
 0x298   : > { %v1668_v2 = vadd.f32 %v1606_v49, %v1537_v53  ;;  %v1918_v17 = vrot.slane %v1336_v44, 7  ;;  %v2845_v1 = vadd.f32 %v2781_v36, %v2125_v11  ;;  %v2264_v8 = vmul.f32 %v6425_v21, %v7540_v62 }
 0x299   : > { %v1917_v55 = vsel %vm1824_vm0, %v1914_v57, %v1916_v25  ;;  %v2265_v46 = vmul.f32 %v6425_v21, %v5600_v12  ;;  %v1738_v26 = vadd.f32 %v6498_v42, %v1667_v59  ;;  %v2397_v57 = vmul.f32 %v6439_v43, %v5613_v28 }
 0x29a   : > { %v1739_v54 = vadd.f32 %v6498_v42, %v1668_v2  ;;  %v1919_v41 = vsel %vm1824_vm0, %v1916_v25, %v1918_v17  ;;  %v2062_v56 = vsel %vm1756_vm3, %v1917_v55, 0.0  ;;  %v2886_v27 = vpack.c.bf16 %v2845_v1, %v2844_v5 }
 0x29b   : > { %v2328_v29 = vadd.f32 %v2264_v8, %v2194_v63  ;;  %v2329_v11 = vadd.f32 %v2265_v46, %v2195_v35  ;;  %v2126_v20 = vadd.f32 %v2062_v56, %v1738_v26  ;;  %v2398_v23 = vmul.f32 %v6439_v43, %v7541_v40 }
 0x29c   : > { %v2127_v32 = vadd.f32 %v1919_v41, %v1739_v54  ;;  %v1072_v0 = vmul.f32 %v6361_v19, %v7539_v51  ;;  %4365 = vmatprep.mubr.bf16.mxu1 %v2886_v27  ;;  %v1073_v30 = vmul.f32 %v6361_v19, %v7540_v62  ;;  %v1142_v31 = vmul.f32 %v6452_v47, %v5600_v12 }
 0x29d   : > { %v2459_v39 = vadd.f32 %v2397_v57, %v2328_v29  ;;  %v1143_v33 = vmul.f32 %v6452_v47, %v5613_v28  ;;  %v6710_v52 = vadd.f32 %v2398_v23, %v2329_v11  ;;  %v1275_v60 = vmul.f32 %v6461_v34, %v7541_v40 }
 0x29e   : > { %v1276_v16 = vmul.f32 %v6461_v34, %v5607_v4  ;;  %v1404_v10 = vmul.f32 %v6380_v13, %v7539_v51  ;;  %v1206_v22 = vadd.f32 %v1142_v31, %v1072_v0  ;;  %v1405_v61 = vmul.f32 %v6380_v13, %v7540_v62  ;;  %v7542_v0 = vld [vmem:[#allocation43_spill] sm:$0xff] }
 0x29f   : > { %v2636_v38 = vrot.slane %v2459_v39, 1  ;;  %v1207_v15 = vadd.f32 %v1143_v33, %v1073_v30  ;;  %v2638_v49 = vrot.slane %v6710_v52, 1  ;;  %v1474_v5 = vmul.f32 %v6390_v6, %v5600_v12 }
 0x2a0   : > { %v1475_v44 = vmul.f32 %v6390_v6, %v5613_v28  ;;  %v1607_v58 = vmul.f32 %v6399_v37, %v7541_v40  ;;  %v1337_v51 = vadd.f32 %v1275_v60, %v1206_v22  ;;  %v1608_v25 = vmul.f32 %v6399_v37, %v5607_v4 }
 0x2a1   : > { %v2637_v53 = vsel %vm2542_vm1, %v2634_v18, %v2636_v38  ;;  %v6728_v3 = vadd.f32 %v1276_v16, %v1207_v15  ;;  %v2639_v63 = vsel %vm2542_vm1, %v2636_v38, %v2638_v49  ;;  %v1538_v36 = vadd.f32 %v1474_v5, %v1404_v10  ;;  %v7543_v15 = vld [vmem:[#allocation45_spill] sm:$0xff] }
 0x2a2   : > { %v2846_v35 = vadd.f32 %v2637_v53, %v2126_v20  ;;  %v1539_v59 = vadd.f32 %v1475_v44, %v1405_v61  ;;  %v2783_v2 = vsel %vm2477_vm2, %v2639_v63, 0.0  ;;  %v1920_v1 = vrot.slane %v1337_v51, 7 }
 0x2a3   : > { %v1922_v55 = vrot.slane %v6728_v3, 7  ;;  %v2196_v18 = vmul.f32 %v6415_v24, %v7540_v62  ;;  %v2847_v8 = vadd.f32 %v2783_v2, %v2127_v32  ;;  %v1669_v46 = vadd.f32 %v1607_v58, %v1538_v36 }
 0x2a4   : > { %v1670_v26 = vadd.f32 %v1608_v25, %v1539_v59  ;;  %v2197_v54 = vmul.f32 %v6415_v24, %v5600_v12  ;;  %v1921_v41 = vsel %vm1824_vm0, %v1918_v17, %v1920_v1  ;;  %v2266_v27 = vmul.f32 %v6425_v21, %v5613_v28 }
 0x2a5   : > { %v1923_v56 = vsel %vm1824_vm0, %v1920_v1, %v1922_v55  ;;  %v2267_v29 = vmul.f32 %v6425_v21, %v7541_v40  ;;  %v2887_v11 = vpack.c.bf16 %v2847_v8, %v2846_v35  ;;  %v1740_v57 = vadd.f32 %v6498_v42, %v1669_v46 }
 0x2a6   : > { %v1741_v62 = vadd.f32 %v6498_v42, %v1670_v26  ;;  %v2064_v20 = vsel %vm1756_vm3, %v1921_v41, 0.0  ;;  %v2330_v32 = vadd.f32 %v2266_v27, %v2196_v18  ;;  %v2399_v17 = vmul.f32 %v6439_v43, %v5607_v4 }
 0x2a7   : > { %v2331_v23 = vadd.f32 %v2267_v29, %v2197_v54  ;;  %v2400_v39 = vmul.f32 %v6439_v43, %v7542_v0  ;;  %4366 = vmatmul.mubr.bf16.gmra.mrb[44].mxu1 %v2887_v11  ;;  %v2128_v30 = vadd.f32 %v2064_v20, %v1740_v57  ;;  %v1074_v33 = vmul.f32 %v6361_v19, %v5600_v12 }
 0x2a8   : > { %v2129_v31 = vadd.f32 %v1923_v56, %v1741_v62  ;;  %v1075_v52 = vmul.f32 %v6361_v19, %v5613_v28  ;;  %v2461_v60 = vadd.f32 %v2399_v17, %v2330_v32  ;;  %v1144_v10 = vmul.f32 %v6452_v47, %v7541_v40 }
 0x2a9   : > { %v6758_v16 = vadd.f32 %v2400_v39, %v2331_v23  ;;  %v1145_v38 = vmul.f32 %v6452_v47, %v5607_v4  ;;  %v1277_v22 = vmul.f32 %v6461_v34, %v7542_v0  ;;  %v1278_v61 = vmul.f32 %v6461_v34, %v7543_v15 }
 0x2aa   : > { %v1406_v5 = vmul.f32 %v6380_v13, %v5600_v12  ;;  %v1407_v44 = vmul.f32 %v6380_v13, %v5613_v28  ;;  %v2640_v58 = vrot.slane %v2461_v60, 1  ;;  %v1208_v51 = vadd.f32 %v1144_v10, %v1074_v33 }
 0x2ab   : > { %v2642_v53 = vrot.slane %v6758_v16, 1  ;;  %v1209_v3 = vadd.f32 %v1145_v38, %v1075_v52  ;;  %v1476_v25 = vmul.f32 %v6390_v6, %v7541_v40  ;;  %v1477_v63 = vmul.f32 %v6390_v6, %v5607_v4  ;;  %v7544_v52 = vld [vmem:[#allocation42_spill] sm:$0xff] }
 0x2ac   : > { %v1609_v35 = vmul.f32 %v6399_v37, %v7542_v0  ;;  %v1610_v12 = vmul.f32 %v6399_v37, %v7543_v15  ;;  %v2641_v36 = vsel %vm2542_vm1, %v2638_v49, %v2640_v58  ;;  %v1339_v2 = vadd.f32 %v1277_v22, %v1208_v51 }
 0x2ad   : > { %v2643_v59 = vsel %vm2542_vm1, %v2640_v58, %v2642_v53  ;;  %v1340_v1 = vadd.f32 %v1278_v61, %v1209_v3  ;;  %v2848_v8 = vadd.f32 %v2641_v36, %v2128_v30  ;;  %v1540_v46 = vadd.f32 %v1476_v25, %v1406_v5  ;;  %v7545_v3 = vld [vmem:[#allocation44_spill] sm:$0xff] }
 0x2ae   : > { %v2785_v18 = vsel %vm2477_vm2, %v2643_v59, 0.0  ;;  %v1541_v26 = vadd.f32 %v1477_v63, %v1407_v44  ;;  %v1924_v41 = vrot.slane %v1339_v2, 7  ;;  %v2198_v27 = vmul.f32 %v6415_v24, %v5613_v28 }
 0x2af   : > { %v2849_v54 = vadd.f32 %v2785_v18, %v2129_v31  ;;  %v1926_v56 = vrot.slane %v1340_v1, 7  ;;  %v1671_v29 = vadd.f32 %v1609_v35, %v1540_v46  ;;  %v2199_v49 = vmul.f32 %v6415_v24, %v7541_v40 }
 0x2b0   : > { %v1672_v11 = vadd.f32 %v1610_v12, %v1541_v26  ;;  %v2268_v57 = vmul.f32 %v6425_v21, %v5607_v4  ;;  %v1925_v20 = vsel %vm1824_vm0, %v1922_v55, %v1924_v41  ;;  %v2269_v23 = vmul.f32 %v6425_v21, %v7542_v0 }
 0x2b1   : > { %v2888_v62 = vpack.c.bf16 %v2849_v54, %v2848_v8  ;;  %v1927_v32 = vsel %vm1824_vm0, %v1924_v41, %v1926_v56  ;;  %v1742_v17 = vadd.f32 %v6498_v42, %v1671_v29  ;;  %v2066_v39 = vsel %vm1756_vm3, %v1925_v20, 0.0 }
 0x2b2   : > { %v1743_v28 = vadd.f32 %v6498_v42, %v1672_v11  ;;  %v2332_v30 = vadd.f32 %v2268_v57, %v2198_v27  ;;  %v2333_v31 = vadd.f32 %v2269_v23, %v2199_v49  ;;  %v2401_v33 = vmul.f32 %v6439_v43, %v7543_v15 }
 0x2b3   : > { %4369 = vmatprep.mubr.bf16.mxu1 %v2888_v62  ;;  %v2402_v55 = vmul.f32 %v6439_v43, %v7544_v52  ;;  %v1076_v60 = vmul.f32 %v6361_v19, %v7541_v40  ;;  %v2130_v16 = vadd.f32 %v2066_v39, %v1742_v17  ;;  %v1077_v38 = vmul.f32 %v6361_v19, %v5607_v4 }
 0x2b4   : > { %v2131_v10 = vadd.f32 %v1927_v32, %v1743_v28  ;;  %v1146_v22 = vmul.f32 %v6452_v47, %v7542_v0  ;;  %v2463_v61 = vadd.f32 %v2401_v33, %v2332_v30  ;;  %v1147_v44 = vmul.f32 %v6452_v47, %v7543_v15 }
 0x2b5   : > { %v2464_v5 = vadd.f32 %v2402_v55, %v2333_v31  ;;  %v1279_v58 = vmul.f32 %v6461_v34, %v7544_v52  ;;  %v1280_v25 = vmul.f32 %v6461_v34, %v7545_v3  ;;  %v1408_v63 = vmul.f32 %v6380_v13, %v7541_v40 }
 0x2b6   : > { %v1210_v51 = vadd.f32 %v1146_v22, %v1076_v60  ;;  %v1409_v35 = vmul.f32 %v6380_v13, %v5607_v4  ;;  %v2644_v12 = vrot.slane %v2463_v61, 1  ;;  %v1211_v59 = vadd.f32 %v1147_v44, %v1077_v38 }
 0x2b7   : > { %v2646_v36 = vrot.slane %v2464_v5, 1  ;;  %v1478_v2 = vmul.f32 %v6390_v6, %v7542_v0  ;;  %v1479_v18 = vmul.f32 %v6390_v6, %v7543_v15  ;;  %v1611_v8 = vmul.f32 %v6399_v37, %v7544_v52 }
 0x2b8   : > { %v1341_v1 = vadd.f32 %v1279_v58, %v1210_v51  ;;  %v1612_v46 = vmul.f32 %v6399_v37, %v7545_v3  ;;  %v2645_v40 = vsel %vm2542_vm1, %v2642_v53, %v2644_v12  ;;  %v6829_v54 = vadd.f32 %v1280_v25, %v1211_v59 }
 0x2b9   : > { %v2647_v26 = vsel %vm2542_vm1, %v2644_v12, %v2646_v36  ;;  %v1542_v41 = vadd.f32 %v1478_v2, %v1408_v63  ;;  %v2850_v29 = vadd.f32 %v2645_v40, %v2130_v16  ;;  %v1543_v11 = vadd.f32 %v1479_v18, %v1409_v35  ;;  %v7547_v35 = vld [vmem:[#allocation49_spill] sm:$0xff] }
 0x2ba   : > { %v2787_v27 = vsel %vm2477_vm2, %v2647_v26, 0.0  ;;  %v1928_v49 = vrot.slane %v1341_v1, 7  ;;  %v1930_v20 = vrot.slane %v6829_v54, 7  ;;  %v2200_v32 = vmul.f32 %v6415_v24, %v5607_v4 }
 0x2bb   : > { %v2851_v57 = vadd.f32 %v2787_v27, %v2131_v10  ;;  %v1673_v62 = vadd.f32 %v1611_v8, %v1542_v41  ;;  %v1674_v23 = vadd.f32 %v1612_v46, %v1543_v11  ;;  %v2201_v17 = vmul.f32 %v6415_v24, %v7542_v0  ;;  %v7546_v10 = vld [vmem:[#allocation47_spill] sm:$0xff] }
 0x2bc   : > { %v1929_v53 = vsel %vm1824_vm0, %v1926_v56, %v1928_v49  ;;  %v2270_v28 = vmul.f32 %v6425_v21, %v7543_v15  ;;  %v1931_v31 = vsel %vm1824_vm0, %v1928_v49, %v1930_v20  ;;  %v2271_v4 = vmul.f32 %v6425_v21, %v7544_v52 }
 0x2bd   : > { %v2889_v39 = vpack.c.bf16 %v2851_v57, %v2850_v29  ;;  %v1744_v30 = vadd.f32 %v6498_v42, %v1673_v62  ;;  %v2068_v33 = vsel %vm1756_vm3, %v1929_v53, 0.0  ;;  %v1745_v55 = vadd.f32 %v6498_v42, %v1674_v23 }
 0x2be   : > { %v2334_v56 = vadd.f32 %v2270_v28, %v2200_v32  ;;  %v2403_v60 = vmul.f32 %v6439_v43, %v7545_v3  ;;  %v2404_v38 = vmul.f32 %v6439_v43, %v7546_v10  ;;  %v1078_v22 = vmul.f32 %v6361_v19, %v7542_v0 }
 0x2bf   : > { %4370 = vmatmul.mubr.bf16.gmra.mrb[48].mxu1 %v2889_v39  ;;  %v2132_v16 = vadd.f32 %v2068_v33, %v1744_v30  ;;  %v1079_v61 = vmul.f32 %v6361_v19, %v7543_v15  ;;  %v2133_v5 = vadd.f32 %v1931_v31, %v1745_v55  ;;  %v2335_v44 = vadd.f32 %v2271_v4, %v2201_v17 }
 0x2c0   : > { %v2465_v58 = vadd.f32 %v2403_v60, %v2334_v56  ;;  %v1148_v51 = vmul.f32 %v6452_v47, %v7544_v52  ;;  %v1149_v25 = vmul.f32 %v6452_v47, %v7545_v3  ;;  %v1281_v63 = vmul.f32 %v6461_v34, %v7546_v10 }
 0x2c1   : > { %v1282_v12 = vmul.f32 %v6461_v34, %v7547_v35  ;;  %v1410_v59 = vmul.f32 %v6380_v13, %v7542_v0  ;;  %v6866_v2 = vadd.f32 %v2404_v38, %v2335_v44  ;;  %v1411_v8 = vmul.f32 %v6380_v13, %v7543_v15 }
 0x2c2   : > { %v2648_v1 = vrot.slane %v2465_v58, 1  ;;  %v1212_v18 = vadd.f32 %v1148_v51, %v1078_v22  ;;  %v1213_v46 = vadd.f32 %v1149_v25, %v1079_v61  ;;  %v1480_v40 = vmul.f32 %v6390_v6, %v7544_v52 }
 0x2c3   : > { %v1481_v26 = vmul.f32 %v6390_v6, %v7545_v3  ;;  %v1613_v54 = vmul.f32 %v6399_v37, %v7546_v10  ;;  %v2650_v0 = vrot.slane %v6866_v2, 1  ;;  %v1614_v29 = vmul.f32 %v6399_v37, %v7547_v35 }
 0x2c4   : > { %v2649_v41 = vsel %vm2542_vm1, %v2646_v36, %v2648_v1  ;;  %v1343_v27 = vadd.f32 %v1281_v63, %v1212_v18  ;;  %v6880_v49 = vadd.f32 %v1282_v12, %v1213_v46  ;;  %v1544_v57 = vadd.f32 %v1480_v40, %v1410_v59  ;;  %v7548_v12 = vld [vmem:[#allocation46_spill] sm:$0xff] }
 0x2c5   : > { %v2852_v11 = vadd.f32 %v2649_v41, %v2132_v16  ;;  %v1545_v62 = vadd.f32 %v1481_v26, %v1411_v8  ;;  %v2651_v32 = vsel %vm2542_vm1, %v2648_v1, %v2650_v0  ;;  %v2202_v53 = vmul.f32 %v6415_v24, %v7543_v15 }
 0x2c6   : > { %v1932_v23 = vrot.slane %v1343_v27, 7  ;;  %v2203_v36 = vmul.f32 %v6415_v24, %v7544_v52  ;;  %v2789_v17 = vsel %vm2477_vm2, %v2651_v32, 0.0  ;;  %v1675_v28 = vadd.f32 %v1613_v54, %v1544_v57  ;;  %v6890_v31 = vpop.f32.mrb[0].mxu1  ;;  %v7549_v54 = vld [vmem:[#allocation48_spill] sm:$0xff] }
 0x2c7   : > { %v1676_v39 = vadd.f32 %v1614_v29, %v1545_v62  ;;  %v1934_v30 = vrot.slane %v6880_v49, 7  ;;  %v2853_v33 = vadd.f32 %v2789_v17, %v2133_v5  ;;  %v2272_v4 = vmul.f32 %v6425_v21, %v7545_v3  ;;  %v6897_v56 = vpop.f32.mrb[1].mxu1 }
 0x2c8   : > { %v1933_v55 = vsel %vm1824_vm0, %v1930_v20, %v1932_v23  ;;  %v2273_v15 = vmul.f32 %v6425_v21, %v7546_v10  ;;  %v1746_v60 = vadd.f32 %v6498_v42, %v1675_v28  ;;  %v6904_v61 = vpop.f32.mrb[2].mxu1  ;;  %v2405_v58 = vmul.f32 %v6439_v43, %v7547_v35 }
 0x2c9   : > { %v1747_v16 = vadd.f32 %v6498_v42, %v1676_v39  ;;  %v1935_v38 = vsel %vm1824_vm0, %v1932_v23, %v1934_v30  ;;  %v2070_v22 = vsel %vm1756_vm3, %v1933_v55, 0.0  ;;  %v2890_v20 = vpack.c.bf16 %v2853_v33, %v2852_v11  ;;  %v6908_v51 = vpop.f32.mrb[3].mxu1 }
 0x2ca   : > { %v2336_v5 = vadd.f32 %v2272_v4, %v2202_v53  ;;  %v2337_v44 = vadd.f32 %v2273_v15, %v2203_v36  ;;  %v2134_v25 = vadd.f32 %v2070_v22, %v1746_v60  ;;  %v2406_v59 = vmul.f32 %v6439_v43, %v7548_v12 }
 0x2cb   : > { %v2135_v63 = vadd.f32 %v1935_v38, %v1747_v16  ;;  %v1080_v2 = vmul.f32 %v6361_v19, %v7544_v52  ;;  %4373 = vmatprep.mubr.bf16.mxu1 %v2890_v20  ;;  %v1081_v18 = vmul.f32 %v6361_v19, %v7545_v3  ;;  %v1150_v8 = vmul.f32 %v6452_v47, %v7546_v10 }
 0x2cc   : > { %v2467_v1 = vadd.f32 %v2405_v58, %v2336_v5  ;;  %v1151_v46 = vmul.f32 %v6452_v47, %v7547_v35  ;;  %v6920_v40 = vadd.f32 %v2406_v59, %v2337_v44  ;;  %v1283_v26 = vmul.f32 %v6461_v34, %v7548_v12 }
 0x2cd   : > { %v1284_v41 = vmul.f32 %v6461_v34, %v7549_v54  ;;  %v1412_v27 = vmul.f32 %v6380_v13, %v7544_v52  ;;  %v1214_v11 = vadd.f32 %v1150_v8, %v1080_v2  ;;  %v1413_v49 = vmul.f32 %v6380_v13, %v7545_v3  ;;  %v7550_v8 = vld [vmem:[#allocation51_spill] sm:$0xff] }
 0x2ce   : > { %v2652_v29 = vrot.slane %v2467_v1, 1  ;;  %v1215_v19 = vadd.f32 %v1151_v46, %v1081_v18  ;;  %v2654_v57 = vrot.slane %v6920_v40, 1  ;;  %v1482_v62 = vmul.f32 %v6390_v6, %v7546_v10  ;;  %v7041_v40 = vld [vmem:[%s7368_s3 + $0x2] ss:$0 sm:$0xff] }
 0x2cf   : > { %v1483_v32 = vmul.f32 %v6390_v6, %v7547_v35  ;;  %v1615_v23 = vmul.f32 %v6399_v37, %v7548_v12  ;;  %v6937_v53 = vpop.f32.mrb[4].mxu1  ;;  %v1345_v36 = vadd.f32 %v1283_v26, %v1214_v11  ;;  %v1616_v13 = vmul.f32 %v6399_v37, %v7549_v54 }
 0x2d0   : > { %v2653_v52 = vsel %vm2542_vm1, %v2650_v0, %v2652_v29  ;;  %v6940_v17 = vadd.f32 %v1284_v41, %v1215_v19  ;;  %v6944_v28 = vpop.f32.mrb[5].mxu1  ;;  %v2655_v39 = vsel %vm2542_vm1, %v2652_v29, %v2654_v57  ;;  %v1546_v33 = vadd.f32 %v1482_v62, %v1412_v27 }
 0x2d1   : > { %v2854_v6 = vadd.f32 %v2653_v52, %v2134_v25  ;;  %v1547_v55 = vadd.f32 %v1483_v32, %v1413_v49  ;;  %v6949_v4 = vpop.f32.mrb[6].mxu1  ;;  %v2791_v0 = vsel %vm2477_vm2, %v2655_v39, 0.0  ;;  %v1936_v15 = vrot.slane %v1345_v36, 7  ;;  %v7002_v36 = vld [vmem:[%s7368_s3 + $0x1] ss:$0 sm:$0xff] }
 0x2d2   : > { %v1938_v60 = vrot.slane %v6940_v17, 7  ;;  %v2204_v37 = vmul.f32 %v6415_v24, %v7545_v3  ;;  %v6956_v16 = vpop.f32.mrb[7].mxu1  ;;  %v2855_v38 = vadd.f32 %v2791_v0, %v2135_v63  ;;  %v1677_v22 = vadd.f32 %v1615_v23, %v1546_v33 }
 0x2d3   : > { %v1678_v20 = vadd.f32 %v1616_v13, %v1547_v55  ;;  %v2205_v5 = vmul.f32 %v6415_v24, %v7546_v10  ;;  %v1937_v44 = vsel %vm1824_vm0, %v1934_v30, %v1936_v15  ;;  %v2274_v25 = vmul.f32 %v6425_v21, %v7547_v35 }
 0x2d4   : > { %v1939_v58 = vsel %vm1824_vm0, %v1936_v15, %v1938_v60  ;;  %v2275_v3 = vmul.f32 %v6425_v21, %v7548_v12  ;;  %v2891_v59 = vpack.c.bf16 %v2855_v38, %v2854_v6  ;;  %v1748_v63 = vadd.f32 %v6498_v42, %v1677_v22  ;;  %v6979_v21 = vld [vmem:[%s7368_s3] ss:$0 sm:$0xff]  ;;  %v4528_v38 = vld [vmem:[%s7368_s3 + $0x7] ss:$0 sm:$0xff] }
 0x2d5   : > { %v1749_v2 = vadd.f32 %v6498_v42, %v1678_v20  ;;  %v2072_v24 = vsel %vm1756_vm3, %v1937_v44, 0.0  ;;  %v2338_v1 = vadd.f32 %v2274_v25, %v2204_v37  ;;  %v2407_v18 = vmul.f32 %v6439_v43, %v7549_v54 }
 0x2d6   : > { %v2339_v30 = vadd.f32 %v2275_v3, %v2205_v5  ;;  %v2408_v46 = vmul.f32 %v6439_v43, %v7550_v8  ;;  %4374 = vmatmul.mubr.bf16.gmra.mrb[52].mxu1 %v2891_v59  ;;  %v2136_v26 = vadd.f32 %v2072_v24, %v1748_v63  ;;  %v1082_v27 = vmul.f32 %v6979_v21, %v7546_v10 }
 0x2d7   : > { %v2137_v41 = vadd.f32 %v1939_v58, %v1749_v2  ;;  %v1083_v29 = vmul.f32 %v6979_v21, %v7547_v35  ;;  %v6985_v11 = vpop.f32.mrb[8].mxu1  ;;  %v2469_v19 = vadd.f32 %v2407_v18, %v2338_v1  ;;  %v1152_v43 = vmul.f32 %v6452_v47, %v7548_v12 }
 0x2d8   : > { %v6987_v49 = vadd.f32 %v2408_v46, %v2339_v30  ;;  %v1153_v62 = vmul.f32 %v6452_v47, %v7549_v54  ;;  %v6993_v32 = vpop.f32.mrb[9].mxu1  ;;  %v1285_v23 = vmul.f32 %v6461_v34, %v7550_v8  ;;  %v1286_v52 = vmul.f32 %v6461_v34, %v5776_v48  ;;  %v7016_v34 = vld [vmem:[%s7368_s3 + $0x4] ss:$0 sm:$0xff] }
 0x2d9   : > { %v1414_v13 = vmul.f32 %v7002_v36, %v7546_v10  ;;  %v1415_v39 = vmul.f32 %v7002_v36, %v7547_v35  ;;  %v7008_v47 = vpop.f32.mrb[10].mxu1  ;;  %v2656_v6 = vrot.slane %v2469_v19, 1  ;;  %v1216_v55 = vadd.f32 %v1152_v43, %v1082_v27 }
 0x2da   : > { %v2658_v33 = vrot.slane %v6987_v49, 1  ;;  %v1217_v0 = vadd.f32 %v1153_v62, %v1083_v29  ;;  %v7011_v15 = vpop.f32.mrb[11].mxu1  ;;  %v1484_v10 = vmul.f32 %v7016_v34, %v7548_v12  ;;  %v1485_v37 = vmul.f32 %v7016_v34, %v7549_v54 }
 0x2db   : > { %v1617_v22 = vmul.f32 %v4528_v38, %v7550_v8  ;;  %v1618_v20 = vmul.f32 %v4528_v38, %v5776_v48  ;;  %v2657_v5 = vsel %vm2542_vm1, %v2654_v57, %v2656_v6  ;;  %v1347_v58 = vadd.f32 %v1285_v23, %v1216_v55  ;;  %v4531_v55 = vld [vmem:[%s7368_s3 + $0x8] ss:$0 sm:$0xff] }
 0x2dc   : > { %v2659_v44 = vsel %vm2542_vm1, %v2656_v6, %v2658_v33  ;;  %v7033_v25 = vadd.f32 %v1286_v52, %v1217_v0  ;;  %v2856_v59 = vadd.f32 %v2657_v5, %v2136_v26  ;;  %v1548_v63 = vadd.f32 %v1484_v10, %v1414_v13  ;;  %v7050_v26 = vld [vmem:[%s7368_s3 + $0x5] ss:$0 sm:$0xff]  ;;  %v7551_v10 = vld [vmem:[#allocation50_spill] sm:$0xff] }
 0x2dd   : > { %v2793_v3 = vsel %vm2477_vm2, %v2659_v44, 0.0  ;;  %v1549_v2 = vadd.f32 %v1485_v37, %v1415_v39  ;;  %v1940_v1 = vrot.slane %v1347_v58, 7  ;;  %v2206_v57 = vmul.f32 %v7041_v40, %v7547_v35  ;;  %v4532_v58 = vld [vmem:[%s7368_s3 + $0x3] ss:$0 sm:$0xff] }
 0x2de   : > { %v2857_v24 = vadd.f32 %v2793_v3, %v2137_v41  ;;  %v1942_v30 = vrot.slane %v7033_v25, 7  ;;  %v1679_v18 = vadd.f32 %v1617_v22, %v1548_v63  ;;  %v2207_v27 = vmul.f32 %v7041_v40, %v7548_v12 }
 0x2df   : > { %v1680_v46 = vadd.f32 %v1618_v20, %v1549_v2  ;;  %v2276_v41 = vmul.f32 %v7050_v26, %v7549_v54  ;;  %v1941_v35 = vsel %vm1824_vm0, %v1938_v60, %v1940_v1  ;;  %v2277_v62 = vmul.f32 %v7050_v26, %v7550_v8 }
 0x2e0   : > { %v7054_v29 = vpop.f32.mrb[12].mxu1  ;;  %v2892_v19 = vpack.c.bf16 %v2857_v24, %v2856_v59  ;;  %v1943_v43 = vsel %vm1824_vm0, %v1940_v1, %v1942_v30  ;;  %v1750_v52 = vadd.f32 %v6498_v42, %v1679_v18  ;;  %v2074_v39 = vsel %vm1756_vm3, %v1941_v35, 0.0  ;;  %v4533_v24 = vld [vmem:[%s7368_s3 + $0x6] ss:$0 sm:$0xff] }
 0x2e1   : > { %v7064_v23 = vpop.f32.mrb[13].mxu1  ;;  %v1751_v13 = vadd.f32 %v6498_v42, %v1680_v46  ;;  %v2340_v6 = vadd.f32 %v2276_v41, %v2206_v57  ;;  %v2341_v60 = vadd.f32 %v2277_v62, %v2207_v27  ;;  %v2409_v0 = vmul.f32 %v4531_v55, %v5776_v48  ;;  %v7552_v18 = vld [vmem:[#allocation52_spill] sm:$0xff] }
 0x2e2   : > { %v7070_v17 = vpop.f32.mrb[14].mxu1  ;;  %4377 = vmatprep.mubr.bf16.mxu1 %v2892_v19  ;;  %v2410_v37 = vmul.f32 %v4531_v55, %v7551_v10  ;;  %v1084_v22 = vmul.f32 %v6979_v21, %v7548_v12  ;;  %v2138_v20 = vadd.f32 %v2074_v39, %v1750_v52  ;;  %v1085_v44 = vmul.f32 %v6979_v21, %v7549_v54 }
 0x2e3   : > { %v7079_v42 = vpop.f32.mrb[15].mxu1  ;;  %v2139_v5 = vadd.f32 %v1943_v43, %v1751_v13  ;;  %v1154_v3 = vmul.f32 %v4532_v58, %v7550_v8  ;;  %v2471_v59 = vadd.f32 %v2409_v0, %v2340_v6  ;;  %v1155_v2 = vmul.f32 %v4532_v58, %v5776_v48 }
 0x2e4   : > { %v7087_v63 = vadd.f32 %v2410_v37, %v2341_v60  ;;  %v1287_v1 = vmul.f32 %v4533_v24, %v7551_v10  ;;  %v1288_v46 = vmul.f32 %v4533_v24, %v7552_v18  ;;  %v1416_v27 = vmul.f32 %v7002_v36, %v7548_v12 }
 0x2e5   : > { %v1218_v57 = vadd.f32 %v1154_v3, %v1084_v22  ;;  %v1417_v41 = vmul.f32 %v7002_v36, %v7549_v54  ;;  %v2660_v19 = vrot.slane %v2471_v59, 1  ;;  %v1219_v43 = vadd.f32 %v1155_v2, %v1085_v44 }
 0x2e6   : > { %v2662_v35 = vrot.slane %v7087_v63, 1  ;;  %v1486_v62 = vmul.f32 %v7016_v34, %v7550_v8  ;;  %v1487_v13 = vmul.f32 %v7016_v34, %v5776_v48  ;;  %v1619_v39 = vmul.f32 %v4528_v38, %v7551_v10 }
 0x2e7   : > { %v1349_v52 = vadd.f32 %v1287_v1, %v1218_v57  ;;  %v1620_v6 = vmul.f32 %v4528_v38, %v7552_v18  ;;  %v2661_v12 = vsel %vm2542_vm1, %v2658_v33, %v2660_v19  ;;  %v7112_v37 = vadd.f32 %v1288_v46, %v1219_v43 }
 0x2e8   : > { %v7106_v60 = vpop.f32.mrb[16].mxu1  ;;  %v2663_v0 = vsel %vm2542_vm1, %v2660_v19, %v2662_v35  ;;  %v1550_v22 = vadd.f32 %v1486_v62, %v1416_v27  ;;  %v2858_v59 = vadd.f32 %v2661_v12, %v2138_v20  ;;  %v1551_v63 = vadd.f32 %v1487_v13, %v1417_v41  ;;  %v4534_v19 = vld [vmem:[%s7369_s4] ss:$0 sm:$0xff] }
 0x2e9   : > { %v7114_v44 = vpop.f32.mrb[17].mxu1  ;;  %v2795_v3 = vsel %vm2477_vm2, %v2663_v0, 0.0  ;;  %v1944_v2 = vrot.slane %v1349_v52, 7  ;;  %v1946_v49 = vrot.slane %v7112_v37, 7  ;;  %v2208_v33 = vmul.f32 %v7041_v40, %v7549_v54  ;;  %v7149_v37 = vld [vmem:[%s7371_s6] ss:$0 sm:$0xff] }
 0x2ea   : > { %v7118_v38 = vpop.f32.mrb[18].mxu1  ;;  %v2859_v24 = vadd.f32 %v2795_v3, %v2139_v5  ;;  %v1681_v1 = vadd.f32 %v1619_v39, %v1550_v22  ;;  %v1682_v46 = vadd.f32 %v1620_v6, %v1551_v63  ;;  %v2209_v20 = vmul.f32 %v7041_v40, %v7550_v8 }
 0x2eb   : > { %v7123_v57 = vpop.f32.mrb[19].mxu1  ;;  %v1945_v27 = vsel %vm1824_vm0, %v1942_v30, %v1944_v2  ;;  %v2278_v41 = vmul.f32 %v7050_v26, %v5776_v48  ;;  %v1947_v54 = vsel %vm1824_vm0, %v1944_v2, %v1946_v49  ;;  %v2279_v30 = vmul.f32 %v7050_v26, %v7551_v10 }
 0x2ec   : > { %v2893_v5 = vpack.c.bf16 %v2859_v24, %v2858_v59  ;;  %v1752_v43 = vadd.f32 %v4534_v19, %v1681_v1  ;;  %v2076_v62 = vsel %vm1756_vm3, %v1945_v27, 0.0  ;;  %v1753_v25 = vadd.f32 %v4534_v19, %v1682_v46 }
 0x2ed   : > { %v2342_v52 = vadd.f32 %v2278_v41, %v2208_v33  ;;  %v2411_v13 = vmul.f32 %v4531_v55, %v7552_v18  ;;  %v1086_v6 = vmul.f32 %v6979_v21, %v7550_v8  ;;  %v1156_v12 = vmul.f32 %v4532_v58, %v7551_v10 }
 0x2ee   : > { %4378 = vmatmul.mubr.bf16.gmra.mrb[56].mxu1 %v2893_v5  ;;  %v2140_v39 = vadd.f32 %v2076_v62, %v1752_v43  ;;  %v1418_v0 = vmul.f32 %v7002_v36, %v7550_v8  ;;  %v2141_v22 = vadd.f32 %v1947_v54, %v1753_v25  ;;  %v2343_v3 = vadd.f32 %v2279_v30, %v2209_v20 }
 0x2ef   : > { %v2473_v59 = vadd.f32 %v2411_v13, %v2342_v52  ;;  %v1419_v55 = vmul.f32 %v7002_v36, %v5776_v48  ;;  %v1220_v63 = vadd.f32 %v1156_v12, %v1086_v6  ;;  %v1488_v21 = vmul.f32 %v7016_v34, %v7551_v10  ;;  %v7553_v12 = vld [vmem:[#allocation53_spill] sm:$0xff] }
 0x2f0   : > { %v1489_v58 = vmul.f32 %v7016_v34, %v7552_v18  ;;  %v2210_v8 = vmul.f32 %v7041_v40, %v5776_v48  ;;  %v7159_v2 = vpop.f32.mrb[20].mxu1  ;;  %v2474_v24 = vadd.f32 %v6216_v14, %v2343_v3  ;;  %v2280_v33 = vmul.f32 %v7050_v26, %v7552_v18 }
 0x2f1   : > { %v2664_v1 = vrot.slane %v2473_v59, 1  ;;  %v3010_v36 = vadd.f32 %v6890_v31, %v7149_v37  ;;  %v7166_v46 = vpop.f32.mrb[21].mxu1  ;;  %v1351_v10 = vadd.f32 %v5043_v9, %v1220_v63  ;;  %v1552_v27 = vadd.f32 %v1488_v21, %v1418_v0 }
 0x2f2   : > { %v1553_v34 = vadd.f32 %v1489_v58, %v1419_v55  ;;  %v3002_v48 = vadd.f32 %v7149_v37, %v6897_v56  ;;  %v7171_v40 = vpop.f32.mrb[22].mxu1  ;;  %v2666_v41 = vrot.slane %v2474_v24, 1  ;;  %v2344_v5 = vadd.f32 %v2280_v33, %v2210_v8 }
 0x2f3   : > { %v2665_v20 = vsel %vm2542_vm1, %v2662_v35, %v2664_v1  ;;  %v3258_v43 = vmax.f32 %v3010_v36, 0.0  ;;  %v7174_v26 = vpop.f32.mrb[23].mxu1  ;;  %v1683_v31 = vadd.f32 %v6236_v45, %v1552_v27  ;;  %v1948_v9 = vrot.slane %v1351_v10, 7 }
 0x2f4   : > { %v2860_v18 = vadd.f32 %v2665_v20, %v2140_v39  ;;  %v1684_v54 = vadd.f32 %v6236_v45, %v1553_v34  ;;  %v2667_v62 = vsel %vm2542_vm1, %v2664_v1, %v2666_v41  ;;  %v2475_v25 = vadd.f32 %v6216_v14, %v2344_v5 }
 0x2f5   : > { %v3256_v56 = vmax.f32 %v3002_v48, 0.0  ;;  %v3013_v30 = vadd.f32 %v6904_v61, %v7149_v37  ;;  %v2797_v35 = vsel %vm2477_vm2, %v2667_v62, 0.0  ;;  %v1754_v52 = vadd.f32 %v4534_v19, %v1683_v31 }
 0x2f6   : > { %v1755_v13 = vadd.f32 %v4534_v19, %v1684_v54  ;;  %v1949_v39 = vsel %vm1824_vm0, %v1946_v49, %v1948_v9  ;;  %v2861_v6 = vadd.f32 %v2797_v35, %v2141_v22  ;;  %v7554_v0 = vrot.slane %v7553_v12, 7  ;;  %v7555_v49 = vld [vmem:[#allocation15_spill] sm:$0xff] }
 0x2f7   : > { %v2078_v3 = vsel %vm1756_vm3, %v1949_v39, 0.0  ;;  %v2668_v14 = vrot.slane %v2475_v25, 1  ;;  %v3259_v61 = vmax.f32 %v3013_v30, 0.0  ;;  %v3005_v63 = vadd.f32 %v7149_v37, %v6908_v51 }
 0x2f8   : > { %v1950_v45 = vsel %vm1824_vm0, %v1948_v9, %v7554_v0  ;;  %v2142_v59 = vadd.f32 %v2078_v3, %v1754_v52  ;;  %v2894_v21 = vpack.c.bf16 %v2861_v6, %v2860_v18  ;;  %v7556_v22 = vrot.slane %v7555_v49, 1 }
 0x2f9   : > { %v2143_v55 = vadd.f32 %v1950_v45, %v1755_v13  ;;  %v2669_v19 = vsel %vm2542_vm1, %v2666_v41, %v2668_v14  ;;  %v3026_v8 = vadd.f32 %v6937_v53, %v7149_v37  ;;  %v3962_v1 = vpack.c.bf16 %v3259_v61, %v3258_v43 }
 0x2fa   : > { %v2735_v58 = vsel %vm2542_vm1, %v2668_v14, %v7556_v22  ;;  %v2862_v24 = vadd.f32 %v2669_v19, %v2142_v59  ;;  %v3257_v33 = vmax.f32 %v3005_v63, 0.0  ;;  %4381 = vmatprep.mubr.bf16.mxu1 %v2894_v21  ;;  %v3018_v51 = vadd.f32 %v7149_v37, %v6944_v28 }
 0x2fb   : > { %v2799_v50 = vsel %vm2477_vm2, %v2735_v58, 0.0  ;;  %v3262_v10 = vmax.f32 %v3026_v8, 0.0  ;;  %v3029_v27 = vadd.f32 %v6949_v4, %v7149_v37  ;;  %4114 = vst [vmem:[%s7206_s29 + $0x8] sm:$0xff] %v3962_v1   ;;  %v3021_v53 = vadd.f32 %v7149_v37, %v6956_v16 }
 0x2fc   : > { %v2863_v36 = vadd.f32 %v2799_v50, %v2143_v55  ;;  %v3957_v7 = vpack.c.bf16 %v3257_v33, %v3256_v56  ;;  %v3042_v34 = vadd.f32 %v6985_v11, %v7149_v37  ;;  %v3034_v48 = vadd.f32 %v7149_v37, %v6993_v32 }
 0x2fd   : > { %v3260_v20 = vmax.f32 %v3018_v51, 0.0  ;;  %v3263_v41 = vmax.f32 %v3029_v27, 0.0  ;;  %v3045_v4 = vadd.f32 %v7008_v47, %v7149_v37  ;;  %v3261_v5 = vmax.f32 %v3021_v53, 0.0 }
 0x2fe   : > { %v2895_v28 = vpack.c.bf16 %v2863_v36, %v2862_v24  ;;  %3958 = vst [vmem:[%s7206_s29] sm:$0xff] %v3957_v7   ;;  %v3266_v43 = vmax.f32 %v3042_v34, 0.0  ;;  %v3264_v18 = vmax.f32 %v3034_v48, 0.0  ;;  %v3037_v16 = vadd.f32 %v7149_v37, %v7011_v15 }
 0x2ff   : > { %v3972_v11 = vpack.c.bf16 %v3263_v41, %v3262_v10  ;;  %v3267_v31 = vmax.f32 %v3045_v4, 0.0  ;;  %v3058_v32 = vadd.f32 %v7054_v29, %v7149_v37  ;;  %v3050_v54 = vadd.f32 %v7149_v37, %v7064_v23 }
 0x300   : > { %4382 = vmatmul.mubr.bf16.gmra.mrb[60].mxu1 %v2895_v28  ;;  %v3967_v9 = vpack.c.bf16 %v3261_v5, %v3260_v20  ;;  %v3265_v47 = vmax.f32 %v3037_v16, 0.0  ;;  %v3061_v62 = vadd.f32 %v7070_v17, %v7149_v37  ;;  %v3053_v25 = vadd.f32 %v7149_v37, %v7079_v42 }
 0x301   : > { %4116 = vst [vmem:[%s7206_s29 + $0x18] sm:$0xff] %v3972_v11   ;;  %v3982_v15 = vpack.c.bf16 %v3267_v31, %v3266_v43  ;;  %v3270_v56 = vmax.f32 %v3058_v32, 0.0  ;;  %v3268_v30 = vmax.f32 %v3050_v54, 0.0  ;;  %v3074_v29 = vadd.f32 %v7106_v60, %v7149_v37 }
 0x302   : > { %4115 = vst [vmem:[%s7206_s29 + $0x10] sm:$0xff] %v3967_v9   ;;  %v3977_v35 = vpack.c.bf16 %v3265_v47, %v3264_v18  ;;  %v3271_v52 = vmax.f32 %v3061_v62, 0.0  ;;  %v3269_v23 = vmax.f32 %v3053_v25, 0.0  ;;  %v3066_v17 = vadd.f32 %v7149_v37, %v7114_v44 }
 0x303   : > { %4118 = vst [vmem:[%s7206_s29 + $0x28] sm:$0xff] %v3982_v15   ;;  %v3077_v42 = vadd.f32 %v7118_v38, %v7149_v37  ;;  %v3069_v13 = vadd.f32 %v7149_v37, %v7123_v57  ;;  %v3090_v39 = vadd.f32 %v7159_v2, %v7149_v37  ;;  %v3274_v12 = vmax.f32 %v3074_v29, 0.0 }
 0x304   : > { %4117 = vst [vmem:[%s7206_s29 + $0x20] sm:$0xff] %v3977_v35   ;;  %v3992_v60 = vpack.c.bf16 %v3271_v52, %v3270_v56  ;;  %v3987_v6 = vpack.c.bf16 %v3269_v23, %v3268_v30  ;;  %v3082_v0 = vadd.f32 %v7149_v37, %v7166_v46  ;;  %v3272_v44 = vmax.f32 %v3066_v17, 0.0 }
 0x305   : > { %v3275_v45 = vmax.f32 %v3077_v42, 0.0  ;;  %v3273_v3 = vmax.f32 %v3069_v13, 0.0  ;;  %v3093_v38 = vadd.f32 %v7171_v40, %v7149_v37  ;;  %v3085_v57 = vadd.f32 %v7149_v37, %v7174_v26 }
 0x306   : > { %4120 = vst [vmem:[%s7206_s29 + $0x38] sm:$0xff] %v3992_v60   ;;  %4119 = vst [vmem:[%s7206_s29 + $0x30] sm:$0xff] %v3987_v6   ;;  %v3278_v59 = vmax.f32 %v3090_v39, 0.0  ;;  %v3276_v61 = vmax.f32 %v3082_v0, 0.0 }
 0x307   : > { %v4002_v2 = vpack.c.bf16 %v3275_v45, %v3274_v12  ;;  %v3997_v14 = vpack.c.bf16 %v3273_v3, %v3272_v44  ;;  %v3279_v55 = vmax.f32 %v3093_v38, 0.0  ;;  %v3277_v46 = vmax.f32 %v3085_v57, 0.0  ;;  %v4347_v63 = vpop.f32.mrb[24].mxu1 }
 0x308   : > { %v3106_v19 = vadd.f32 %v4347_v63, %v7149_v37  ;;  %v3097_v40 = vpop.f32.mrb[25].mxu1 }
 0x309   : > { %4122 = vst [vmem:[%s7206_s29 + $0x48] sm:$0xff] %v4002_v2   ;;  %4121 = vst [vmem:[%s7206_s29 + $0x40] sm:$0xff] %v3997_v14   ;;  %v4012_v21 = vpack.c.bf16 %v3279_v55, %v3278_v59  ;;  %v4007_v49 = vpack.c.bf16 %v3277_v46, %v3276_v61  ;;  %v3098_v26 = vadd.f32 %v7149_v37, %v3097_v40  ;;  %v4348_v22 = vpop.f32.mrb[26].mxu1 }
 0x30a   : > { %v3109_v58 = vadd.f32 %v4348_v22, %v7149_v37  ;;  %v3100_v8 = vpop.f32.mrb[27].mxu1  ;;  %v3282_v24 = vmax.f32 %v3106_v19, 0.0 }
 0x30b   : > { %4124 = vst [vmem:[%s7206_s29 + $0x58] sm:$0xff] %v4012_v21   ;;  %4123 = vst [vmem:[%s7206_s29 + $0x50] sm:$0xff] %v4007_v49   ;;  %v3101_v50 = vadd.f32 %v7149_v37, %v3100_v8  ;;  %v3280_v33 = vmax.f32 %v3098_v26, 0.0 }
 0x30c   : > { %v3283_v1 = vmax.f32 %v3109_v58, 0.0 }
 0x30d   : > { %v3281_v36 = vmax.f32 %v3101_v50, 0.0 }
 0x30e   : > { %v4022_v10 = vpack.c.bf16 %v3283_v1, %v3282_v24 }
 0x30f   : > { %v4017_v51 = vpack.c.bf16 %v3281_v36, %v3280_v33 }
 0x310   : > { %4126 = vst [vmem:[%s7206_s29 + $0x68] sm:$0xff] %v4022_v10  }
 0x311   : > { %4125 = vst [vmem:[%s7206_s29 + $0x60] sm:$0xff] %v4017_v51  }
 0x31d   : > { %v4351_v27 = vpop.f32.mrb[28].mxu1 }
 0x31e   : > { %v3122_v7 = vadd.f32 %v4351_v27, %v7149_v37  ;;  %v3113_v53 = vpop.f32.mrb[29].mxu1 }
 0x31f   : > { %v3114_v34 = vadd.f32 %v7149_v37, %v3113_v53  ;;  %v4352_v48 = vpop.f32.mrb[30].mxu1 }
 0x320   : > { %v3125_v28 = vadd.f32 %v4352_v48, %v7149_v37  ;;  %v3116_v20 = vpop.f32.mrb[31].mxu1  ;;  %v3286_v4 = vmax.f32 %v3122_v7, 0.0 }
 0x321   : > { %v3117_v41 = vadd.f32 %v7149_v37, %v3116_v20  ;;  %v3284_v43 = vmax.f32 %v3114_v34, 0.0 }
 0x322   : > { %v3287_v5 = vmax.f32 %v3125_v28, 0.0 }
 0x323   : > { %v3285_v18 = vmax.f32 %v3117_v41, 0.0 }
 0x324   : > { %v4032_v16 = vpack.c.bf16 %v3287_v5, %v3286_v4 }
 0x325   : > { %v4027_v11 = vpack.c.bf16 %v3285_v18, %v3284_v43 }
 0x326   : > { %4128 = vst [vmem:[%s7206_s29 + $0x78] sm:$0xff] %v4032_v16  }
 0x327   : > { %4127 = vst [vmem:[%s7206_s29 + $0x70] sm:$0xff] %v4027_v11  }
 0x334   : > { %v4355_v31 = vpop.f32.mrb[32].mxu1 }
 0x335   : > { %v3138_v32 = vadd.f32 %v4355_v31, %v7149_v37  ;;  %v3129_v54 = vpop.f32.mrb[33].mxu1 }
 0x336   : > { %v3130_v9 = vadd.f32 %v7149_v37, %v3129_v54  ;;  %v4356_v47 = vpop.f32.mrb[34].mxu1 }
 0x337   : > { %v3141_v62 = vadd.f32 %v4356_v47, %v7149_v37  ;;  %v3132_v25 = vpop.f32.mrb[35].mxu1  ;;  %v3290_v56 = vmax.f32 %v3138_v32, 0.0 }
 0x338   : > { %v3133_v15 = vadd.f32 %v7149_v37, %v3132_v25  ;;  %v3288_v29 = vmax.f32 %v3130_v9, 0.0 }
 0x339   : > { %v3291_v30 = vmax.f32 %v3141_v62, 0.0 }
 0x33a   : > { %v3289_v35 = vmax.f32 %v3133_v15, 0.0 }
 0x33b   : > { %v4042_v52 = vpack.c.bf16 %v3291_v30, %v3290_v56 }
 0x33c   : > { %v4037_v23 = vpack.c.bf16 %v3289_v35, %v3288_v29 }
 0x33d   : > { %4130 = vst [vmem:[%s7206_s29 + $0x88] sm:$0xff] %v4042_v52  }
 0x33e   : > { %4129 = vst [vmem:[%s7206_s29 + $0x80] sm:$0xff] %v4037_v23  }
 0x34b   : > { %v4359_v17 = vpop.f32.mrb[36].mxu1 }
 0x34c   : > { %v3154_v42 = vadd.f32 %v4359_v17, %v7149_v37  ;;  %v3145_v13 = vpop.f32.mrb[37].mxu1 }
 0x34d   : > { %v3146_v39 = vadd.f32 %v7149_v37, %v3145_v13  ;;  %v4360_v60 = vpop.f32.mrb[38].mxu1 }
 0x34e   : > { %v3157_v6 = vadd.f32 %v4360_v60, %v7149_v37  ;;  %v3148_v12 = vpop.f32.mrb[39].mxu1  ;;  %v3294_v44 = vmax.f32 %v3154_v42, 0.0 }
 0x34f   : > { %v3149_v0 = vadd.f32 %v7149_v37, %v3148_v12  ;;  %v3292_v3 = vmax.f32 %v3146_v39, 0.0 }
 0x350   : > { %v3295_v45 = vmax.f32 %v3157_v6, 0.0 }
 0x351   : > { %v3293_v38 = vmax.f32 %v3149_v0, 0.0 }
 0x352   : > { %v4052_v57 = vpack.c.bf16 %v3295_v45, %v3294_v44 }
 0x353   : > { %v4047_v2 = vpack.c.bf16 %v3293_v38, %v3292_v3 }
 0x354   : > { %4132 = vst [vmem:[%s7206_s29 + $0x98] sm:$0xff] %v4052_v57  }
 0x355   : > { %4131 = vst [vmem:[%s7206_s29 + $0x90] sm:$0xff] %v4047_v2  }
 0x363   : > { %v4363_v14 = vpop.f32.mrb[40].mxu1 }
 0x364   : > { %v3170_v59 = vadd.f32 %v4363_v14, %v7149_v37  ;;  %v3161_v55 = vpop.f32.mrb[41].mxu1 }
 0x365   : > { %v3162_v61 = vadd.f32 %v7149_v37, %v3161_v55  ;;  %v4364_v46 = vpop.f32.mrb[42].mxu1 }
 0x366   : > { %v3173_v63 = vadd.f32 %v4364_v46, %v7149_v37  ;;  %v3164_v21 = vpop.f32.mrb[43].mxu1  ;;  %v3298_v40 = vmax.f32 %v3170_v59, 0.0 }
 0x367   : > { %v3165_v19 = vadd.f32 %v7149_v37, %v3164_v21  ;;  %v3296_v26 = vmax.f32 %v3162_v61, 0.0 }
 0x368   : > { %v3299_v49 = vmax.f32 %v3173_v63, 0.0 }
 0x369   : > { %v3297_v22 = vmax.f32 %v3165_v19, 0.0 }
 0x36a   : > { %v4062_v58 = vpack.c.bf16 %v3299_v49, %v3298_v40 }
 0x36b   : > { %v4057_v8 = vpack.c.bf16 %v3297_v22, %v3296_v26 }
 0x36c   : > { %4134 = vst [vmem:[%s7206_s29 + $0xa8] sm:$0xff] %v4062_v58  }
 0x36d   : > { %4133 = vst [vmem:[%s7206_s29 + $0xa0] sm:$0xff] %v4057_v8  }
 0x37a   : > { %v4367_v50 = vpop.f32.mrb[44].mxu1 }
 0x37b   : > { %v3186_v24 = vadd.f32 %v4367_v50, %v7149_v37  ;;  %v3177_v1 = vpop.f32.mrb[45].mxu1 }
 0x37c   : > { %v3178_v33 = vadd.f32 %v7149_v37, %v3177_v1  ;;  %v4368_v36 = vpop.f32.mrb[46].mxu1 }
 0x37d   : > { %v3189_v10 = vadd.f32 %v4368_v36, %v7149_v37  ;;  %v3180_v51 = vpop.f32.mrb[47].mxu1  ;;  %v3302_v7 = vmax.f32 %v3186_v24, 0.0 }
 0x37e   : > { %v3181_v27 = vadd.f32 %v7149_v37, %v3180_v51  ;;  %v3300_v34 = vmax.f32 %v3178_v33, 0.0 }
 0x37f   : > { %v3303_v53 = vmax.f32 %v3189_v10, 0.0 }
 0x380   : > { %v3301_v48 = vmax.f32 %v3181_v27, 0.0 }
 0x381   : > { %v4072_v28 = vpack.c.bf16 %v3303_v53, %v3302_v7 }
 0x382   : > { %v4067_v20 = vpack.c.bf16 %v3301_v48, %v3300_v34 }
 0x383   : > { %4136 = vst [vmem:[%s7206_s29 + $0xb8] sm:$0xff] %v4072_v28  }
 0x384   : > { %4135 = vst [vmem:[%s7206_s29 + $0xb0] sm:$0xff] %v4067_v20  }
 0x392   : > { %v4371_v41 = vpop.f32.mrb[48].mxu1 }
 0x393   : > { %v3202_v4 = vadd.f32 %v4371_v41, %v7149_v37  ;;  %v3193_v5 = vpop.f32.mrb[49].mxu1 }
 0x394   : > { %v3194_v43 = vadd.f32 %v7149_v37, %v3193_v5  ;;  %v4372_v18 = vpop.f32.mrb[50].mxu1 }
 0x395   : > { %v3205_v16 = vadd.f32 %v4372_v18, %v7149_v37  ;;  %v3196_v11 = vpop.f32.mrb[51].mxu1  ;;  %v3306_v32 = vmax.f32 %v3202_v4, 0.0 }
 0x396   : > { %v3197_v31 = vadd.f32 %v7149_v37, %v3196_v11  ;;  %v3304_v9 = vmax.f32 %v3194_v43, 0.0 }
 0x397   : > { %v3307_v54 = vmax.f32 %v3205_v16, 0.0 }
 0x398   : > { %v3305_v47 = vmax.f32 %v3197_v31, 0.0 }
 0x399   : > { %v4082_v62 = vpack.c.bf16 %v3307_v54, %v3306_v32 }
 0x39a   : > { %v4077_v25 = vpack.c.bf16 %v3305_v47, %v3304_v9 }
 0x39b   : > { %4138 = vst [vmem:[%s7206_s29 + $0xc8] sm:$0xff] %v4082_v62  }
 0x39c   : > { %4137 = vst [vmem:[%s7206_s29 + $0xc0] sm:$0xff] %v4077_v25  }
 0x3a9   : > { %v4375_v15 = vpop.f32.mrb[52].mxu1 }
 0x3aa   : > { %v3218_v56 = vadd.f32 %v4375_v15, %v7149_v37  ;;  %v3209_v30 = vpop.f32.mrb[53].mxu1 }
 0x3ab   : > { %v3210_v29 = vadd.f32 %v7149_v37, %v3209_v30  ;;  %v4376_v35 = vpop.f32.mrb[54].mxu1 }
 0x3ac   : > { %v3221_v52 = vadd.f32 %v4376_v35, %v7149_v37  ;;  %v3212_v23 = vpop.f32.mrb[55].mxu1  ;;  %v3310_v42 = vmax.f32 %v3218_v56, 0.0 }
 0x3ad   : > { %v3213_v17 = vadd.f32 %v7149_v37, %v3212_v23  ;;  %v3308_v39 = vmax.f32 %v3210_v29, 0.0 }
 0x3ae   : > { %v3311_v13 = vmax.f32 %v3221_v52, 0.0 }
 0x3af   : > { %v3309_v60 = vmax.f32 %v3213_v17, 0.0 }
 0x3b0   : > { %v4092_v6 = vpack.c.bf16 %v3311_v13, %v3310_v42 }
 0x3b1   : > { %v4087_v12 = vpack.c.bf16 %v3309_v60, %v3308_v39 }
 0x3b2   : > { %4140 = vst [vmem:[%s7206_s29 + $0xd8] sm:$0xff] %v4092_v6  }
 0x3b3   : > { %4139 = vst [vmem:[%s7206_s29 + $0xd0] sm:$0xff] %v4087_v12  }
 0x3c1   : > { %v4379_v0 = vpop.f32.mrb[56].mxu1 }
 0x3c2   : > { %v3234_v44 = vadd.f32 %v4379_v0, %v7149_v37  ;;  %v3225_v45 = vpop.f32.mrb[57].mxu1 }
 0x3c3   : > { %v3226_v3 = vadd.f32 %v7149_v37, %v3225_v45  ;;  %v4380_v38 = vpop.f32.mrb[58].mxu1 }
 0x3c4   : > { %v3237_v57 = vadd.f32 %v4380_v38, %v7149_v37  ;;  %v3228_v2 = vpop.f32.mrb[59].mxu1  ;;  %v3314_v59 = vmax.f32 %v3234_v44, 0.0 }
 0x3c5   : > { %v3229_v14 = vadd.f32 %v7149_v37, %v3228_v2  ;;  %v3312_v61 = vmax.f32 %v3226_v3, 0.0 }
 0x3c6   : > { %v3315_v55 = vmax.f32 %v3237_v57, 0.0 }
 0x3c7   : > { %v3313_v46 = vmax.f32 %v3229_v14, 0.0 }
 0x3c8   : > { %v4102_v63 = vpack.c.bf16 %v3315_v55, %v3314_v59 }
 0x3c9   : > { %v4097_v21 = vpack.c.bf16 %v3313_v46, %v3312_v61 }
 0x3ca   : > { %4142 = vst [vmem:[%s7206_s29 + $0xe8] sm:$0xff] %v4102_v63  }
 0x3cb   : > { %4141 = vst [vmem:[%s7206_s29 + $0xe0] sm:$0xff] %v4097_v21  }
 0x3d3   : > { %v4383_v19 = vpop.f32.mrb[60].mxu1 }
 0x3d4   : > { %v3250_v40 = vadd.f32 %v4383_v19, %v7149_v37  ;;  %v3241_v49 = vpop.f32.mrb[61].mxu1 }
 0x3d5   : > { %v3242_v26 = vadd.f32 %v7149_v37, %v3241_v49  ;;  %v4384_v22 = vpop.f32.mrb[62].mxu1 }
 0x3d6   : > { %v3253_v58 = vadd.f32 %v4384_v22, %v7149_v37  ;;  %v3244_v8 = vpop.f32.mrb[63].mxu1  ;;  %v3318_v24 = vmax.f32 %v3250_v40, 0.0 }
 0x3d7   : > { %v3245_v50 = vadd.f32 %v7149_v37, %v3244_v8  ;;  %v3316_v33 = vmax.f32 %v3242_v26, 0.0 }
 0x3d8   : > { %v3319_v1 = vmax.f32 %v3253_v58, 0.0 }
 0x3d9   : > { %v3317_v36 = vmax.f32 %v3245_v50, 0.0 }
 0x3da   : > { %v4112_v10 = vpack.c.bf16 %v3319_v1, %v3318_v24 }
 0x3db   : > { %v4107_v51 = vpack.c.bf16 %v3317_v36, %v3316_v33 }
 0x3dc   : > { %4144 = vst [vmem:[%s7206_s29 + $0xf8] sm:$0xff] %v4112_v10  }
 0x3dd   : > { %4143 = vst [vmem:[%s7206_s29 + $0xf0] sm:$0xff] %v4107_v51  }
 0x3de   : > { %4634 = shalt.err (!%p4631_p1)
}
 0x3df   : > { %s4635_s13 = scalar_lea.hbm %s7317_s19, 4096  ;;  %s4639_s29 = scalar_lea.hbm %s7372_s7, 8192 }
 0x3e0   : > { %p4636_p13 = scmp.ne.s32.totalorder %s7317_s19, %s4635_s13  ;;  %p4640_p4 = scmp.lt.u32.totalorder %s7317_s19, %s7372_s7 }
 0x3e1   : > { %p4641_p5 = scmp.lt.u32.totalorder %s4639_s29, %s4635_s13  ;;  %p4643_p11 = scmp.lt.u32.totalorder %s4635_s13, %s7317_s19 }
 0x3e2   : > { %p4637_p6 = pnand %p4636_p13, %p7557_p0 }
 0x3e3   : > { %p4642_p8 = por %p4641_p5, %p4640_p4 }
 0x3e4   : > { %p4638_p10 = pneg %p4637_p6 }
 0x3e5   : > { %p4644_p2 = por %p4643_p11, %p4642_p8 }
 0x3e7   : > { %p4645_p3 = pnand %p4644_p2, %p4638_p10 }
 0x3e9   : > { %4648 = shalt.err (!%p4645_p3)
}
 0x3ea   : > { %s4699_s15 = smov 64   ;;  %s4700_s14 = smov 4  }
 0x3eb   : > { %4395 = dma.vmem_to_hbm [thread:$0]  (%p7557_p0), %s7319_s11, 4096, %s7317_s19, %s3641_s28, %s4699_s15, %s4699_s15, %s4700_s14  }
 0x3ec PF: > { %s3669_s21 = sand.u32 1, %s4679_s24   ;;  %p7558_p7 = scmp.ne.s32.totalorder %s7438_s8, 0 }
 0x3ed   : > { %p7559_p9 = scmp.ge.s32.totalorder %s4691_s27, 2  ;;  %s3670_s23 = scalar_lea.sflag [#allocation4], %s3669_s21 }
 0x3ef   : > { %p4409_p12 = pnand %p7559_p9, %p7558_p7 }
 0x3f1   : > { %4674 = dma.done.wait (!%p4409_p12), %s3670_s23, 4096  }
 0x3f2   : > { %4676 = vsyncadd (!%p4409_p12), %s3670_s23, 4294963200  ;;  %p21_p1 = scmp.ge.s32.totalorder %s4857_s12, 4   ;;  %s7560_s24 = smov %s4683_s25 }
 0x3f3   : > { %s7561_s25 = smov %s4687_s26  ;;  %s7562_s26 = smov %s4873_s17 }
 0x3f4   : > { %s7563_s27 = smov %s4857_s12  ;;  %23 = sbr.rel (!%p21_p1) target bundleno = 6 (0x6), region = 101 }
 0x3fb   :  { %3675 = vsyncpa [#allocation3], 1 }
 0x3fc   :  { %3677 = vsyncpa [#allocation3 + $0x1], 1 }
 0x3fd   :  { %3678 = vsyncpa [#allocation6], 1 }
 0x3fe   :  { %3679 = vsyncpa [#allocation4], 1 }
 0x3ff   :  { %3681 = vsyncpa [#allocation4 + $0x1], 1 }

</bundles_post_ra>
